<compile_context>
chip_gen: v5e
topology: v5e:2x2
jax: 0.10.0
libtpu: 0.0.40
codegen_flags: <defaults>
</compile_context>

<pallas_src>
import functools
import math

import jax
import jax.numpy as jnp
from jax.experimental import pallas as pl
from jax.experimental.pallas import tpu as pltpu


def _round_up(x, m):
    return ((x + m - 1) // m) * m


# ----------------------------------------------------------------------------
# Kernel
# ----------------------------------------------------------------------------
def _fine_matching_kernel(f0_ref, f1_ref, p_ref, g_ref, out_ref, *,
                          softmax_temp, n_rows, kch):
    """One row-tile of LoFTR fine matching.

    f0_ref : [tm, KCH]    feat_f0 tiled so lane l holds channel (l % C)   (input dtype)
    f1_ref : [tm, PACK]   feat_f1 flattened to PACK = WW*C dense lanes    (input dtype)
    p_ref  : [PACK, WW]   exact 0/1 segment-sum matrix (bf16)
    g_ref  : [2, WW, 128] hi/lo bf16 split of the moment matrix
                          (cols 0..4 = [1, gx, gy, gx^2, gy^2], rest 0)
    out_ref: [tm, 128]    lanes 0..2 = (cx, cy, std)
    """
    tm = f1_ref.shape[0]
    pack = f1_ref.shape[1]
    ww = p_ref.shape[1]
    n_chunks = pack // kch

    f0 = f0_ref[...].astype(jnp.float32)                           # [tm, KCH]

    # sim[m, r] = sum_c f0[m, c] * f1[m, r, c], computed on the MXU as
    # segment-sums over the dense packed lanes, KCH lanes at a time.
    sim = jnp.zeros((tm, ww), jnp.float32)
    for k in range(n_chunks):
        ks, ke = k * kch, (k + 1) * kch
        prod = f1_ref[:, ks:ke].astype(jnp.float32) * f0           # [tm, KCH] f32
        hi = prod.astype(jnp.bfloat16)
        lo = (prod - hi.astype(jnp.float32)).astype(jnp.bfloat16)
        pk = p_ref[ks:ke, :]                                       # [KCH, WW] bf16 (0/1)
        sim = sim + jnp.dot(hi, pk, preferred_element_type=jnp.float32)
        sim = sim + jnp.dot(lo, pk, preferred_element_type=jnp.float32)

    logits = sim * softmax_temp                                    # [tm, WW]

    # Tail rows of the last (partial) block hold undefined data: force them to
    # a finite uniform softmax.  They are never written back past n_rows.
    row = pl.program_id(0) * tm + jax.lax.broadcasted_iota(jnp.int32, (tm, 1), 0)
    logits = jnp.where(row < n_rows, logits, 0.0)

    # Numerically-stable *unnormalized* softmax (normalization is deferred to
    # the [tm, 1] moment vectors).
    mx = jnp.max(logits, axis=-1, keepdims=True)                   # [tm, 1]
    e = jnp.exp(logits - mx)                                       # [tm, WW]

    # All five moment reductions as one small MXU matmul.  The grid values are
    # not bf16-exact, so both operands are hi/lo split (drop the lo*lo term).
    e_hi = e.astype(jnp.bfloat16)
    e_lo = (e - e_hi.astype(jnp.float32)).astype(jnp.bfloat16)
    g_hi = g_ref[0]                                                # [WW, 128] bf16
    g_lo = g_ref[1]
    mom = (jnp.dot(e_hi, g_hi, preferred_element_type=jnp.float32)
           + jnp.dot(e_hi, g_lo, preferred_element_type=jnp.float32)
           + jnp.dot(e_lo, g_hi, preferred_element_type=jnp.float32))   # [tm, 128]

    s = mom[:, 0:1]
    sx = mom[:, 1:2]
    sy = mom[:, 2:3]
    sxx = mom[:, 3:4]
    syy = mom[:, 4:5]

    inv_s = pl.reciprocal(s, approx=False)                         # exact, [tm, 1]
    cx = sx * inv_s
    cy = sy * inv_s
    vx = sxx * inv_s - cx * cx
    vy = syy * inv_s - cy * cy
    std = jnp.sqrt(jnp.maximum(vx, 1e-10)) + jnp.sqrt(jnp.maximum(vy, 1e-10))

    # Lane-dense [tm, 128] output slab: lane0=cx, lane1=cy, lane2=std, rest 0.
    lane = jax.lax.broadcasted_iota(jnp.int32, out_ref.shape, 1)
    out = jnp.where(lane == 0, cx,
          jnp.where(lane == 1, cy,
          jnp.where(lane == 2, std, 0.0)))
    out_ref[...] = out.astype(out_ref.dtype)


# ----------------------------------------------------------------------------
# Constants
# ----------------------------------------------------------------------------
def _meshgrid_xy(W):
    # kornia.create_meshgrid(W, W, normalized_coordinates=True).reshape(1,-1,2):
    # row-major flatten over (y, x); last dim is (x, y); values in [-1, 1].
    lin = jnp.linspace(-1.0, 1.0, W, dtype=jnp.float32)
    yv, xv = jnp.meshgrid(lin, lin, indexing="ij")
    return xv.reshape(-1), yv.reshape(-1)                          # gx, gy  [WW]


def _moment_matrix(W):
    gx, gy = _meshgrid_xy(W)
    ww = W * W
    g = jnp.zeros((ww, 128), jnp.float32)
    g = g.at[:, 0].set(1.0)
    g = g.at[:, 1].set(gx)
    g = g.at[:, 2].set(gy)
    g = g.at[:, 3].set(gx * gx)
    g = g.at[:, 4].set(gy * gy)
    g_hi = g.astype(jnp.bfloat16)
    g_lo = (g - g_hi.astype(jnp.float32)).astype(jnp.bfloat16)
    return jnp.stack([g_hi, g_lo], axis=0)                         # [2, WW, 128] bf16


def _segment_matrix(ww, c):
    # P[j, r] = 1 iff packed lane j = r*C + c belongs to window position r.
    pack = ww * c
    rows = jnp.arange(pack, dtype=jnp.int32) // c
    cols = jnp.arange(ww, dtype=jnp.int32)
    return (rows[:, None] == cols[None, :]).astype(jnp.bfloat16)   # [PACK, WW]


# ----------------------------------------------------------------------------
# Wrapper
# ----------------------------------------------------------------------------
def fine_matching(feat_f0, feat_f1, *, tm=None):
    """feat_f0: [M, C], feat_f1: [M, WW, C] -> expec_f: [M, 3] (float32)."""
    M, WW, C = feat_f1.shape
    assert feat_f0.shape == (M, C)
    if M == 0:
        # Empty-M early-exit handled in the wrapper (no kernel launch).
        return jnp.empty((0, 3), dtype=jnp.float32)

    W = int(math.isqrt(WW))
    assert W * W == WW, "WW must be a perfect square"
    PACK = WW * C
    # TODO(synk): generalize the f0 lane-tiling for C that does not divide 128.
    assert C <= 128 and 128 % C == 0, "packed path needs C | 128"
    assert PACK % 128 == 0, "packed path needs WW*C to be a multiple of 128"
    KCH = 256 if PACK % 256 == 0 else 128                          # MXU K-chunk

    # Row tile policy: default 512 (v5e/v6e; raise to 1024 if desired),
    # clamped so the grid has >= 4 steps where possible (lets v7x split the
    # 'parallel' axis over both TensorCores).  Always a multiple of 16.
    if tm is None:
        tm = 512
    tm = max(16, (int(tm) // 16) * 16)
    tm = min(tm, max(16, _round_up(pl.cdiv(M, 4), 16)))
    grid_m = pl.cdiv(M, tm)

    softmax_temp = 1.0 / (C ** 0.5)

    # Dense, lane-packed operand layouts.  These are pure reshapes/tiles of the
    # dense data; in production fuse them into the upstream feature producer so
    # no extra HBM relayout pass is paid here.
    f1_packed = feat_f1.reshape(M, PACK)                           # [M, WW*C], dense
    f0_tiled = jnp.tile(feat_f0, (1, KCH // C))                    # [M, KCH]
    p_mat = _segment_matrix(WW, C)                                 # [PACK, WW] bf16
    g_mat = _moment_matrix(W)                                      # [2, WW, 128] bf16

    kernel = functools.partial(_fine_matching_kernel,
                               softmax_temp=softmax_temp, n_rows=M, kch=KCH)

    # VMEM budget: double-buffered operands + resident constants + slack,
    # capped well below v7x's 64 MiB physical VMEM.
    f1_block = tm * PACK * jnp.dtype(feat_f1.dtype).itemsize
    f0_block = tm * KCH * jnp.dtype(feat_f0.dtype).itemsize
    vmem = (2 * f1_block + 2 * f0_block + 2 * tm * 128 * 4
            + 2 * p_mat.size * 2 + 2 * g_mat.size * 2 + (8 << 20))
    vmem = int(min(48 << 20, max(16 << 20, vmem)))

    out = pl.pallas_call(
        kernel,
        out_shape=jax.ShapeDtypeStruct((M, 128), jnp.float32),
        grid_spec=pltpu.PrefetchScalarGridSpec(
            num_scalar_prefetch=0,
            grid=(grid_m,),
            in_specs=[
                pl.BlockSpec((tm, KCH), lambda i: (i, 0)),         # f0 (tiled)
                pl.BlockSpec((tm, PACK), lambda i: (i, 0)),        # f1 (dense packed)
                pl.BlockSpec((PACK, WW), lambda i: (0, 0)),        # P  (resident)
                pl.BlockSpec((2, WW, 128), lambda i: (0, 0, 0)),   # G  (resident)
            ],
            out_specs=pl.BlockSpec((tm, 128), lambda i: (i, 0)),
        ),
        compiler_params=pltpu.CompilerParams(
            dimension_semantics=("parallel",),
            vmem_limit_bytes=vmem,
        ),
    )(f0_tiled, f1_packed, p_mat, g_mat)

    return out[:, :3]


# ----------------------------------------------------------------------------
# Pure-JAX reference of the PyTorch forward pass (float32 compute)
# ----------------------------------------------------------------------------
def fine_matching_ref(feat_f0, feat_f1):
    M, WW, C = feat_f1.shape
    W = int(math.isqrt(WW))
    f0 = feat_f0.astype(jnp.float32)
    f1 = feat_f1.astype(jnp.float32)
    sim = jnp.einsum("mc,mrc->mr", f0, f1,
                     precision=jax.lax.Precision.HIGHEST)
    heatmap = jax.nn.softmax(sim / (C ** 0.5), axis=1)             # [M, WW]
    gx, gy = _meshgrid_xy(W)
    grid = jnp.stack([gx, gy], axis=-1)                            # [WW, 2] (x, y)
    coords = jnp.sum(heatmap[:, :, None] * grid[None], axis=1)     # [M, 2]
    var = jnp.sum(grid[None] ** 2 * heatmap[:, :, None], axis=1) - coords ** 2
    std = jnp.sum(jnp.sqrt(jnp.maximum(var, 1e-10)), axis=-1)      # [M]
    return jnp.concatenate([coords, std[:, None]], axis=-1)        # [M, 3]


if __name__ == "__main__":
    # Shapes consistent with the module: W=8 -> WW=64, C=32.
    W, C = 8, 32
    WW = W * W
    key = jax.random.PRNGKey(0)

    # Case 1: f32, M not divisible by the row tile (cdiv grid + tail masking).
    M1 = 300
    k0, k1, key = jax.random.split(key, 3)
    feat_f0 = jax.random.normal(k0, (M1, C), dtype=jnp.float32)
    feat_f1 = jax.random.normal(k1, (M1, WW, C), dtype=jnp.float32)
    out = jax.block_until_ready(fine_matching(feat_f0, feat_f1))
    ref = jax.block_until_ready(fine_matching_ref(feat_f0, feat_f1))
    assert out.shape == (M1, 3)
    assert bool(jnp.allclose(out, ref, atol=2e-4, rtol=2e-4)), \
        float(jnp.max(jnp.abs(out - ref)))

    # Case 2: small M (tile clamps to M, single grid step).
    M2 = 16
    k0, k1, key = jax.random.split(key, 3)
    f0_s = jax.random.normal(k0, (M2, C), dtype=jnp.float32)
    f1_s = jax.random.normal(k1, (M2, WW, C), dtype=jnp.float32)
    out_s = jax.block_until_ready(fine_matching(f0_s, f1_s))
    ref_s = jax.block_until_ready(fine_matching_ref(f0_s, f1_s))
    assert out_s.shape == (M2, 3)
    assert bool(jnp.allclose(out_s, ref_s, atol=2e-4, rtol=2e-4)), \
        float(jnp.max(jnp.abs(out_s - ref_s)))

    # Case 3: bf16 inputs pass through unchanged (halved HBM traffic path);
    # reference is computed from the same bf16 values in f32.
    M3 = 160
    k0, k1, key = jax.random.split(key, 3)
    f0_b = jax.random.normal(k0, (M3, C), dtype=jnp.float32).astype(jnp.bfloat16)
    f1_b = jax.random.normal(k1, (M3, WW, C), dtype=jnp.float32).astype(jnp.bfloat16)
    out_b = jax.block_until_ready(fine_matching(f0_b, f1_b))
    ref_b = jax.block_until_ready(fine_matching_ref(f0_b, f1_b))
    assert out_b.shape == (M3, 3)
    assert bool(jnp.allclose(out_b, ref_b, atol=2e-4, rtol=2e-4)), \
        float(jnp.max(jnp.abs(out_b - ref_b)))

    # Case 4: empty-M path (wrapper only, no kernel launch).
    empty = fine_matching(jnp.zeros((0, C), jnp.float32),
                          jnp.zeros((0, WW, C), jnp.float32))
    assert empty.shape == (0, 3)

    print("KERNEL_OK")
</pallas_src>

<mosaic_0001>
module attributes {stable_mosaic.version = 11 : i64} {
  func.func @_fine_matching_kernel(%arg0: i32, %arg1: memref<80x256xf32, #tpu.memory_space<vmem>>, %arg2: memref<80x2048xf32, #tpu.memory_space<vmem>>, %arg3: memref<2048x64xbf16, #tpu.memory_space<vmem>>, %arg4: memref<2x64x128xbf16, #tpu.memory_space<vmem>>, %arg5: memref<80x128xf32, #tpu.memory_space<vmem>>) attributes {dimension_semantics = [#tpu.dimension_semantics<parallel>], iteration_bounds = array<i64: 4>, scalar_prefetch = 0 : i64, scratch_operands = 0 : i64, tpu.core_type = #tpu.core_type<tc>, window_params = [{transform_indices = @transform_0, window_bounds = array<i64: 80, 256>}, {transform_indices = @transform_1, window_bounds = array<i64: 80, 2048>}, {pipeline_mode = #tpu.pipeline_mode<synchronous>, transform_indices = @transform_2, window_bounds = array<i64: 2048, 64>}, {pipeline_mode = #tpu.pipeline_mode<synchronous>, transform_indices = @transform_3, window_bounds = array<i64: 2, 64, 128>}, {transform_indices = @transform_4, window_bounds = array<i64: 80, 128>}]} {
    %c0 = arith.constant 0 : index
    %c0_0 = arith.constant 0 : index
    %0 = vector.load %arg1[%c0, %c0_0] : memref<80x256xf32, #tpu.memory_space<vmem>>, vector<80x256xf32>
    %cst = arith.constant 0.000000e+00 : f32
    %1 = vector.broadcast %cst : f32 to vector<80x64xf32>
    %c0_1 = arith.constant 0 : index
    %c0_2 = arith.constant 0 : index
    %2 = vector.load %arg2[%c0_1, %c0_2] : memref<80x2048xf32, #tpu.memory_space<vmem>>, vector<80x256xf32>
    %3 = arith.mulf %2, %0 : vector<80x256xf32>
    %4 = arith.truncf %3 : vector<80x256xf32> to vector<80x256xbf16>
    %5 = arith.extf %4 : vector<80x256xbf16> to vector<80x256xf32>
    %6 = arith.subf %3, %5 : vector<80x256xf32>
    %7 = arith.truncf %6 : vector<80x256xf32> to vector<80x256xbf16>
    %c0_3 = arith.constant 0 : index
    %c0_4 = arith.constant 0 : index
    %8 = vector.load %arg3[%c0_3, %c0_4] : memref<2048x64xbf16, #tpu.memory_space<vmem>>, vector<256x64xbf16>
    %cst_5 = arith.constant dense<0.000000e+00> : vector<80x64xf32>
    %9 = tpu.matmul %4, %8, %cst_5 {dimension_numbers = #tpu.dot_dimension_numbers<[1], [0], [0], [1], [0, 0, 1, 1], [], []>} : vector<80x256xbf16>, vector<256x64xbf16>, vector<80x64xf32> -> vector<80x64xf32>
    %10 = arith.addf %1, %9 : vector<80x64xf32>
    %cst_6 = arith.constant dense<0.000000e+00> : vector<80x64xf32>
    %11 = tpu.matmul %7, %8, %cst_6 {dimension_numbers = #tpu.dot_dimension_numbers<[1], [0], [0], [1], [0, 0, 1, 1], [], []>} : vector<80x256xbf16>, vector<256x64xbf16>, vector<80x64xf32> -> vector<80x64xf32>
    %12 = arith.addf %10, %11 : vector<80x64xf32>
    %c0_7 = arith.constant 0 : index
    %c256 = arith.constant 256 : index
    %13 = vector.load %arg2[%c0_7, %c256] : memref<80x2048xf32, #tpu.memory_space<vmem>>, vector<80x256xf32>
    %14 = arith.mulf %13, %0 : vector<80x256xf32>
    %15 = arith.truncf %14 : vector<80x256xf32> to vector<80x256xbf16>
    %16 = arith.extf %15 : vector<80x256xbf16> to vector<80x256xf32>
    %17 = arith.subf %14, %16 : vector<80x256xf32>
    %18 = arith.truncf %17 : vector<80x256xf32> to vector<80x256xbf16>
    %c256_8 = arith.constant 256 : index
    %c0_9 = arith.constant 0 : index
    %19 = vector.load %arg3[%c256_8, %c0_9] : memref<2048x64xbf16, #tpu.memory_space<vmem>>, vector<256x64xbf16>
    %cst_10 = arith.constant dense<0.000000e+00> : vector<80x64xf32>
    %20 = tpu.matmul %15, %19, %cst_10 {dimension_numbers = #tpu.dot_dimension_numbers<[1], [0], [0], [1], [0, 0, 1, 1], [], []>} : vector<80x256xbf16>, vector<256x64xbf16>, vector<80x64xf32> -> vector<80x64xf32>
    %21 = arith.addf %12, %20 : vector<80x64xf32>
    %cst_11 = arith.constant dense<0.000000e+00> : vector<80x64xf32>
    %22 = tpu.matmul %18, %19, %cst_11 {dimension_numbers = #tpu.dot_dimension_numbers<[1], [0], [0], [1], [0, 0, 1, 1], [], []>} : vector<80x256xbf16>, vector<256x64xbf16>, vector<80x64xf32> -> vector<80x64xf32>
    %23 = arith.addf %21, %22 : vector<80x64xf32>
    %c0_12 = arith.constant 0 : index
    %c512 = arith.constant 512 : index
    %24 = vector.load %arg2[%c0_12, %c512] : memref<80x2048xf32, #tpu.memory_space<vmem>>, vector<80x256xf32>
    %25 = arith.mulf %24, %0 : vector<80x256xf32>
    %26 = arith.truncf %25 : vector<80x256xf32> to vector<80x256xbf16>
    %27 = arith.extf %26 : vector<80x256xbf16> to vector<80x256xf32>
    %28 = arith.subf %25, %27 : vector<80x256xf32>
    %29 = arith.truncf %28 : vector<80x256xf32> to vector<80x256xbf16>
    %c512_13 = arith.constant 512 : index
    %c0_14 = arith.constant 0 : index
    %30 = vector.load %arg3[%c512_13, %c0_14] : memref<2048x64xbf16, #tpu.memory_space<vmem>>, vector<256x64xbf16>
    %cst_15 = arith.constant dense<0.000000e+00> : vector<80x64xf32>
    %31 = tpu.matmul %26, %30, %cst_15 {dimension_numbers = #tpu.dot_dimension_numbers<[1], [0], [0], [1], [0, 0, 1, 1], [], []>} : vector<80x256xbf16>, vector<256x64xbf16>, vector<80x64xf32> -> vector<80x64xf32>
    %32 = arith.addf %23, %31 : vector<80x64xf32>
    %cst_16 = arith.constant dense<0.000000e+00> : vector<80x64xf32>
    %33 = tpu.matmul %29, %30, %cst_16 {dimension_numbers = #tpu.dot_dimension_numbers<[1], [0], [0], [1], [0, 0, 1, 1], [], []>} : vector<80x256xbf16>, vector<256x64xbf16>, vector<80x64xf32> -> vector<80x64xf32>
    %34 = arith.addf %32, %33 : vector<80x64xf32>
    %c0_17 = arith.constant 0 : index
    %c768 = arith.constant 768 : index
    %35 = vector.load %arg2[%c0_17, %c768] : memref<80x2048xf32, #tpu.memory_space<vmem>>, vector<80x256xf32>
    %36 = arith.mulf %35, %0 : vector<80x256xf32>
    %37 = arith.truncf %36 : vector<80x256xf32> to vector<80x256xbf16>
    %38 = arith.extf %37 : vector<80x256xbf16> to vector<80x256xf32>
    %39 = arith.subf %36, %38 : vector<80x256xf32>
    %40 = arith.truncf %39 : vector<80x256xf32> to vector<80x256xbf16>
    %c768_18 = arith.constant 768 : index
    %c0_19 = arith.constant 0 : index
    %41 = vector.load %arg3[%c768_18, %c0_19] : memref<2048x64xbf16, #tpu.memory_space<vmem>>, vector<256x64xbf16>
    %cst_20 = arith.constant dense<0.000000e+00> : vector<80x64xf32>
    %42 = tpu.matmul %37, %41, %cst_20 {dimension_numbers = #tpu.dot_dimension_numbers<[1], [0], [0], [1], [0, 0, 1, 1], [], []>} : vector<80x256xbf16>, vector<256x64xbf16>, vector<80x64xf32> -> vector<80x64xf32>
    %43 = arith.addf %34, %42 : vector<80x64xf32>
    %cst_21 = arith.constant dense<0.000000e+00> : vector<80x64xf32>
    %44 = tpu.matmul %40, %41, %cst_21 {dimension_numbers = #tpu.dot_dimension_numbers<[1], [0], [0], [1], [0, 0, 1, 1], [], []>} : vector<80x256xbf16>, vector<256x64xbf16>, vector<80x64xf32> -> vector<80x64xf32>
    %45 = arith.addf %43, %44 : vector<80x64xf32>
    %c0_22 = arith.constant 0 : index
    %c1024 = arith.constant 1024 : index
    %46 = vector.load %arg2[%c0_22, %c1024] : memref<80x2048xf32, #tpu.memory_space<vmem>>, vector<80x256xf32>
    %47 = arith.mulf %46, %0 : vector<80x256xf32>
    %48 = arith.truncf %47 : vector<80x256xf32> to vector<80x256xbf16>
    %49 = arith.extf %48 : vector<80x256xbf16> to vector<80x256xf32>
    %50 = arith.subf %47, %49 : vector<80x256xf32>
    %51 = arith.truncf %50 : vector<80x256xf32> to vector<80x256xbf16>
    %c1024_23 = arith.constant 1024 : index
    %c0_24 = arith.constant 0 : index
    %52 = vector.load %arg3[%c1024_23, %c0_24] : memref<2048x64xbf16, #tpu.memory_space<vmem>>, vector<256x64xbf16>
    %cst_25 = arith.constant dense<0.000000e+00> : vector<80x64xf32>
    %53 = tpu.matmul %48, %52, %cst_25 {dimension_numbers = #tpu.dot_dimension_numbers<[1], [0], [0], [1], [0, 0, 1, 1], [], []>} : vector<80x256xbf16>, vector<256x64xbf16>, vector<80x64xf32> -> vector<80x64xf32>
    %54 = arith.addf %45, %53 : vector<80x64xf32>
    %cst_26 = arith.constant dense<0.000000e+00> : vector<80x64xf32>
    %55 = tpu.matmul %51, %52, %cst_26 {dimension_numbers = #tpu.dot_dimension_numbers<[1], [0], [0], [1], [0, 0, 1, 1], [], []>} : vector<80x256xbf16>, vector<256x64xbf16>, vector<80x64xf32> -> vector<80x64xf32>
    %56 = arith.addf %54, %55 : vector<80x64xf32>
    %c0_27 = arith.constant 0 : index
    %c1280 = arith.constant 1280 : index
    %57 = vector.load %arg2[%c0_27, %c1280] : memref<80x2048xf32, #tpu.memory_space<vmem>>, vector<80x256xf32>
    %58 = arith.mulf %57, %0 : vector<80x256xf32>
    %59 = arith.truncf %58 : vector<80x256xf32> to vector<80x256xbf16>
    %60 = arith.extf %59 : vector<80x256xbf16> to vector<80x256xf32>
    %61 = arith.subf %58, %60 : vector<80x256xf32>
    %62 = arith.truncf %61 : vector<80x256xf32> to vector<80x256xbf16>
    %c1280_28 = arith.constant 1280 : index
    %c0_29 = arith.constant 0 : index
    %63 = vector.load %arg3[%c1280_28, %c0_29] : memref<2048x64xbf16, #tpu.memory_space<vmem>>, vector<256x64xbf16>
    %cst_30 = arith.constant dense<0.000000e+00> : vector<80x64xf32>
    %64 = tpu.matmul %59, %63, %cst_30 {dimension_numbers = #tpu.dot_dimension_numbers<[1], [0], [0], [1], [0, 0, 1, 1], [], []>} : vector<80x256xbf16>, vector<256x64xbf16>, vector<80x64xf32> -> vector<80x64xf32>
    %65 = arith.addf %56, %64 : vector<80x64xf32>
    %cst_31 = arith.constant dense<0.000000e+00> : vector<80x64xf32>
    %66 = tpu.matmul %62, %63, %cst_31 {dimension_numbers = #tpu.dot_dimension_numbers<[1], [0], [0], [1], [0, 0, 1, 1], [], []>} : vector<80x256xbf16>, vector<256x64xbf16>, vector<80x64xf32> -> vector<80x64xf32>
    %67 = arith.addf %65, %66 : vector<80x64xf32>
    %c0_32 = arith.constant 0 : index
    %c1536 = arith.constant 1536 : index
    %68 = vector.load %arg2[%c0_32, %c1536] : memref<80x2048xf32, #tpu.memory_space<vmem>>, vector<80x256xf32>
    %69 = arith.mulf %68, %0 : vector<80x256xf32>
    %70 = arith.truncf %69 : vector<80x256xf32> to vector<80x256xbf16>
    %71 = arith.extf %70 : vector<80x256xbf16> to vector<80x256xf32>
    %72 = arith.subf %69, %71 : vector<80x256xf32>
    %73 = arith.truncf %72 : vector<80x256xf32> to vector<80x256xbf16>
    %c1536_33 = arith.constant 1536 : index
    %c0_34 = arith.constant 0 : index
    %74 = vector.load %arg3[%c1536_33, %c0_34] : memref<2048x64xbf16, #tpu.memory_space<vmem>>, vector<256x64xbf16>
    %cst_35 = arith.constant dense<0.000000e+00> : vector<80x64xf32>
    %75 = tpu.matmul %70, %74, %cst_35 {dimension_numbers = #tpu.dot_dimension_numbers<[1], [0], [0], [1], [0, 0, 1, 1], [], []>} : vector<80x256xbf16>, vector<256x64xbf16>, vector<80x64xf32> -> vector<80x64xf32>
    %76 = arith.addf %67, %75 : vector<80x64xf32>
    %cst_36 = arith.constant dense<0.000000e+00> : vector<80x64xf32>
    %77 = tpu.matmul %73, %74, %cst_36 {dimension_numbers = #tpu.dot_dimension_numbers<[1], [0], [0], [1], [0, 0, 1, 1], [], []>} : vector<80x256xbf16>, vector<256x64xbf16>, vector<80x64xf32> -> vector<80x64xf32>
    %78 = arith.addf %76, %77 : vector<80x64xf32>
    %c0_37 = arith.constant 0 : index
    %c1792 = arith.constant 1792 : index
    %79 = vector.load %arg2[%c0_37, %c1792] : memref<80x2048xf32, #tpu.memory_space<vmem>>, vector<80x256xf32>
    %80 = arith.mulf %79, %0 : vector<80x256xf32>
    %81 = arith.truncf %80 : vector<80x256xf32> to vector<80x256xbf16>
    %82 = arith.extf %81 : vector<80x256xbf16> to vector<80x256xf32>
    %83 = arith.subf %80, %82 : vector<80x256xf32>
    %84 = arith.truncf %83 : vector<80x256xf32> to vector<80x256xbf16>
    %c1792_38 = arith.constant 1792 : index
    %c0_39 = arith.constant 0 : index
    %85 = vector.load %arg3[%c1792_38, %c0_39] : memref<2048x64xbf16, #tpu.memory_space<vmem>>, vector<256x64xbf16>
    %cst_40 = arith.constant dense<0.000000e+00> : vector<80x64xf32>
    %86 = tpu.matmul %81, %85, %cst_40 {dimension_numbers = #tpu.dot_dimension_numbers<[1], [0], [0], [1], [0, 0, 1, 1], [], []>} : vector<80x256xbf16>, vector<256x64xbf16>, vector<80x64xf32> -> vector<80x64xf32>
    %87 = arith.addf %78, %86 : vector<80x64xf32>
    %cst_41 = arith.constant dense<0.000000e+00> : vector<80x64xf32>
    %88 = tpu.matmul %84, %85, %cst_41 {dimension_numbers = #tpu.dot_dimension_numbers<[1], [0], [0], [1], [0, 0, 1, 1], [], []>} : vector<80x256xbf16>, vector<256x64xbf16>, vector<80x64xf32> -> vector<80x64xf32>
    %89 = arith.addf %87, %88 : vector<80x64xf32>
    %cst_42 = arith.constant 0.176776692 : f32
    %90 = vector.broadcast %cst_42 : f32 to vector<80x64xf32>
    %91 = arith.mulf %89, %90 : vector<80x64xf32>
    %c80_i32 = arith.constant 80 : i32
    %92 = arith.muli %arg0, %c80_i32 : i32
    %93 = tpu.iota {dimensions = array<i32: 0>} : vector<80x1xi32>
    %94 = vector.broadcast %92 : i32 to vector<80x1xi32>
    %95 = arith.addi %94, %93 : vector<80x1xi32>
    %c300_i32 = arith.constant 300 : i32
    %96 = vector.broadcast %c300_i32 : i32 to vector<80x1xi32>
    %97 = arith.cmpi slt, %95, %96 : vector<80x1xi32>
    %cst_43 = arith.constant 0.000000e+00 : f32
    %98 = vector.shape_cast %97 : vector<80x1xi1> to vector<80x1xi1>
    %99 = vector.broadcast %98 : vector<80x1xi1> to vector<80x64xi1>
    %100 = vector.broadcast %cst_43 : f32 to vector<80x64xf32>
    %101 = arith.select %99, %91, %100 : vector<80x64xi1>, vector<80x64xf32>
    %cst_44 = arith.constant dense<0xFF800000> : vector<80xf32>
    %102 = vector.multi_reduction <maximumf>, %101, %cst_44 [1] : vector<80x64xf32> to vector<80xf32>
    %103 = vector.shape_cast %102 : vector<80xf32> to vector<80x1xf32>
    %104 = vector.broadcast %103 : vector<80x1xf32> to vector<80x64xf32>
    %105 = arith.subf %101, %104 : vector<80x64xf32>
    %106 = math.exp %105 : vector<80x64xf32>
    %107 = arith.truncf %106 : vector<80x64xf32> to vector<80x64xbf16>
    %108 = arith.extf %107 : vector<80x64xbf16> to vector<80x64xf32>
    %109 = arith.subf %106, %108 : vector<80x64xf32>
    %110 = arith.truncf %109 : vector<80x64xf32> to vector<80x64xbf16>
    %c0_45 = arith.constant 0 : index
    %c0_46 = arith.constant 0 : index
    %c0_47 = arith.constant 0 : index
    %111 = vector.load %arg4[%c0_45, %c0_46, %c0_47] : memref<2x64x128xbf16, #tpu.memory_space<vmem>>, vector<1x64x128xbf16>
    %112 = vector.shape_cast %111 : vector<1x64x128xbf16> to vector<64x128xbf16>
    %c1 = arith.constant 1 : index
    %c0_48 = arith.constant 0 : index
    %c0_49 = arith.constant 0 : index
    %113 = vector.load %arg4[%c1, %c0_48, %c0_49] : memref<2x64x128xbf16, #tpu.memory_space<vmem>>, vector<1x64x128xbf16>
    %114 = vector.shape_cast %113 : vector<1x64x128xbf16> to vector<64x128xbf16>
    %cst_50 = arith.constant dense<0.000000e+00> : vector<80x128xf32>
    %115 = tpu.matmul %107, %112, %cst_50 {dimension_numbers = #tpu.dot_dimension_numbers<[1], [0], [0], [1], [0, 0, 1, 1], [], []>} : vector<80x64xbf16>, vector<64x128xbf16>, vector<80x128xf32> -> vector<80x128xf32>
    %cst_51 = arith.constant dense<0.000000e+00> : vector<80x128xf32>
    %116 = tpu.matmul %107, %114, %cst_51 {dimension_numbers = #tpu.dot_dimension_numbers<[1], [0], [0], [1], [0, 0, 1, 1], [], []>} : vector<80x64xbf16>, vector<64x128xbf16>, vector<80x128xf32> -> vector<80x128xf32>
    %117 = arith.addf %115, %116 : vector<80x128xf32>
    %cst_52 = arith.constant dense<0.000000e+00> : vector<80x128xf32>
    %118 = tpu.matmul %110, %112, %cst_52 {dimension_numbers = #tpu.dot_dimension_numbers<[1], [0], [0], [1], [0, 0, 1, 1], [], []>} : vector<80x64xbf16>, vector<64x128xbf16>, vector<80x128xf32> -> vector<80x128xf32>
    %119 = arith.addf %117, %118 : vector<80x128xf32>
    %120 = vector.extract_strided_slice %119 {offsets = [0, 0], sizes = [80, 1], strides = [1, 1]} : vector<80x128xf32> to vector<80x1xf32>
    %121 = vector.extract_strided_slice %119 {offsets = [0, 1], sizes = [80, 1], strides = [1, 1]} : vector<80x128xf32> to vector<80x1xf32>
    %122 = vector.extract_strided_slice %119 {offsets = [0, 2], sizes = [80, 1], strides = [1, 1]} : vector<80x128xf32> to vector<80x1xf32>
    %123 = vector.extract_strided_slice %119 {offsets = [0, 3], sizes = [80, 1], strides = [1, 1]} : vector<80x128xf32> to vector<80x1xf32>
    %124 = vector.extract_strided_slice %119 {offsets = [0, 4], sizes = [80, 1], strides = [1, 1]} : vector<80x128xf32> to vector<80x1xf32>
    %125 = tpu.reciprocal %120 : vector<80x1xf32> -> vector<80x1xf32>
    %126 = arith.mulf %121, %125 : vector<80x1xf32>
    %127 = arith.mulf %122, %125 : vector<80x1xf32>
    %128 = arith.mulf %123, %125 : vector<80x1xf32>
    %129 = arith.mulf %126, %126 : vector<80x1xf32>
    %130 = arith.subf %128, %129 : vector<80x1xf32>
    %131 = arith.mulf %124, %125 : vector<80x1xf32>
    %132 = arith.mulf %127, %127 : vector<80x1xf32>
    %133 = arith.subf %131, %132 : vector<80x1xf32>
    %cst_53 = arith.constant 1.000000e-10 : f32
    %134 = vector.broadcast %cst_53 : f32 to vector<80x1xf32>
    %135 = arith.maximumf %130, %134 : vector<80x1xf32>
    %136 = math.sqrt %135 : vector<80x1xf32>
    %cst_54 = arith.constant 1.000000e-10 : f32
    %137 = vector.broadcast %cst_54 : f32 to vector<80x1xf32>
    %138 = arith.maximumf %133, %137 : vector<80x1xf32>
    %139 = math.sqrt %138 : vector<80x1xf32>
    %140 = arith.addf %136, %139 : vector<80x1xf32>
    %141 = tpu.iota {dimensions = array<i32: 1>} : vector<80x128xi32>
    %c0_i32 = arith.constant 0 : i32
    %142 = vector.broadcast %c0_i32 : i32 to vector<80x128xi32>
    %143 = arith.cmpi eq, %141, %142 : vector<80x128xi32>
    %c1_i32 = arith.constant 1 : i32
    %144 = vector.broadcast %c1_i32 : i32 to vector<80x128xi32>
    %145 = arith.cmpi eq, %141, %144 : vector<80x128xi32>
    %c2_i32 = arith.constant 2 : i32
    %146 = vector.broadcast %c2_i32 : i32 to vector<80x128xi32>
    %147 = arith.cmpi eq, %141, %146 : vector<80x128xi32>
    %cst_55 = arith.constant 0.000000e+00 : f32
    %148 = vector.shape_cast %140 : vector<80x1xf32> to vector<80x1xf32>
    %149 = vector.broadcast %148 : vector<80x1xf32> to vector<80x128xf32>
    %150 = vector.broadcast %cst_55 : f32 to vector<80x128xf32>
    %151 = arith.select %147, %149, %150 : vector<80x128xi1>, vector<80x128xf32>
    %152 = vector.shape_cast %127 : vector<80x1xf32> to vector<80x1xf32>
    %153 = vector.broadcast %152 : vector<80x1xf32> to vector<80x128xf32>
    %154 = arith.select %145, %153, %151 : vector<80x128xi1>, vector<80x128xf32>
    %155 = vector.shape_cast %126 : vector<80x1xf32> to vector<80x1xf32>
    %156 = vector.broadcast %155 : vector<80x1xf32> to vector<80x128xf32>
    %157 = arith.select %143, %156, %154 : vector<80x128xi1>, vector<80x128xf32>
    %c0_56 = arith.constant 0 : index
    %c0_57 = arith.constant 0 : index
    %158 = vector.load %arg5[%c0_56, %c0_57] : memref<80x128xf32, #tpu.memory_space<vmem>>, vector<80x128xf32>
    tpu.vector_store %arg5[%c0_56, %c0_57], %157 {strides = array<i32>} : memref<80x128xf32, #tpu.memory_space<vmem>>, vector<80x128xf32>,
    return
  }
  func.func @transform_0(%arg0: i32) -> (i32, i32) {
    %c0_i32 = arith.constant 0 : i32
    %c0_i32_0 = arith.constant 0 : i32
    return %arg0, %c0_i32 : i32, i32
  }
  func.func @transform_1(%arg0: i32) -> (i32, i32) {
    %c0_i32 = arith.constant 0 : i32
    %c0_i32_0 = arith.constant 0 : i32
    return %arg0, %c0_i32 : i32, i32
  }
  func.func @transform_2(%arg0: i32) -> (i32, i32) {
    %c0_i32 = arith.constant 0 : i32
    %c0_i32_0 = arith.constant 0 : i32
    %c0_i32_1 = arith.constant 0 : i32
    return %c0_i32, %c0_i32_0 : i32, i32
  }
  func.func @transform_3(%arg0: i32) -> (i32, i32, i32) {
    %c0_i32 = arith.constant 0 : i32
    %c0_i32_0 = arith.constant 0 : i32
    %c0_i32_1 = arith.constant 0 : i32
    %c0_i32_2 = arith.constant 0 : i32
    return %c0_i32, %c0_i32_0, %c0_i32_1 : i32, i32, i32
  }
  func.func @transform_4(%arg0: i32) -> (i32, i32) {
    %c0_i32 = arith.constant 0 : i32
    %c0_i32_0 = arith.constant 0 : i32
    return %arg0, %c0_i32 : i32, i32
  }
}

</mosaic_0001>

<bundles_post_ra>
// kernel: tpu_custom_call.1
= control target key start
LH: loop header
LB: loop body
LE: loop exit
PB: predicated region body
PF: predicated region fallthrough
CT: control target
= control target key end

     0   :  { %s10145_s0 = inlined_call_operand.hbm [shape: f32[300,256], index: 0, kind: input, shape index: {}]   ;;  %s10146_s1 = inlined_call_operand.hbm [shape: f32[300,2048], index: 1, kind: input, shape index: {}]   ;;  %s10147_s2 = inlined_call_operand.vmem [shape: bf16[2048,64], index: 2, kind: input, shape index: {}]   ;;  %s10148_s3 = inlined_call_operand.hbm [shape: bf16[2,64,128], index: 3, kind: input, shape index: {}]   ;;  %s10149_s4 = inlined_call_operand.hbm [shape: f32[300,128], index: 4, kind: output, shape index: {}]  }
   0x1   :  { %10232 = sst [smem:[#allocation46_spill]] %s10148_s3 }
   0x2   :  { %9 = vsyncpa [#allocation3], 0 }
   0x3   :  { %11 = vsyncpa [#allocation3 + $0x1], 0 }
   0x4   :  { %12 = vsyncpa [#allocation6], 0 }
   0x5   :  { %14 = vsyncpa [#allocation6 + $0x1], 0 }
   0x6   :  { %15 = vsyncpa [#allocation4], 0 }
   0x7   :  { %17 = vsyncpa [#allocation4 + $0x1], 0  ;;  %s6463_s15 = smov 0   ;;  %s6465_s16 = smov 0  }
   0x8   :  { %s6467_s17 = smov 0   ;;  %s6469_s18 = smov 0  }
   0x9 LB: > { %s6484_s19 = sadd.s32 4294967295, %s6416_s18   ;;  %s5248_s20 = sadd.s32 4294967294, %s6416_s18   ;;  %s6416_s18 = sphi %s6469_s18, %s10415_s18   ;;  %s6412_s17 = sphi %s6467_s17, %s10414_s17   ;;  %s6408_s16 = sphi %s6465_s16, %s10413_s16   ;;  %s6404_s15 = sphi %s6463_s15, %s10412_s15  }
   0xa   : > { %s6488_s21 = sadd.s32 1, %s6416_s18   ;;  %s30_s22 = sadd.s32 1, %s6412_s17 }
   0xb   : > { %s27_s23 = ssub.s32 %s6416_s18, %s6488_s21  ;;  %p37_p0 = scmp.ne.s32.totalorder %s6412_s17, %s6408_s16 }
   0xc   : > { %p28_p1 = scmp.eq.s32.totalorder %s27_s23, 0  ;;  %p38_p2 = scmp.eq.s32.totalorder %s6416_s18, 0 }
   0xd   : > { %p43_p3 = scmp.ne.s32.totalorder %s6408_s16, %s6404_s15  ;;  %p10150_p4 = scmp.eq.s32.totalorder %s6484_s19, 0 }
   0xe   : > { %s6500_s24 = scalar_select %p28_p1, %s6412_s17, %s30_s22  }
   0xf   : > { %p6502_p5 = por %p38_p2, %p37_p0  ;;  %p6508_p6 = por %p10150_p4, %p43_p3 }
  0x10   : > { %10233 = sst [smem:[#allocation13_spill]] %s6500_s24  ;;  %p135_p7 = scmp.eq.s32.totalorder %s6484_s19, 3 }
  0x11   : > { %p141_p8 = scmp.eq.s32.totalorder %s5248_s20, 3  ;;  %p5249_p9 = scmp.ge.s32.totalorder %s6416_s18, 1 }
  0x12   : > { %p148_p10 = scmp.lt.s32.totalorder %s6416_s18, 5  ;;  %p6515_p11 = por %p135_p7, %p37_p0 }
  0x13   : > { %p6519_p12 = por %p141_p8, %p43_p3  ;;  %s10239_s3 = sld [smem:[#allocation46_spill]] }
  0x14   : > { %s10236_s27 = scalar_select %p6515_p11, 1, 0 }
  0x15   : > { %s10237_s28 = scalar_select %p6519_p12, 1, 0 }
  0x16   : > { %p6523_p13 = pnand %p5249_p9, %p148_p10  ;;  %s6418_s7 = smov [#allocation7]  }
  0x17   : > { %s164_s8 = sshll.u32 %s6418_s7, 4  ;;  %s6419_s9 = smov 64   ;;  %s165_s8 = int_to_ptr.vmem [resolvable:$true] %s164_s8 }
  0x18   : > { %p6011_p1 = pneg %p6523_p13  ;;  %s6420_s10 = smov 4  }
  0x19   : > { %s162_s6 = sshll.u32 %s10239_s3, 4  ;;  %p5251_p2 = scmp.ge.s32.totalorder %s6416_s18, 4  ;;  %s163_s6 = int_to_ptr.hbm [resolvable:$true] %s162_s6 }
  0x1a   : > { %p6012_p0 = pnand %p6011_p1, %p10150_p4 }
  0x1b   : > { %174 = sbr.rel (%p5251_p2) target bundleno = 108 (0x6c), region = 24 }
  0x1c   : > { %6014 = dma.hbm_to_vmem [thread:$0]  (!%p6012_p0), %s163_s6, 1024, %s165_s8, [#allocation6], %s6419_s9, %s6419_s9, %s6420_s10  }
  0x20   : > { %177 = sbr.rel (!%p6502_p5) target bundleno = 70 (0x46), region = 28  ;;  %s178_s11 = sand.u32 (%p6502_p5), 1, %s6412_s17  }
  0x21   : > { %s183_s12 = smul.u32 (%p6502_p5), 10, %s6416_s18  ;;  %s6542_s30 = scalar_lea.sflag (%p6502_p5), [#allocation3], %s178_s11 }
  0x22   : > { %s5999_s13 = smul.u32 (%p6502_p5), 160, %s178_s11 }
  0x23   : > { %s184_s14 = ssub.s32 (%p6502_p5), 38, %s183_s12 }
  0x24   : > { %p185_p3 = scmp.lt.s32.totalorder (%p6502_p5), %s184_s14, 10  ;;  %s182_s5 = scalar_lea.vmem (%p6502_p5), [#allocation2], %s5999_s13 }
  0x26   : > { %s10417_s14 = smov (!%p185_p3, %s184_s14), 10 }
  0x27   : > { %s5834_s20 = sshll.u32 %s10417_s14, 4 }
  0x28   : > { %s189_s22 = ssub.s32 160, %s5834_s20 }
  0x29   : > { %s190_s23 = sshll.u32 %s189_s22, 4 }
  0x2a   : > { %191 = vsyncadd %s6542_s30, %s190_s23  ;;  %p6545_p7 = scmp.ne.s32.totalorder %s5834_s20, 0  ;;  %s5977_s7 = smul.u32 160, %s6416_s18 }
  0x2b   : > { %s6550_s8 = sshll.u32 %s182_s5, 4  ;;  %s5258_s9 = sshll.u32 %s10417_s14, 8  ;;  %s200_s8 = int_to_ptr.vmem [resolvable:$true] %s6550_s8 }
  0x2c   : > { %s195_s11 = scalar_lea.hbm %s10145_s0, %s5977_s7  ;;  %s6255_s20 = sshrl.u32 %s5258_s9, 4 }
  0x2d   : > { %s197_s13 = sshll.u32 %s195_s11, 4  ;;  %s6264_s24 = scalar_lea.hbm %s10145_s0, 608  ;;  %s6557_s13 = int_to_ptr.hbm [resolvable:$true] %s197_s13 }
  0x2e   : > { %s6253_s22 = sshra.s32 %s6557_s13, 4  ;;  %s6254_s22 = int_to_ptr.hbm [resolvable:$true] %s6253_s22 }
  0x2f   : > { %s6260_s23 = scalar_lea.hbm %s6254_s22, %s6255_s20  ;;  %p6265_p1 = scmp.lt.s32.totalorder %s6254_s22, %s10145_s0 }
  0x30   : > { %p6261_p8 = scmp.ne.s32.totalorder %s6254_s22, %s6260_s23  ;;  %p6266_p0 = scmp.lt.s32.totalorder %s6264_s24, %s6260_s23 }
  0x32   : > { %p6262_p9 = pnand %p6261_p8, %p6545_p7  ;;  %p6267_p2 = por %p6266_p0, %p6265_p1 }
  0x34   : > { %p6263_p10 = pneg %p6262_p9 }
  0x36   : > { %p6268_p3 = pnand %p6267_p2, %p6263_p10 }
  0x38   : > { %6271 = shalt.err (!%p6268_p3)
}
  0x39   : > { %s6272_s12 = sshra.s32 %s200_s8, 4  ;;  %s6421_s3 = smov [#allocation2]   ;;  %s6273_s12 = int_to_ptr.vmem [resolvable:$true] %s6272_s12 }
  0x3a   : > { %s6279_s11 = scalar_lea.vmem %s6273_s12, %s6255_s20  ;;  %s6283_s5 = scalar_lea.vmem %s6421_s3, 320 }
  0x3b   : > { %p6280_p8 = scmp.ne.s32.totalorder %s6273_s12, %s6279_s11  ;;  %p6285_p12 = scmp.lt.s32.totalorder %s6283_s5, %s6279_s11 }
  0x3d   : > { %p6281_p9 = pnand %p6280_p8, %p6545_p7 }
  0x3f   : > { %p6282_p4 = pneg %p6281_p9 }
  0x41   : > { %p6287_p11 = pnand %p6285_p12, %p6282_p4 }
  0x43   : > { %6290 = shalt.err (!%p6287_p11)
}
  0x44   : > { %s6422_s22 = smov 256   ;;  %s6423_s24 = smov 16  }
  0x45   : > { %205 = dma.hbm_to_vmem [thread:$0]  (%p6545_p7), %s6557_s13, %s5258_s9, %s200_s8, %s6542_s30, %s6422_s22, %s6422_s22, %s6423_s24  }
  0x46 PF: > { %208 = sbr.rel (!%p6502_p5) target bundleno = 108 (0x6c), region = 32  ;;  %s209_s20 = sand.u32 (%p6502_p5), 1, %s6416_s18  }
  0x47   : > { %s211_s23 = sand.u32 (%p6502_p5), 1, %s6412_s17   ;;  %s214_s7 = smul.u32 (%p6502_p5), 10, %s6416_s18 }
  0x48   : > { %s6000_s10 = smul.u32 (%p6502_p5), 1280, %s211_s23  ;;  %s6590_s30 = scalar_lea.sflag (%p6502_p5), [#allocation6], %s209_s20 }
  0x49   : > { %s215_s12 = ssub.s32 (%p6502_p5), 38, %s214_s7 }
  0x4a   : > { %p216_p4 = scmp.lt.s32.totalorder (%p6502_p5), %s215_s12, 10  ;;  %s213_s25 = scalar_lea.vmem (%p6502_p5), [#allocation5], %s6000_s10 }
  0x4c   : > { %s10419_s12 = smov (!%p216_p4, %s215_s12), 10 }
  0x4d   : > { %s5837_s6 = sshll.u32 %s10419_s12, 7 }
  0x4e   : > { %s220_s11 = ssub.s32 1280, %s5837_s6 }
  0x4f   : > { %s221_s14 = sshll.u32 %s220_s11, 4 }
  0x50   : > { %222 = vsyncadd %s6590_s30, %s221_s14  ;;  %p6593_p5 = scmp.ne.s32.totalorder %s5837_s6, 0  ;;  %s5978_s9 = smul.u32 1280, %s6416_s18 }
  0x51   : > { %s6598_s13 = sshll.u32 %s213_s25, 4  ;;  %s5265_s3 = sshll.u32 %s10419_s12, 11  ;;  %s231_s13 = int_to_ptr.vmem [resolvable:$true] %s6598_s13 }
  0x52   : > { %s226_s24 = scalar_lea.hbm %s10146_s1, %s5978_s9  ;;  %s6294_s10 = sshrl.u32 %s5265_s3, 4 }
  0x53   : > { %s228_s20 = sshll.u32 %s226_s24, 4  ;;  %s6303_s14 = scalar_lea.hbm %s10146_s1, 4864  ;;  %s6605_s20 = int_to_ptr.hbm [resolvable:$true] %s228_s20 }
  0x54   : > { %s6292_s23 = sshra.s32 %s6605_s20, 4  ;;  %s6293_s23 = int_to_ptr.hbm [resolvable:$true] %s6292_s23 }
  0x55   : > { %s6299_s7 = scalar_lea.hbm %s6293_s23, %s6294_s10  ;;  %p6304_p10 = scmp.lt.s32.totalorder %s6293_s23, %s10146_s1 }
  0x56   : > { %p6300_p11 = scmp.ne.s32.totalorder %s6293_s23, %s6299_s7  ;;  %p6305_p1 = scmp.lt.s32.totalorder %s6303_s14, %s6299_s7 }
  0x58   : > { %p6301_p12 = pnand %p6300_p11, %p6593_p5  ;;  %p6306_p0 = por %p6305_p1, %p6304_p10 }
  0x5a   : > { %p6302_p7 = pneg %p6301_p12 }
  0x5c   : > { %p6307_p2 = pnand %p6306_p0, %p6302_p7 }
  0x5e   : > { %6310 = shalt.err (!%p6307_p2)
}
  0x5f   : > { %s6311_s5 = sshra.s32 %s231_s13, 4  ;;  %s6424_s24 = smov [#allocation5]   ;;  %s6312_s5 = int_to_ptr.vmem [resolvable:$true] %s6311_s5 }
  0x60   : > { %s6318_s22 = scalar_lea.vmem %s6312_s5, %s6294_s10  ;;  %s6322_s6 = scalar_lea.vmem %s6424_s24, 2560 }
  0x61   : > { %p6319_p3 = scmp.ne.s32.totalorder %s6312_s5, %s6318_s22  ;;  %p6324_p4 = scmp.lt.s32.totalorder %s6322_s6, %s6318_s22 }
  0x63   : > { %p6320_p8 = pnand %p6319_p3, %p6593_p5 }
  0x65   : > { %p6321_p9 = pneg %p6320_p8 }
  0x67   : > { %p6326_p11 = pnand %p6324_p4, %p6321_p9 }
  0x69   : > { %6329 = shalt.err (!%p6326_p11)
}
  0x6a   : > { %s6425_s23 = smov 2048   ;;  %s6426_s7 = smov 128  }
  0x6b   : > { %236 = dma.hbm_to_vmem [thread:$0]  (%p6593_p5), %s6605_s20, %s5265_s3, %s231_s13, %s6590_s30, %s6425_s23, %s6425_s23, %s6426_s7  }
  0x6c PF: > { %242 = sbr.rel (%p6523_p13) target bundleno = 1827 (0x723), region = 36 }
  0x71   : > { %s6633_s10 = sand.u32 1, %s6408_s16  }
  0x72   : > { %s6001_s11 = smul.u32 160, %s6633_s10  ;;  %s245_s14 = scalar_lea.sflag [#allocation3], %s6633_s10 }
  0x74   : > { %s6637_s25 = scalar_lea.vmem [#allocation2], %s6001_s11 }
  0x75   : > { %6387 = dma.done.wait (%p6508_p6), %s245_s14, 2560  }
  0x76   : > { %6389 = vsyncadd (%p6508_p6), %s245_s14, 4294964736  ;;  %s254_s29 = sand.u32 1, %s6484_s19   ;;  %s6002_s12 = smul.u32 1280, %s6633_s10 }
  0x77   : > { %s255_s30 = scalar_lea.sflag [#allocation6], %s254_s29 }
  0x78   : > { %s6645_s8 = scalar_lea.vmem [#allocation5], %s6002_s12 }
  0x79   : > { %6391 = dma.done.wait (%p6508_p6), %s255_s30, 20480  }
  0x7a   : > { %6393 = vsyncadd (%p6508_p6), %s255_s30, 4294946816  ;;  %p10242_p13 = scmp.eq.s32.totalorder %s6484_s19, 0 }
  0x7c   : > { %6395 = dma.done.wait (%p10242_p13), [#allocation6], 1024   ;;  %p10243_p5 = pmov %p10242_p13 }
  0x7d   : > { %v5847_v0 = vld [vmem:[%s10147_s2 + $0x38] sm:$0xff]  ;;  %v5846_v2 = vld [vmem:[%s10147_s2 + $0x30] sm:$0xff]  ;;  %v5845_v4 = vld [vmem:[%s10147_s2 + $0x28] sm:$0xff]  ;;  %vm3857_vm1 = vcmask 523264   ;;  %s6428_s13 = smov 2   ;;  %s6429_s3 = smov 1  }
  0x7e   : > { %6397 = vsyncadd (%p10243_p5), [#allocation6], 4294966272  ;;  %v6661_v1 = vld [vmem:[%s10147_s2 + $0x78] sm:$0xff]  ;;  %560 = vmatpush.bf16.msra.mxu0 %v5847_v0  ;;  %5979 = vmatpush.bf16.msra.mxu3 %v5847_v0  ;;  %v6670_v3 = vld [vmem:[%s10147_s2 + $0x70] sm:$0xff]  ;;  %s6430_s20 = smov 4   ;;  %s6433_s9 = smov 127  }
  0x7f   : > { %594 = vmatpush.bf16.msra.mxu1 %v6661_v1  ;;  %678 = vmatpush.bf16.msra.mxu2 %v5847_v0  ;;  %v6678_v5 = vld [vmem:[%s10147_s2 + $0x68] sm:$0xff]  ;;  %v6681_v6 = vld [vmem:[%s6637_s25] sm:$0xff]  ;;  %v6687_v8 = vld [vmem:[%s6637_s25 + $0x10] sm:$0xff]  ;;  %s6003_s26 = smul.u32 80, %s6633_s10  ;;  %s5121_s22 = scalar_lea.sflag [#allocation4], %s6633_s10 }
  0x80   : > { %v6684_v7 = vld [vmem:[%s6637_s25 + $0x8] sm:$0xff]  ;;  %v6690_v9 = vld [vmem:[%s6637_s25 + $0x18] sm:$0xff]  ;;  %v332_v10 = vld [vmem:[%s6645_s8] sm:$0xff]  ;;  %p10408_p6 = scmp.ne.s32.totalorder %s10236_s27, 0 }
  0x81   : > { %v333_v11 = vld [vmem:[%s6645_s8 + $0x8] sm:$0xff]  ;;  %v334_v12 = vld [vmem:[%s6645_s8 + $0x80] sm:$0xff]  ;;  %v6707_v17 = vld [vmem:[%s6637_s25 + $0x50] sm:$0xff]  ;;  %v352_v20 = vmul.f32 %v332_v10, %v6681_v6  ;;  %s10005_s5 = scalar_lea.vmem [#allocation8], %s6003_s26  ;;  %s5128_s24 = smul.u32 (%p10408_p6), 10, %s6484_s19 }
  0x82   : > { %561 = vmatpush.bf16.msra.mxu0 %v5846_v2  ;;  %5980 = vmatpush.bf16.msra.mxu3 %v5846_v2  ;;  %v5844_v13 = vld [vmem:[%s10147_s2 + $0x20] sm:$0xff]  ;;  %v335_v14 = vld [vmem:[%s6645_s8 + $0x88] sm:$0xff]  ;;  %v6710_v18 = vld [vmem:[%s6637_s25 + $0x58] sm:$0xff]  ;;  %v353_v25 = vmul.f32 %v333_v11, %v6684_v7  ;;  %v354_v26 = vmul.f32 %v334_v12, %v6687_v8 }
  0x83   : > { %595 = vmatpush.bf16.msra.mxu1 %v6670_v3  ;;  %679 = vmatpush.bf16.msra.mxu2 %v5846_v2  ;;  %v6701_v15 = vld [vmem:[%s6637_s25 + $0x40] sm:$0xff]  ;;  %v6704_v16 = vld [vmem:[%s6637_s25 + $0x48] sm:$0xff]  ;;  %v355_v27 = vmul.f32 %v335_v14, %v6690_v9  ;;  %v5843_v32 = vld [vmem:[%s10147_s2 + $0x18] sm:$0xff]  ;;  %s5129_s6 = ssub.s32 (%p10408_p6), 38, %s5128_s24 }
  0x84   : > { %v340_v19 = vld [vmem:[%s6645_s8 + $0x200] sm:$0xff]  ;;  %v341_v21 = vld [vmem:[%s6645_s8 + $0x208] sm:$0xff]  ;;  %v6741_v33 = vld [vmem:[%s10147_s2 + $0x58] sm:$0xff]  ;;  %v6743_v34 = vpack.c.bf16 %v353_v25, %v352_v20  ;;  %p5130_p12 = scmp.lt.s32.totalorder (%p10408_p6), %s5129_s6, 10 }
  0x85   : > { %v342_v22 = vld [vmem:[%s6645_s8 + $0x280] sm:$0xff]  ;;  %v343_v23 = vld [vmem:[%s6645_s8 + $0x288] sm:$0xff]  ;;  %v360_v28 = vmul.f32 %v340_v19, %v6701_v15  ;;  %v6728_v29 = vmul.f32 %v341_v21, %v6704_v16  ;;  %v6745_v35 = vpack.c.bf16 %v355_v27, %v354_v26  ;;  %v5842_v38 = vld [vmem:[%s10147_s2 + $0x10] sm:$0xff] }
  0x86   : > { %562 = vmatpush.bf16.msra.mxu0 %v5845_v4  ;;  %5981 = vmatpush.bf16.msra.mxu3 %v5845_v4  ;;  %v6721_v24 = vld [vmem:[%s10147_s2 + $0x60] sm:$0xff]  ;;  %v362_v30 = vmul.f32 %v342_v22, %v6707_v17  ;;  %v6732_v31 = vmul.f32 %v343_v23, %v6710_v18  ;;  %v6760_v39 = vld [vmem:[%s10147_s2 + $0x50] sm:$0xff]  ;;  %v382_v40 = vunpack.c.l.bf16 %v6743_v34  ;;  %v5841_v44 = vld [vmem:[%s10147_s2 + $0x8] sm:$0xff]  ;;  %v383_v46 = vunpack.c.h.bf16 %v6743_v34 }
  0x87   : > { %596 = vmatpush.bf16.msra.mxu1 %v6678_v5  ;;  %680 = vmatpush.bf16.msra.mxu2 %v5845_v4  ;;  %v6748_v36 = vpack.c.bf16 %v6728_v29, %v360_v28  ;;  %v384_v41 = vunpack.c.l.bf16 %v6745_v35  ;;  %v6772_v45 = vld [vmem:[%s10147_s2 + $0x48] sm:$0xff]  ;;  %v385_v47 = vunpack.c.h.bf16 %v6745_v35  ;;  %v6777_v48 = vld [vmem:[%s6637_s25 + $0x20] sm:$0xff]  ;;  %v6784_v52 = vld [vmem:[%s6637_s25 + $0x30] sm:$0xff]  ;;  %v638_v11 = vunpack.c.l.b16 %v6743_v34 }
  0x88   : > { %v6751_v37 = vpack.c.bf16 %v6732_v31, %v362_v30  ;;  %v402_v49 = vsub.f32 %v352_v20, %v382_v40  ;;  %v6781_v51 = vld [vmem:[%s6637_s25 + $0x28] sm:$0xff]  ;;  %v6787_v53 = vld [vmem:[%s6637_s25 + $0x38] sm:$0xff]  ;;  %v336_v54 = vld [vmem:[%s6645_s8 + $0x100] sm:$0xff]  ;;  %v403_v4 = vsub.f32 %v353_v25, %v383_v46  ;;  %v640_v12 = vunpack.c.l.b16 %v6745_v35 }
  0x89   : > { %v390_v42 = vunpack.c.l.bf16 %v6748_v36  ;;  %v404_v50 = vsub.f32 %v354_v26, %v384_v41  ;;  %v337_v55 = vld [vmem:[%s6645_s8 + $0x108] sm:$0xff]  ;;  %v338_v56 = vld [vmem:[%s6645_s8 + $0x180] sm:$0xff]  ;;  %v6803_v63 = vld [vmem:[%s6637_s25 + $0x70] sm:$0xff]  ;;  %v405_v10 = vsub.f32 %v355_v27, %v385_v47  ;;  %v356_v22 = vmul.f32 %v336_v54, %v6777_v48 }
  0x8a   : > { %563 = vmatpush.bf16.msra.mxu0 %v5844_v13  ;;  %5982 = vmatpush.bf16.msra.mxu3 %v5844_v13  ;;  %v392_v43 = vunpack.c.l.bf16 %v6751_v37  ;;  %v5840_v57 = vld [vmem:[%s10147_s2] sm:$0xff]  ;;  %v339_v58 = vld [vmem:[%s6645_s8 + $0x188] sm:$0xff]  ;;  %v6806_v0 = vld [vmem:[%s6637_s25 + $0x78] sm:$0xff]  ;;  %v357_v25 = vmul.f32 %v337_v55, %v6781_v51  ;;  %v358_v26 = vmul.f32 %v338_v56, %v6784_v52 }
  0x8b   : > { %597 = vmatpush.bf16.msra.mxu1 %v6721_v24  ;;  %681 = vmatpush.bf16.msra.mxu2 %v5844_v13  ;;  %v6797_v59 = vld [vmem:[%s6637_s25 + $0x60] sm:$0xff]  ;;  %v6800_v60 = vld [vmem:[%s6637_s25 + $0x68] sm:$0xff]  ;;  %v410_v61 = vsub.f32 %v360_v28, %v390_v42  ;;  %v422_v21 = vpack.c.bf16 %v404_v50, %v402_v49  ;;  %v5863_v23 = vld [vmem:[%s10147_s2 + $0xb8] sm:$0xff]  ;;  %v359_v27 = vmul.f32 %v339_v58, %v6787_v53 }
  0x8c   : > { %v412_v62 = vsub.f32 %v362_v30, %v392_v43  ;;  %v344_v2 = vld [vmem:[%s6645_s8 + $0x300] sm:$0xff]  ;;  %v345_v13 = vld [vmem:[%s6645_s8 + $0x308] sm:$0xff]  ;;  %v423_v41 = vpack.c.bf16 %v405_v10, %v403_v4  ;;  %v658_v42 = vpack.c.b16 %v640_v12, %v638_v11  ;;  %v5862_v43 = vld [vmem:[%s10147_s2 + $0xb0] sm:$0xff] }
  0x8d   : > { %v346_v14 = vld [vmem:[%s6645_s8 + $0x380] sm:$0xff]  ;;  %v347_v19 = vld [vmem:[%s6645_s8 + $0x388] sm:$0xff]  ;;  %v364_v28 = vmul.f32 %v344_v2, %v6797_v59  ;;  %v6842_v46 = vpack.c.bf16 %v359_v27, %v358_v26  ;;  %v6871_v12 = vld [vmem:[%s6637_s25 + $0x90] sm:$0xff] }
  0x8e   : > { %564 = vmatpush.bf16.msra.mxu0 %v5843_v32  ;;  %5983 = vmatpush.bf16.msra.mxu3 %v5843_v32  ;;  %v6818_v20 = vld [vmem:[%s10147_s2 + $0x40] sm:$0xff]  ;;  %v426_v30 = vpack.c.bf16 %v412_v62, %v410_v61  ;;  %v6833_v40 = vmul.f32 %v347_v19, %v6806_v0  ;;  %v6868_v62 = vld [vmem:[%s6637_s25 + $0x88] sm:$0xff] }
  0x8f   : > { %598 = vmatpush.bf16.msra.mxu1 %v6741_v33  ;;  %682 = vmatpush.bf16.msra.mxu2 %v5843_v32  ;;  %v6829_v32 = vmul.f32 %v345_v13, %v6800_v60  ;;  %v388_v54 = vunpack.c.l.bf16 %v6842_v46  ;;  %v389_v58 = vunpack.c.h.bf16 %v6842_v46  ;;  %v6865_v61 = vld [vmem:[%s6637_s25 + $0x80] sm:$0xff] }
  0x90   : > { %v348_v13 = vld [vmem:[%s6645_s8 + $0x400] sm:$0xff] }
  0x91   : > { %v6845_v47 = vpack.c.bf16 %v6829_v32, %v364_v28  ;;  %v408_v4 = vsub.f32 %v358_v26, %v388_v54  ;;  %v5859_v26 = vld [vmem:[%s10147_s2 + $0x98] sm:$0xff] }
  0x92   : > { %565 = vmatpush.bf16.msra.mxu0 %v5842_v38  ;;  %5984 = vmatpush.bf16.msra.mxu3 %v5842_v38 }
  0x93   : > { %599 = vmatpush.bf16.msra.mxu1 %v6760_v39  ;;  %683 = vmatpush.bf16.msra.mxu2 %v5842_v38  ;;  %v366_v38 = vmul.f32 %v346_v14, %v6803_v63  ;;  %v394_v55 = vunpack.c.l.bf16 %v6845_v47  ;;  %v349_v14 = vld [vmem:[%s6645_s8 + $0x408] sm:$0xff] }
  0x95   : > { %v6848_v49 = vpack.c.bf16 %v6833_v40, %v366_v38  ;;  %v414_v10 = vsub.f32 %v364_v28, %v394_v55 }
  0x96   : > { %566 = vmatpush.bf16.msra.mxu0 %v5841_v44  ;;  %5985 = vmatpush.bf16.msra.mxu3 %v5841_v44 }
  0x97   : > { %600 = vmatpush.bf16.msra.mxu1 %v6772_v45  ;;  %684 = vmatpush.bf16.msra.mxu2 %v5841_v44  ;;  %v6840_v44 = vpack.c.bf16 %v357_v25, %v356_v22  ;;  %v396_v56 = vunpack.c.l.bf16 %v6848_v49 }
  0x99   : > { %v386_v50 = vunpack.c.l.bf16 %v6840_v44  ;;  %v416_v11 = vsub.f32 %v366_v38, %v396_v56  ;;  %v748_v56 = vld [vmem:[%s6645_s8 + $0x90] sm:$0xff] }
  0x9a   : > { %567 = vmatpush.bf16.msra.mxu0 %v5840_v57  ;;  %5986 = vmatpush.bf16.msra.mxu3 %v5840_v57 }
  0x9b   : > { %601 = vmatpush.bf16.msra.mxu1 %v6818_v20  ;;  %685 = vmatpush.bf16.msra.mxu2 %v5840_v57  ;;  %v387_v57 = vunpack.c.h.bf16 %v6840_v44  ;;  %v406_v2 = vsub.f32 %v356_v22, %v386_v50  ;;  %v351_v22 = vld [vmem:[%s6645_s8 + $0x488] sm:$0xff]  ;;  %v428_v38 = vpack.c.bf16 %v416_v11, %v414_v10  ;;  %v747_v50 = vld [vmem:[%s6645_s8 + $0x18] sm:$0xff]  ;;  %v6915_v10 = vmul.f32 %v748_v56, %v6687_v8 }
  0x9d   : > { %568 = vmatmul.bf16.vlgmr.msra.gmra.mxu0 %v422_v21  ;;  %578 = vmatmul.bf16.vlgmr.msra.gmra.mxu3 %v426_v30  ;;  %v407_v19 = vsub.f32 %v357_v25, %v387_v57  ;;  %v642_v21 = vunpack.c.l.b16 %v6840_v44  ;;  %v6878_v30 = vld [vmem:[%s6637_s25 + $0x98] sm:$0xff]  ;;  %v368_v25 = vmul.f32 %v348_v13, %v6865_v61  ;;  %v424_v28 = vpack.c.bf16 %v408_v4, %v406_v2  ;;  %v5870_v13 = vld [vmem:[%s10147_s2 + $0xf0] sm:$0xff] }
  0x9e   : > { %712 = vmatpush.bf16.msrb.mxu3 %v6661_v1  ;;  %1024 = vmatpush.bf16.msrb.mxu0 %v5863_v23  ;;  %v5861_v1 = vld [vmem:[%s10147_s2 + $0xa8] sm:$0xff]  ;;  %v749_v57 = vld [vmem:[%s6645_s8 + $0x98] sm:$0xff]  ;;  %v6909_v4 = vmul.f32 %v747_v50, %v6684_v7 }
  0x9f   : > { %602 = vmatmul.bf16.vlgmr.msra.gmra.mxu1 %v423_v41  ;;  %686 = vmatmul.bf16.vlgmr.msra.gmra.mxu2 %v658_v42  ;;  %v350_v41 = vld [vmem:[%s6645_s8 + $0x480] sm:$0xff]  ;;  %v6918_v11 = vmul.f32 %v749_v57, %v6690_v9  ;;  %v646_v57 = vunpack.c.l.b16 %v6748_v36 }
  0xa0   : > { %1102 = vmatpush.bf16.msrb.mxu2 %v5863_v23  ;;  %v644_v23 = vunpack.c.l.b16 %v6842_v46  ;;  %v370_v42 = vmul.f32 %v350_v41, %v6871_v12  ;;  %v391_v41 = vunpack.c.h.bf16 %v6748_v36 }
  0xa1   : > { %10244 = vst [vmem:[#allocation14_spill] sm:$0xff] %v6918_v11 }
  0xa2   : > { %1025 = vmatpush.bf16.msrb.mxu0 %v5862_v43  ;;  %713 = vmatpush.bf16.msrb.mxu3 %v6670_v3  ;;  %v5860_v3 = vld [vmem:[%s10147_s2 + $0xa0] sm:$0xff]  ;;  %v660_v55 = vpack.c.b16 %v644_v23, %v642_v21  ;;  %v6938_v23 = vpack.c.bf16 %v6918_v11, %v6915_v10 }
  0xa4   : > { %1103 = vmatpush.bf16.msrb.mxu2 %v5862_v43  ;;  %v6892_v43 = vmul.f32 %v351_v22, %v6878_v30  ;;  %v393_v22 = vunpack.c.h.bf16 %v6751_v37  ;;  %v890_v50 = vunpack.c.l.b16 %v6938_v23 }
  0xa6   : > { %1026 = vmatpush.bf16.msrb.mxu0 %v5861_v1  ;;  %714 = vmatpush.bf16.msrb.mxu3 %v6678_v5  ;;  %v409_v5 = vsub.f32 %v359_v27, %v389_v58  ;;  %v6888_v27 = vmul.f32 %v349_v14, %v6868_v62  ;;  %v5857_v14 = vld [vmem:[%s10147_s2 + $0x88] sm:$0xff]  ;;  %v413_v56 = vsub.f32 %v6732_v31, %v393_v22  ;;  %v753_v22 = vld [vmem:[%s6645_s8 + $0x198] sm:$0xff] }
  0xa8   : > { %1104 = vmatpush.bf16.msrb.mxu2 %v5861_v1  ;;  %v746_v1 = vld [vmem:[%s6645_s8 + $0x10] sm:$0xff]  ;;  %v425_v54 = vpack.c.bf16 %v409_v5, %v407_v19  ;;  %v6903_v58 = vpack.c.bf16 %v6888_v27, %v368_v25 }
  0xa9   : > { %v6906_v2 = vmul.f32 %v746_v1, %v6681_v6 }
  0xaa   : > { %1027 = vmatpush.bf16.msrb.mxu0 %v5860_v3  ;;  %715 = vmatpush.bf16.msrb.mxu3 %v6721_v24  ;;  %v5858_v24 = vld [vmem:[%s10147_s2 + $0x90] sm:$0xff]  ;;  %v398_v19 = vunpack.c.l.bf16 %v6903_v58 }
  0xab   : > { %v6934_v21 = vpack.c.bf16 %v6909_v4, %v6906_v2 }
  0xac   : > { %1105 = vmatpush.bf16.msrb.mxu2 %v5860_v3  ;;  %v6912_v3 = vpack.c.bf16 %v6892_v43, %v370_v42 }
  0xad   : > { %573 = vmatmul.bf16.gmra.mxu0 %v424_v28  ;;  %583 = vmatmul.bf16.gmra.mxu3 %v428_v38  ;;  %v418_v28 = vsub.f32 %v368_v25, %v398_v19  ;;  %v888_v1 = vunpack.c.l.b16 %v6934_v21  ;;  %v5868_v25 = vld [vmem:[%s10147_s2 + $0xe0] sm:$0xff] }
  0xae   : > { %1028 = vmatpush.bf16.msrb.mxu0 %v5859_v26  ;;  %716 = vmatpush.bf16.msrb.mxu3 %v6741_v33  ;;  %v5871_v33 = vld [vmem:[%s10147_s2 + $0xf8] sm:$0xff]  ;;  %v400_v5 = vunpack.c.l.bf16 %v6912_v3 }
  0xaf   : > { %607 = vmatmul.bf16.gmra.mxu1 %v425_v54  ;;  %691 = vmatmul.bf16.gmra.mxu2 %v660_v55  ;;  %v5879_v54 = vld [vmem:[%s10147_s2 + $0x138] sm:$0xff]  ;;  %v411_v55 = vsub.f32 %v6728_v29, %v391_v41  ;;  %v908_v29 = vpack.c.b16 %v890_v50, %v888_v1  ;;  %v752_v41 = vld [vmem:[%s6645_s8 + $0x190] sm:$0xff]  ;;  %v649_v1 = vunpack.c.h.b16 %v6751_v37 }
  0xb0   : > { %1058 = vmatpush.bf16.msrb.mxu1 %v5871_v33  ;;  %1106 = vmatpush.bf16.msrb.mxu2 %v5859_v26  ;;  %v5856_v26 = vld [vmem:[%s10147_s2 + $0x80] sm:$0xff]  ;;  %v420_v38 = vsub.f32 %v370_v42, %v400_v5  ;;  %v751_v5 = vld [vmem:[%s6645_s8 + $0x118] sm:$0xff]  ;;  %v5866_v50 = vld [vmem:[%s10147_s2 + $0xd0] sm:$0xff] }
  0xb1   : > { %v427_v31 = vpack.c.bf16 %v413_v56, %v411_v55 }
  0xb2   : > { %1029 = vmatpush.bf16.msrb.mxu0 %v5858_v24  ;;  %717 = vmatpush.bf16.msrb.mxu3 %v6760_v39  ;;  %v5869_v39 = vld [vmem:[%s10147_s2 + $0xe8] sm:$0xff]  ;;  %v430_v42 = vpack.c.bf16 %v420_v38, %v418_v28  ;;  %v5867_v28 = vld [vmem:[%s10147_s2 + $0xd8] sm:$0xff]  ;;  %v647_v38 = vunpack.c.h.b16 %v6748_v36 }
  0xb4   : > { %1059 = vmatpush.bf16.msrb.mxu1 %v5870_v13  ;;  %1107 = vmatpush.bf16.msrb.mxu2 %v5858_v24  ;;  %v750_v24 = vld [vmem:[%s6645_s8 + $0x110] sm:$0xff]  ;;  %v6992_v55 = vpack.c.b16 %v649_v1, %v647_v38  ;;  %v755_v1 = vld [vmem:[%s6645_s8 + $0x218] sm:$0xff] }
  0xb5   : > { %v6967_v11 = vmul.f32 %v750_v24, %v6777_v48 }
  0xb6   : > { %1030 = vmatpush.bf16.msrb.mxu0 %v5857_v14  ;;  %718 = vmatpush.bf16.msrb.mxu3 %v6772_v45  ;;  %v648_v45 = vunpack.c.l.b16 %v6751_v37  ;;  %v395_v37 = vunpack.c.h.bf16 %v6845_v47 }
  0xb8   : > { %1060 = vmatpush.bf16.msrb.mxu1 %v5869_v39  ;;  %1108 = vmatpush.bf16.msrb.mxu2 %v5857_v14  ;;  %v662_v19 = vpack.c.b16 %v648_v45, %v646_v57  ;;  %v6973_v14 = vmul.f32 %v752_v41, %v6784_v52  ;;  %v5865_v57 = vld [vmem:[%s10147_s2 + $0xc8] sm:$0xff]  ;;  %v639_v45 = vunpack.c.h.b16 %v6743_v34  ;;  %v5864_v34 = vld [vmem:[%s10147_s2 + $0xc0] sm:$0xff] }
  0xba   : > { %1031 = vmatpush.bf16.msrb.mxu0 %v5856_v26  ;;  %719 = vmatpush.bf16.msrb.mxu3 %v6818_v20  ;;  %v6970_v20 = vmul.f32 %v751_v5, %v6781_v51  ;;  %v652_v5 = vunpack.c.l.b16 %v6848_v49 }
  0xbc   : > { %1061 = vmatpush.bf16.msrb.mxu1 %v5868_v25  ;;  %1109 = vmatpush.bf16.msrb.mxu2 %v5856_v26  ;;  %v5878_v26 = vld [vmem:[%s10147_s2 + $0x130] sm:$0xff]  ;;  %v6996_v56 = vpack.c.bf16 %v6970_v20, %v6967_v11 }
  0xbd   : > { %588 = vmatmul.bf16.gmra.mxu3 %v430_v42  ;;  %1032 = vmatmul.bf16.vlgmr.msrb.gmra.mxu0 %v908_v29  ;;  %v641_v42 = vunpack.c.h.b16 %v6745_v35 }
  0xbe   : > { %1136 = vmatpush.bf16.msra.mxu3 %v5871_v33  ;;  %1458 = vmatpush.bf16.msra.mxu0 %v5879_v54  ;;  %v6976_v33 = vmul.f32 %v753_v22, %v6787_v53  ;;  %v892_v29 = vunpack.c.l.b16 %v6996_v56  ;;  %v754_v22 = vld [vmem:[%s6645_s8 + $0x210] sm:$0xff] }
  0xbf   : > { %612 = vmatmul.bf16.gmra.mxu1 %v427_v31  ;;  %696 = vmatmul.bf16.gmra.mxu2 %v662_v19  ;;  %v650_v19 = vunpack.c.l.b16 %v6845_v47  ;;  %v659_v35 = vpack.c.b16 %v641_v42, %v639_v45  ;;  %v651_v45 = vunpack.c.h.b16 %v6845_v47  ;;  %v653_v42 = vunpack.c.h.b16 %v6848_v49 }
  0xc0   : > { %1536 = vmatpush.bf16.msra.mxu2 %v5879_v54  ;;  %1062 = vmatpush.bf16.msrb.mxu1 %v5867_v28  ;;  %v5877_v54 = vld [vmem:[%s10147_s2 + $0x128] sm:$0xff]  ;;  %v7000_v36 = vpack.c.bf16 %v6976_v33, %v6973_v14  ;;  %v401_v47 = vunpack.c.h.bf16 %v6912_v3 }
  0xc1   : > { %v664_v38 = vpack.c.b16 %v652_v5, %v650_v19 }
  0xc2   : > { %1137 = vmatpush.bf16.msra.mxu3 %v5870_v13  ;;  %1459 = vmatpush.bf16.msra.mxu0 %v5878_v26  ;;  %v397_v13 = vunpack.c.h.bf16 %v6848_v49  ;;  %v894_v24 = vunpack.c.l.b16 %v7000_v36  ;;  %v643_v49 = vunpack.c.h.b16 %v6840_v44 }
  0xc4   : > { %1537 = vmatpush.bf16.msra.mxu2 %v5878_v26  ;;  %1063 = vmatpush.bf16.msrb.mxu1 %v5866_v50  ;;  %v417_v31 = vsub.f32 %v6833_v40, %v397_v13  ;;  %v910_v41 = vpack.c.b16 %v894_v24, %v892_v29  ;;  %v7023_v40 = vmul.f32 %v754_v22, %v6701_v15  ;;  %v654_v22 = vunpack.c.l.b16 %v6903_v58 }
  0xc5   : > { %v7039_v29 = vpack.c.b16 %v653_v42, %v651_v45  ;;  %v5875_v42 = vld [vmem:[%s10147_s2 + $0x118] sm:$0xff] }
  0xc6   : > { %1138 = vmatpush.bf16.msra.mxu3 %v5869_v39  ;;  %1460 = vmatpush.bf16.msra.mxu0 %v5877_v54  ;;  %v415_v39 = vsub.f32 %v6829_v32, %v395_v37  ;;  %v757_v32 = vld [vmem:[%s6645_s8 + $0x298] sm:$0xff]  ;;  %v7026_v37 = vmul.f32 %v755_v1, %v6704_v16  ;;  %v758_v1 = vld [vmem:[%s6645_s8 + $0x310] sm:$0xff] }
  0xc7   : > { %v7032_v13 = vmul.f32 %v757_v32, %v6710_v18  ;;  %v759_v32 = vld [vmem:[%s6645_s8 + $0x318] sm:$0xff]  ;;  %v7064_v45 = vmul.f32 %v758_v1, %v6797_v59 }
  0xc8   : > { %1538 = vmatpush.bf16.msra.mxu2 %v5877_v54  ;;  %1064 = vmatpush.bf16.msrb.mxu1 %v5865_v57  ;;  %v429_v26 = vpack.c.bf16 %v417_v31, %v415_v39  ;;  %v756_v54 = vld [vmem:[%s6645_s8 + $0x290] sm:$0xff]  ;;  %v7043_v24 = vpack.c.bf16 %v7026_v37, %v7023_v40  ;;  %v399_v31 = vunpack.c.h.bf16 %v6903_v58  ;;  %v763_v1 = vld [vmem:[%s6645_s8 + $0x418] sm:$0xff] }
  0xca   : > { %1139 = vmatpush.bf16.msra.mxu3 %v5868_v25  ;;  %v7029_v25 = vmul.f32 %v756_v54, %v6707_v17  ;;  %v896_v19 = vunpack.c.l.b16 %v7043_v24 }
  0xcc   : > { %1065 = vmatpush.bf16.msrb.mxu1 %v5864_v34  ;;  %v7047_v39 = vpack.c.bf16 %v7032_v13, %v7029_v25 }
  0xcd   : > { %720 = vmatmul.bf16.vlgmr.msrb.gmra.mxu3 %v659_v35  ;;  %1037 = vmatmul.bf16.gmra.mxu0 %v910_v41  ;;  %v419_v35 = vsub.f32 %v6888_v27, %v399_v31  ;;  %v421_v41 = vsub.f32 %v6892_v43, %v401_v47  ;;  %v7067_v27 = vmul.f32 %v759_v32, %v6800_v60  ;;  %v5874_v31 = vld [vmem:[%s10147_s2 + $0x110] sm:$0xff] }
  0xce   : > { %1140 = vmatpush.bf16.msra.mxu3 %v5867_v28  ;;  %v5876_v28 = vld [vmem:[%s10147_s2 + $0x120] sm:$0xff]  ;;  %v898_v5 = vunpack.c.l.b16 %v7047_v39 }
  0xcf   : > { %617 = vmatmul.bf16.gmra.mxu1 %v429_v26  ;;  %701 = vmatmul.bf16.gmra.mxu2 %v664_v38  ;;  %v656_v26 = vunpack.c.l.b16 %v6912_v3  ;;  %v431_v44 = vpack.c.bf16 %v421_v41, %v419_v35  ;;  %v7083_v47 = vpack.c.bf16 %v7067_v27, %v7064_v45  ;;  %v889_v35 = vunpack.c.h.b16 %v6934_v21 }
  0xd0   : > { %1461 = vmatpush.bf16.msra.mxu0 %v5876_v28  ;;  %1539 = vmatpush.bf16.msra.mxu2 %v5876_v28  ;;  %v912_v38 = vpack.c.b16 %v898_v5, %v896_v19  ;;  %v761_v28 = vld [vmem:[%s6645_s8 + $0x398] sm:$0xff]  ;;  %v891_v41 = vunpack.c.h.b16 %v6938_v23 }
  0xd1   : > { %v666_v54 = vpack.c.b16 %v656_v26, %v654_v22  ;;  %v900_v19 = vunpack.c.l.b16 %v7083_v47  ;;  %v5872_v22 = vld [vmem:[%s10147_s2 + $0x100] sm:$0xff] }
  0xd2   : > { %1141 = vmatpush.bf16.msra.mxu3 %v5866_v50  ;;  %v645_v50 = vunpack.c.h.b16 %v6842_v46  ;;  %v760_v46 = vld [vmem:[%s6645_s8 + $0x390] sm:$0xff] }
  0xd3   : > { %v7070_v43 = vmul.f32 %v760_v46, %v6803_v63  ;;  %v7108_v46 = vmul.f32 %v763_v1, %v6868_v62 }
  0xd4   : > { %1462 = vmatpush.bf16.msra.mxu0 %v5875_v42  ;;  %1540 = vmatpush.bf16.msra.mxu2 %v5875_v42 }
  0xd6   : > { %1142 = vmatpush.bf16.msra.mxu3 %v5865_v57  ;;  %v661_v57 = vpack.c.b16 %v645_v50, %v643_v49  ;;  %v5873_v50 = vld [vmem:[%s10147_s2 + $0x108] sm:$0xff] }
  0xd8   : > { %1463 = vmatpush.bf16.msra.mxu0 %v5874_v31  ;;  %1541 = vmatpush.bf16.msra.mxu2 %v5874_v31  ;;  %v796_v31 = vunpack.c.l.bf16 %v6934_v21 }
  0xda   : > { %1143 = vmatpush.bf16.msra.mxu3 %v5864_v34  ;;  %v7073_v34 = vmul.f32 %v761_v28, %v6806_v0 }
  0xdc   : > { %v7087_v49 = vpack.c.bf16 %v7073_v34, %v7070_v43  ;;  %1464 = vmatpush.bf16.msra.mxu0 %v5873_v50  ;;  %1542 = vmatpush.bf16.msra.mxu2 %v5873_v50  ;;  %v798_v50 = vunpack.c.l.bf16 %v6938_v23 }
  0xdd   : > { %725 = vmatmul.bf16.gmra.mxu3 %v661_v57  ;;  %1042 = vmatmul.bf16.gmra.mxu0 %v912_v38  ;;  %v762_v57 = vld [vmem:[%s6645_s8 + $0x410] sm:$0xff]  ;;  %v909_v38 = vpack.c.b16 %v891_v41, %v889_v35 }
  0xde   : > { %v902_v5 = vunpack.c.l.b16 %v7087_v49  ;;  %v7104_v32 = vmul.f32 %v762_v57, %v6865_v61  ;;  %v893_v57 = vunpack.c.h.b16 %v6996_v56 }
  0xdf   : > { %622 = vmatmul.bf16.gmra.mxu1 %v431_v44  ;;  %706 = vmatmul.bf16.gmra.mxu2 %v666_v54  ;;  %v764_v44 = vld [vmem:[%s6645_s8 + $0x490] sm:$0xff]  ;;  %v765_v54 = vld [vmem:[%s6645_s8 + $0x498] sm:$0xff] }
  0xe0   : > { %v914_v26 = vpack.c.b16 %v902_v5, %v900_v19  ;;  %1465 = vmatpush.bf16.msra.mxu0 %v5872_v22  ;;  %1543 = vmatpush.bf16.msra.mxu2 %v5872_v22  ;;  %v7111_v28 = vmul.f32 %v764_v44, %v6871_v12  ;;  %v7114_v42 = vmul.f32 %v765_v54, %v6878_v30  ;;  %v1181_v44 = vld [vmem:[%s6645_s8 + $0x28] sm:$0xff]  ;;  %v1182_v54 = vld [vmem:[%s6645_s8 + $0xa0] sm:$0xff] }
  0xe1   : > { %v818_v19 = vsub.f32 %v6915_v10, %v798_v50  ;;  %v7122_v5 = vpack.c.bf16 %v7108_v46, %v7104_v32  ;;  %v1180_v10 = vld [vmem:[%s6645_s8 + $0x20] sm:$0xff] }
  0xe2   : > { %v7126_v35 = vpack.c.bf16 %v7114_v42, %v7111_v28  ;;  %v7137_v50 = vmul.f32 %v1180_v10, %v6681_v6  ;;  %v800_v6 = vunpack.c.l.bf16 %v6996_v56  ;;  %v5895_v10 = vld [vmem:[%s10147_s2 + $0x1b8] sm:$0xff] }
  0xe3   : > { %v904_v22 = vunpack.c.l.b16 %v7122_v5 }
  0xe4   : > { %1892 = vmatpush.bf16.msrb.mxu0 %v5895_v10 }
  0xed   : > { %730 = vmatmul.bf16.gmra.mxu3 %v6992_v55  ;;  %1047 = vmatmul.bf16.gmra.mxu0 %v914_v26  ;;  %v816_v55 = vsub.f32 %v6906_v2, %v796_v31  ;;  %v906_v26 = vunpack.c.l.b16 %v7126_v35  ;;  %v895_v2 = vunpack.c.h.b16 %v7000_v36  ;;  %v1183_v31 = vld [vmem:[%s6645_s8 + $0xa8] sm:$0xff] }
  0xef   : > { %1066 = vmatmul.bf16.vlgmr.msrb.gmra.mxu1 %v909_v38  ;;  %v836_v41 = vpack.c.bf16 %v818_v19, %v816_v55  ;;  %v916_v38 = vpack.c.b16 %v906_v26, %v904_v22  ;;  %v911_v1 = vpack.c.b16 %v895_v2, %v893_v57  ;;  %v7141_v55 = vmul.f32 %v1181_v44, %v6684_v7  ;;  %v5887_v22 = vld [vmem:[%s10147_s2 + $0x178] sm:$0xff] }
  0xf0   : > { %v7144_v19 = vmul.f32 %v1182_v54, %v6687_v8  ;;  %1570 = vmatpush.bf16.msrb.mxu3 %v5887_v22  ;;  %1492 = vmatpush.bf16.msra.mxu1 %v5887_v22  ;;  %v820_v26 = vsub.f32 %v6967_v11, %v800_v6  ;;  %v657_v44 = vunpack.c.h.b16 %v6912_v3  ;;  %v897_v54 = vunpack.c.h.b16 %v7043_v24  ;;  %v1184_v6 = vld [vmem:[%s6645_s8 + $0x120] sm:$0xff] }
  0xf1   : > { %1110 = vmatmul.bf16.vlgmr.msrb.gmra.mxu2 %v836_v41  ;;  %v7147_v41 = vmul.f32 %v1183_v31, %v6690_v9  ;;  %v7156_v7 = vpack.c.bf16 %v7141_v55, %v7137_v50  ;;  %v5886_v9 = vld [vmem:[%s10147_s2 + $0x170] sm:$0xff]  ;;  %v899_v31 = vunpack.c.h.b16 %v7047_v39  ;;  %v5884_v3 = vld [vmem:[%s10147_s2 + $0x160] sm:$0xff] }
  0xf2   : > { %1970 = vmatpush.bf16.msrb.mxu2 %v5895_v10 }
  0xf3   : > { %10245 = vst [vmem:[#allocation15_spill] sm:$0xff] %v7147_v41  ;;  %v7160_v8 = vpack.c.bf16 %v7147_v41, %v7144_v19  ;;  %v1322_v11 = vunpack.c.l.b16 %v7156_v7  ;;  %v7187_v41 = vmul.f32 %v1184_v6, %v6777_v48  ;;  %v804_v48 = vunpack.c.l.bf16 %v7043_v24  ;;  %v10246_v6 = vld [vmem:[#allocation14_spill] sm:$0xff] }
  0xf4   : > { %1493 = vmatpush.bf16.msra.mxu1 %v5886_v9  ;;  %1571 = vmatpush.bf16.msrb.mxu3 %v5886_v9  ;;  %v1185_v9 = vld [vmem:[%s6645_s8 + $0x128] sm:$0xff] }
  0xfd   : > { %735 = vmatmul.bf16.gmra.mxu3 %v7039_v29  ;;  %1052 = vmatmul.bf16.gmra.mxu0 %v916_v38  ;;  %v802_v29 = vunpack.c.l.bf16 %v7000_v36  ;;  %v5885_v38 = vld [vmem:[%s10147_s2 + $0x168] sm:$0xff] }
  0xfe   : > { %1494 = vmatpush.bf16.msra.mxu1 %v5885_v38  ;;  %1572 = vmatpush.bf16.msrb.mxu3 %v5885_v38 }
  0xff   : > { %1071 = vmatmul.bf16.gmra.mxu1 %v911_v1  ;;  %v822_v57 = vsub.f32 %v6973_v14, %v802_v29  ;;  %v655_v1 = vunpack.c.h.b16 %v6903_v58  ;;  %v1324_v14 = vunpack.c.l.b16 %v7160_v8  ;;  %v913_v29 = vpack.c.b16 %v899_v31, %v897_v54  ;;  %v5894_v54 = vld [vmem:[%s10147_s2 + $0x1b0] sm:$0xff] }
 0x100   : > { %1893 = vmatpush.bf16.msrb.mxu0 %v5894_v54  ;;  %1971 = vmatpush.bf16.msrb.mxu2 %v5894_v54 }
 0x101   : > { %v838_v2 = vpack.c.bf16 %v822_v57, %v820_v26  ;;  %v667_v22 = vpack.c.b16 %v657_v44, %v655_v1  ;;  %v1342_v58 = vpack.c.b16 %v1324_v14, %v1322_v11  ;;  %v1186_v26 = vld [vmem:[%s6645_s8 + $0x1a0] sm:$0xff]  ;;  %v1187_v57 = vld [vmem:[%s6645_s8 + $0x1a8] sm:$0xff]  ;;  %v5883_v1 = vld [vmem:[%s10147_s2 + $0x158] sm:$0xff]  ;;  %v806_v44 = vunpack.c.l.bf16 %v7047_v39 }
 0x102   : > { %1495 = vmatpush.bf16.msra.mxu1 %v5884_v3  ;;  %1573 = vmatpush.bf16.msrb.mxu3 %v5884_v3  ;;  %v7193_v38 = vmul.f32 %v1186_v26, %v6784_v52  ;;  %v7196_v10 = vmul.f32 %v1187_v57, %v6787_v53  ;;  %v799_v11 = vunpack.c.h.bf16 %v6938_v23  ;;  %v5882_v14 = vld [vmem:[%s10147_s2 + $0x150] sm:$0xff] }
 0x103   : > { %1115 = vmatmul.bf16.gmra.mxu2 %v838_v2  ;;  %v7190_v2 = vmul.f32 %v1185_v9, %v6781_v51  ;;  %v797_v51 = vunpack.c.h.bf16 %v6934_v21  ;;  %v824_v21 = vsub.f32 %v7023_v40, %v804_v48  ;;  %v826_v23 = vsub.f32 %v7029_v25, %v806_v44 }
 0x104   : > { %v7211_v53 = vpack.c.bf16 %v7196_v10, %v7193_v38  ;;  %v819_v3 = vsub.f32 %v10246_v6, %v799_v11  ;;  %v903_v9 = vunpack.c.h.b16 %v7087_v49  ;;  %v1190_v11 = vld [vmem:[%s6645_s8 + $0x2a0] sm:$0xff] }
 0x105   : > { %v7207_v52 = vpack.c.bf16 %v7190_v2, %v7187_v41  ;;  %v840_v31 = vpack.c.bf16 %v826_v23, %v824_v21 }
 0x106   : > { %1496 = vmatpush.bf16.msra.mxu1 %v5883_v1  ;;  %1574 = vmatpush.bf16.msrb.mxu3 %v5883_v1  ;;  %v1328_v25 = vunpack.c.l.b16 %v7211_v53  ;;  %v1188_v1 = vld [vmem:[%s6645_s8 + $0x220] sm:$0xff] }
 0x107   : > { %v1326_v40 = vunpack.c.l.b16 %v7207_v52  ;;  %v7238_v23 = vmul.f32 %v1188_v1, %v6701_v15 }
 0x109   : > { %v1344_v57 = vpack.c.b16 %v1328_v25, %v1326_v40  ;;  %v810_v40 = vunpack.c.l.bf16 %v7087_v49 }
 0x10a   : > { %1497 = vmatpush.bf16.msra.mxu1 %v5882_v14  ;;  %1575 = vmatpush.bf16.msrb.mxu3 %v5882_v14  ;;  %v1191_v14 = vld [vmem:[%s6645_s8 + $0x2a8] sm:$0xff] }
 0x10b   : > { %v7250_v6 = vmul.f32 %v1191_v14, %v6710_v18  ;;  %v830_v1 = vsub.f32 %v7070_v43, %v810_v40  ;;  %v905_v43 = vunpack.c.h.b16 %v7122_v5  ;;  %v907_v14 = vunpack.c.h.b16 %v7126_v35 }
 0x10d   : > { %740 = vmatmul.bf16.gmra.mxu3 %v667_v22  ;;  %1466 = vmatmul.bf16.vlgmr.msra.gmra.mxu0 %v1342_v58  ;;  %v5881_v22 = vld [vmem:[%s10147_s2 + $0x148] sm:$0xff]  ;;  %v817_v58 = vsub.f32 %v6909_v4, %v797_v51  ;;  %v5880_v4 = vld [vmem:[%s10147_s2 + $0x140] sm:$0xff] }
 0x10e   : > { %1498 = vmatpush.bf16.msra.mxu1 %v5881_v22  ;;  %1576 = vmatpush.bf16.msrb.mxu3 %v5881_v22  ;;  %v1189_v51 = vld [vmem:[%s6645_s8 + $0x228] sm:$0xff] }
 0x10f   : > { %1076 = vmatmul.bf16.gmra.mxu1 %v913_v29  ;;  %v901_v29 = vunpack.c.h.b16 %v7083_v47  ;;  %v837_v26 = vpack.c.bf16 %v819_v3, %v817_v58  ;;  %v7244_v22 = vmul.f32 %v1189_v51, %v6704_v16  ;;  %v7247_v58 = vmul.f32 %v1190_v11, %v6707_v17 }
 0x110   : > { %v808_v3 = vunpack.c.l.bf16 %v7083_v47  ;;  %v803_v16 = vunpack.c.h.bf16 %v7000_v36  ;;  %v5892_v36 = vld [vmem:[%s10147_s2 + $0x1a0] sm:$0xff] }
 0x111   : > { %v915_v44 = vpack.c.b16 %v903_v9, %v901_v29  ;;  %v801_v29 = vunpack.c.h.bf16 %v6996_v56  ;;  %v7260_v17 = vpack.c.bf16 %v7244_v22, %v7238_v23  ;;  %v7264_v18 = vpack.c.bf16 %v7250_v6, %v7247_v58 }
 0x112   : > { %1499 = vmatpush.bf16.msra.mxu1 %v5880_v4  ;;  %1577 = vmatpush.bf16.msrb.mxu3 %v5880_v4  ;;  %v823_v51 = vsub.f32 %v6976_v33, %v803_v16  ;;  %v1192_v33 = vld [vmem:[%s6645_s8 + $0x320] sm:$0xff] }
 0x113   : > { %1120 = vmatmul.bf16.gmra.mxu2 %v840_v31  ;;  %v5893_v31 = vld [vmem:[%s10147_s2 + $0x1a8] sm:$0xff]  ;;  %v1330_v11 = vunpack.c.l.b16 %v7260_v17  ;;  %v1194_v16 = vld [vmem:[%s6645_s8 + $0x3a0] sm:$0xff] }
 0x114   : > { %1894 = vmatpush.bf16.msrb.mxu0 %v5893_v31  ;;  %1972 = vmatpush.bf16.msrb.mxu2 %v5893_v31 }
 0x118   : > { %1895 = vmatpush.bf16.msrb.mxu0 %v5892_v36  ;;  %1973 = vmatpush.bf16.msrb.mxu2 %v5892_v36  ;;  %v7294_v36 = vmul.f32 %v1194_v16, %v6803_v63  ;;  %v805_v63 = vunpack.c.h.bf16 %v7043_v24 }
 0x11a   : > { %v569_v48 = vpop.f32.mrf.mxu0 }
 0x11c   : > { %v603_v54 = vpop.f32.mrf.mxu1 }
 0x11d   : > { %v604_v21 = vadd.f32 %v603_v54, %v569_v48  ;;  %1144 = vmatmul.bf16.vlgmr.msra.gmra.mxu3 %v837_v26  ;;  %1471 = vmatmul.bf16.gmra.mxu0 %v1344_v57  ;;  %v828_v57 = vsub.f32 %v7064_v45, %v808_v3  ;;  %v1332_v45 = vunpack.c.l.b16 %v7264_v18 }
 0x11f   : > { %1081 = vmatmul.bf16.gmra.mxu1 %v915_v44  ;;  %v842_v56 = vpack.c.bf16 %v830_v1, %v828_v57  ;;  %v821_v44 = vsub.f32 %v6970_v20, %v801_v29  ;;  %v1346_v31 = vpack.c.b16 %v1332_v45, %v1330_v11  ;;  %v1193_v29 = vld [vmem:[%s6645_s8 + $0x328] sm:$0xff]  ;;  %v807_v45 = vunpack.c.h.bf16 %v7047_v39 }
 0x120   : > { %v7252_v15 = vpop.f32.mrf.mxu3 }
 0x121   : > { %v839_v20 = vpack.c.bf16 %v823_v51, %v821_v44  ;;  %v5891_v44 = vld [vmem:[%s10147_s2 + $0x198] sm:$0xff]  ;;  %v812_v51 = vunpack.c.l.bf16 %v7122_v5  ;;  %v827_v16 = vsub.f32 %v7032_v13, %v807_v45  ;;  %v1196_v13 = vld [vmem:[%s6645_s8 + $0x420] sm:$0xff] }
 0x122   : > { %v687_v25 = vpop.f32.mrf.mxu2  ;;  %v571_v26 = vpop.f32.mrf.mxu0  ;;  %1896 = vmatpush.bf16.msrb.mxu0 %v5891_v44  ;;  %1974 = vmatpush.bf16.msrb.mxu2 %v5891_v44 }
 0x123   : > { %v7266_v9 = vadd.f32 %v687_v25, %v604_v21  ;;  %1125 = vmatmul.bf16.gmra.mxu2 %v842_v56  ;;  %v917_v25 = vpack.c.b16 %v907_v14, %v905_v43  ;;  %v7291_v56 = vmul.f32 %v1193_v29, %v6800_v60  ;;  %v814_v60 = vunpack.c.l.bf16 %v7126_v35  ;;  %v5890_v14 = vld [vmem:[%s10147_s2 + $0x190] sm:$0xff] }
 0x124   : > { %v605_v4 = vpop.f32.mrf.mxu1  ;;  %v825_v29 = vsub.f32 %v7026_v37, %v805_v63 }
 0x125   : > { %v606_v48 = vadd.f32 %v605_v4, %v571_v26  ;;  %v1195_v26 = vld [vmem:[%s6645_s8 + $0x3a8] sm:$0xff]  ;;  %v7288_v4 = vmul.f32 %v1192_v33, %v6797_v59  ;;  %v834_v24 = vsub.f32 %v7111_v28, %v814_v60  ;;  %v1323_v28 = vunpack.c.h.b16 %v7156_v7  ;;  %v5888_v60 = vld [vmem:[%s10147_s2 + $0x180] sm:$0xff] }
 0x126   : > { %1897 = vmatpush.bf16.msrb.mxu0 %v5890_v14  ;;  %1975 = vmatpush.bf16.msrb.mxu2 %v5890_v14  ;;  %v841_v37 = vpack.c.bf16 %v827_v16, %v825_v29  ;;  %v1197_v14 = vld [vmem:[%s6645_s8 + $0x428] sm:$0xff] }
 0x128   : > { %v7279_v54 = vpop.f32.mrf.mxu3 }
 0x12a   : > { %v689_v21 = vpop.f32.mrf.mxu2  ;;  %v574_v40 = vpop.f32.mrf.mxu0 }
 0x12b   : > { %v7282_v3 = vadd.f32 %v689_v21, %v606_v48  ;;  %v7297_v48 = vmul.f32 %v1195_v26, %v6806_v0  ;;  %v7310_v0 = vpack.c.bf16 %v7291_v56, %v7288_v4 }
 0x12c   : > { %v608_v57 = vpop.f32.mrf.mxu1 }
 0x12d   : > { %v609_v1 = vadd.f32 %v608_v57, %v574_v40  ;;  %1149 = vmatmul.bf16.gmra.mxu3 %v839_v20  ;;  %1476 = vmatmul.bf16.gmra.mxu0 %v1346_v31  ;;  %v7314_v43 = vpack.c.bf16 %v7297_v48, %v7294_v36  ;;  %v832_v31 = vsub.f32 %v7104_v32, %v812_v51  ;;  %v1334_v26 = vunpack.c.l.b16 %v7310_v0 }
 0x12e   : > { %v1325_v57 = vunpack.c.h.b16 %v7160_v8 }
 0x12f   : > { %1086 = vmatmul.bf16.gmra.mxu1 %v917_v25  ;;  %v844_v40 = vpack.c.bf16 %v834_v24, %v832_v31  ;;  %v5889_v25 = vld [vmem:[%s10147_s2 + $0x188] sm:$0xff]  ;;  %v1336_v32 = vunpack.c.l.b16 %v7314_v43 }
 0x130   : > { %v7302_v59 = vpop.f32.mrf.mxu3  ;;  %1898 = vmatpush.bf16.msrb.mxu0 %v5889_v25  ;;  %1976 = vmatpush.bf16.msrb.mxu2 %v5889_v25  ;;  %v1343_v45 = vpack.c.b16 %v1325_v57, %v1323_v28  ;;  %v1199_v31 = vld [vmem:[%s6645_s8 + $0x4a8] sm:$0xff]  ;;  %v7350_v25 = vmul.f32 %v1197_v14, %v6868_v62  ;;  %v811_v28 = vunpack.c.h.bf16 %v7087_v49 }
 0x131   : > { %v1348_v51 = vpack.c.b16 %v1336_v32, %v1334_v26  ;;  %v7356_v29 = vmul.f32 %v1199_v31, %v6878_v30  ;;  %v1230_v26 = vunpack.c.l.bf16 %v7156_v7  ;;  %v809_v32 = vunpack.c.h.bf16 %v7083_v47 }
 0x132   : > { %v692_v11 = vpop.f32.mrf.mxu2  ;;  %v576_v20 = vpop.f32.mrf.mxu0  ;;  %10247 = vst [vmem:[#allocation14_spill] sm:$0xff] %v7350_v25 }
 0x133   : > { %v7319_v21 = vadd.f32 %v692_v11, %v609_v1  ;;  %1130 = vmatmul.bf16.gmra.mxu2 %v844_v40  ;;  %v7347_v40 = vmul.f32 %v1196_v13, %v6865_v61  ;;  %10248 = vst [vmem:[#allocation16_spill] sm:$0xff] %v7356_v29  ;;  %v829_v13 = vsub.f32 %v7067_v27, %v809_v32  ;;  %v1617_v32 = vld [vmem:[%s6645_s8 + $0xb8] sm:$0xff] }
 0x134   : > { %v610_v39 = vpop.f32.mrf.mxu1  ;;  %1899 = vmatpush.bf16.msrb.mxu0 %v5888_v60  ;;  %1977 = vmatpush.bf16.msrb.mxu2 %v5888_v60  ;;  %v831_v60 = vsub.f32 %v7073_v34, %v811_v28 }
 0x135   : > { %v611_v33 = vadd.f32 %v610_v39, %v576_v20  ;;  %v1198_v20 = vld [vmem:[%s6645_s8 + $0x4a0] sm:$0xff]  ;;  %v7366_v62 = vpack.c.bf16 %v7350_v25, %v7347_v40 }
 0x136   : > { %v843_v31 = vpack.c.bf16 %v831_v60, %v829_v13  ;;  %v7409_v13 = vld [vmem:[%s6637_s25 + $0x10] sm:$0xff] }
 0x138   : > { %v7332_v1 = vpop.f32.mrf.mxu3 }
 0x13a   : > { %v694_v44 = vpop.f32.mrf.mxu2  ;;  %v7340_v63 = vpop.f32.mrf.mxu0 }
 0x13b   : > { %v7338_v11 = vadd.f32 %v694_v44, %v611_v33  ;;  %v7353_v33 = vmul.f32 %v1198_v20, %v6871_v12  ;;  %v1250_v44 = vsub.f32 %v7137_v50, %v1230_v26  ;;  %v1327_v50 = vunpack.c.h.b16 %v7207_v52 }
 0x13c   : > { %v613_v24 = vpop.f32.mrf.mxu1 }
 0x13d   : > { %v614_v39 = vadd.f32 %v613_v24, %v7252_v15  ;;  %1154 = vmatmul.bf16.gmra.mxu3 %v841_v37  ;;  %1481 = vmatmul.bf16.gmra.mxu0 %v1348_v51  ;;  %v1232_v15 = vunpack.c.l.bf16 %v7160_v8  ;;  %v7370_v12 = vpack.c.bf16 %v7356_v29, %v7353_v33  ;;  %v1614_v24 = vld [vmem:[%s6645_s8 + $0x30] sm:$0xff] }
 0x13f   : > { %1500 = vmatmul.bf16.vlgmr.msra.gmra.mxu1 %v1343_v45  ;;  %v1252_v37 = vsub.f32 %v7144_v19, %v1232_v15  ;;  %v1338_v45 = vunpack.c.l.b16 %v7366_v62  ;;  %v1340_v14 = vunpack.c.l.b16 %v7370_v12  ;;  %v1329_v19 = vunpack.c.h.b16 %v7211_v53  ;;  %v1615_v15 = vld [vmem:[%s6645_s8 + $0x38] sm:$0xff] }
 0x140   : > { %v7358_v16 = vpop.f32.mrf.mxu3 }
 0x141   : > { %v1270_v51 = vpack.c.bf16 %v1252_v37, %v1250_v44  ;;  %v1350_v27 = vpack.c.b16 %v1340_v14, %v1338_v45  ;;  %v1345_v26 = vpack.c.b16 %v1329_v19, %v1327_v50  ;;  %v7397_v37 = vld [vmem:[%s6637_s25] sm:$0xff]  ;;  %v7415_v45 = vld [vmem:[%s6637_s25 + $0x18] sm:$0xff]  ;;  %v813_v19 = vunpack.c.h.bf16 %v7122_v5  ;;  %v5902_v5 = vld [vmem:[%s10147_s2 + $0x1f0] sm:$0xff] }
 0x142   : > { %v697_v61 = vpop.f32.mrf.mxu2  ;;  %v7374_v57 = vpop.f32.mrf.mxu0  ;;  %v5903_v14 = vld [vmem:[%s10147_s2 + $0x1f8] sm:$0xff] }
 0x143   : > { %v7372_v30 = vadd.f32 %v697_v61, %v614_v39  ;;  %1544 = vmatmul.bf16.vlgmr.msra.gmra.mxu2 %v1270_v51  ;;  %v1616_v61 = vld [vmem:[%s6645_s8 + $0xb0] sm:$0xff]  ;;  %v7403_v51 = vld [vmem:[%s6637_s25 + $0x8] sm:$0xff]  ;;  %2004 = vmatpush.bf16.msra.mxu3 %v5903_v14 }
 0x144   : > { %v615_v47 = vpop.f32.mrf.mxu1  ;;  %v7412_v60 = vmul.f32 %v7409_v13, %v1616_v61  ;;  %1926 = vmatpush.bf16.msrb.mxu1 %v5903_v14 }
 0x145   : > { %v616_v49 = vadd.f32 %v615_v47, %v7279_v54  ;;  %v7400_v47 = vmul.f32 %v7397_v37, %v1614_v24 }
 0x147   : > { %2005 = vmatpush.bf16.msra.mxu3 %v5902_v5 }
 0x148   : > { %v7385_v20 = vpop.f32.mrf.mxu3  ;;  %1927 = vmatpush.bf16.msrb.mxu1 %v5902_v5 }
 0x14a   : > { %v699_v54 = vpop.f32.mrf.mxu2  ;;  %v7390_v39 = vpop.f32.mrf.mxu0 }
 0x14b   : > { %v7388_v34 = vadd.f32 %v699_v54, %v616_v49  ;;  %v7406_v49 = vmul.f32 %v7403_v51, %v1615_v15  ;;  %v1234_v54 = vunpack.c.l.bf16 %v7207_v52  ;;  %v815_v15 = vunpack.c.h.bf16 %v7126_v35 }
 0x14c   : > { %v618_v28 = vpop.f32.mrf.mxu1 }
 0x14d   : > { %v619_v44 = vadd.f32 %v618_v28, %v7302_v59  ;;  %1159 = vmatmul.bf16.gmra.mxu3 %v843_v31  ;;  %1486 = vmatmul.bf16.gmra.mxu0 %v1350_v27  ;;  %10249 = vst [vmem:[#allocation17_spill] sm:$0xff] %v7406_v49  ;;  %v7418_v59 = vmul.f32 %v7415_v45, %v1617_v32  ;;  %v1236_v31 = vunpack.c.l.bf16 %v7211_v53 }
 0x14e   : > { %v7432_v61 = vpack.c.bf16 %v7406_v49, %v7400_v47  ;;  %v835_v29 = vsub.f32 %v7114_v42, %v815_v15  ;;  %v5900_v15 = vld [vmem:[%s10147_s2 + $0x1e0] sm:$0xff] }
 0x14f   : > { %10250 = vst [vmem:[#allocation18_spill] sm:$0xff] %v7418_v59  ;;  %1505 = vmatmul.bf16.gmra.mxu1 %v1345_v26  ;;  %v7436_v26 = vpack.c.bf16 %v7418_v59, %v7412_v60  ;;  %v1256_v35 = vsub.f32 %v7193_v38, %v1236_v31  ;;  %v833_v59 = vsub.f32 %v7108_v46, %v813_v19  ;;  %v1331_v38 = vunpack.c.h.b16 %v7260_v17  ;;  %v5911_v46 = vld [vmem:[%s10147_s2 + $0x238] sm:$0xff] }
 0x150   : > { %v721_v50 = vpop.f32.mrf.mxu3  ;;  %v1756_v25 = vunpack.c.l.b16 %v7432_v61  ;;  %2326 = vmatpush.bf16.msra.mxu0 %v5911_v46  ;;  %2404 = vmatpush.bf16.msra.mxu2 %v5911_v46  ;;  %v1621_v46 = vld [vmem:[%s6645_s8 + $0x1b8] sm:$0xff] }
 0x151   : > { %v7427_v24 = vadd.f32 %v721_v50, %v7266_v9  ;;  %v1254_v9 = vsub.f32 %v7187_v41, %v1234_v54  ;;  %v5901_v41 = vld [vmem:[%s10147_s2 + $0x1e8] sm:$0xff]  ;;  %v1333_v54 = vunpack.c.h.b16 %v7264_v18  ;;  %v845_v31 = vpack.c.bf16 %v835_v29, %v833_v59  ;;  %v7476_v29 = vld [vmem:[%s6637_s25 + $0x20] sm:$0xff] }
 0x152   : > { %v702_v27 = vpop.f32.mrf.mxu2  ;;  %v7443_v28 = vpop.f32.mrf.mxu0  ;;  %1928 = vmatpush.bf16.msrb.mxu1 %v5901_v41  ;;  %2006 = vmatpush.bf16.msra.mxu3 %v5901_v41  ;;  %v1620_v41 = vld [vmem:[%s6645_s8 + $0x1b0] sm:$0xff]  ;;  %10251 = vst [vmem:[#allocation19_spill] sm:$0xff] %v7476_v29 }
 0x153   : > { %v7441_v32 = vadd.f32 %v702_v27, %v619_v44  ;;  %v1272_v49 = vpack.c.bf16 %v1256_v35, %v1254_v9  ;;  %v1758_v44 = vunpack.c.l.b16 %v7436_v26  ;;  %v1347_v35 = vpack.c.b16 %v1333_v54, %v1331_v38  ;;  %v7488_v38 = vld [vmem:[%s6637_s25 + $0x30] sm:$0xff] }
 0x154   : > { %v620_v14 = vpop.f32.mrf.mxu1  ;;  %10254 = vst [vmem:[#allocation22_spill] sm:$0xff] %v7488_v38  ;;  %v7491_v54 = vmul.f32 %v7488_v38, %v1620_v41 }
 0x155   : > { %v621_v50 = vadd.f32 %v620_v14, %v7332_v1  ;;  %1549 = vmatmul.bf16.gmra.mxu2 %v1272_v49  ;;  %v1776_v27 = vpack.c.b16 %v1758_v44, %v1756_v25  ;;  %v1618_v49 = vld [vmem:[%s6645_s8 + $0x130] sm:$0xff]  ;;  %v1619_v14 = vld [vmem:[%s6645_s8 + $0x138] sm:$0xff] }
 0x156   : > { %1929 = vmatpush.bf16.msrb.mxu1 %v5900_v15  ;;  %2007 = vmatpush.bf16.msra.mxu3 %v5900_v15  ;;  %v7479_v59 = vmul.f32 %v7476_v29, %v1618_v49  ;;  %10255 = vst [vmem:[#allocation23_spill] sm:$0xff] %v7491_v54  ;;  %v1238_v49 = vunpack.c.l.bf16 %v7260_v17  ;;  %v1240_v15 = vunpack.c.l.bf16 %v7264_v18  ;;  %v10258_v29 = vld [vmem:[#allocation15_spill] sm:$0xff] }
 0x158   : > { %v723_v42 = vpop.f32.mrf.mxu3 }
 0x159   : > { %v7461_v19 = vadd.f32 %v723_v42, %v7282_v3  ;;  %v7494_v42 = vld [vmem:[%s6637_s25 + $0x38] sm:$0xff] }
 0x15a   : > { %v704_v1 = vpop.f32.mrf.mxu2  ;;  %v7469_v9 = vpop.f32.mrf.mxu0  ;;  %10256 = vst [vmem:[#allocation24_spill] sm:$0xff] %v7494_v42 }
 0x15b   : > { %v7467_v5 = vadd.f32 %v704_v1, %v621_v50  ;;  %v7482_v50 = vld [vmem:[%s6637_s25 + $0x28] sm:$0xff]  ;;  %v5899_v1 = vld [vmem:[%s10147_s2 + $0x1d8] sm:$0xff] }
 0x15c   : > { %v623_v3 = vpop.f32.mrf.mxu1  ;;  %10252 = vst [vmem:[#allocation20_spill] sm:$0xff] %v7482_v50  ;;  %v7485_v44 = vmul.f32 %v7482_v50, %v1619_v14  ;;  %1930 = vmatpush.bf16.msrb.mxu1 %v5899_v1  ;;  %2008 = vmatpush.bf16.msra.mxu3 %v5899_v1  ;;  %v5898_v1 = vld [vmem:[%s10147_s2 + $0x1d0] sm:$0xff] }
 0x15d   : > { %v624_v25 = vadd.f32 %v623_v3, %v7358_v16  ;;  %1164 = vmatmul.bf16.gmra.mxu3 %v845_v31  ;;  %1900 = vmatmul.bf16.vlgmr.msrb.gmra.mxu0 %v1776_v27  ;;  %v7497_v16 = vmul.f32 %v7494_v42, %v1621_v46  ;;  %v1231_v27 = vunpack.c.h.bf16 %v7156_v7  ;;  %v1233_v46 = vunpack.c.h.bf16 %v7160_v8  ;;  %v5910_v7 = vld [vmem:[%s10147_s2 + $0x230] sm:$0xff] }
 0x15e   : > { %10253 = vst [vmem:[#allocation21_spill] sm:$0xff] %v7485_v44  ;;  %v7511_v3 = vpack.c.bf16 %v7485_v44, %v7479_v59  ;;  %v1258_v8 = vsub.f32 %v7238_v23, %v1238_v49  ;;  %v1260_v44 = vsub.f32 %v7247_v58, %v1240_v15  ;;  %2327 = vmatpush.bf16.msra.mxu0 %v5910_v7  ;;  %v5897_v23 = vld [vmem:[%s10147_s2 + $0x1c8] sm:$0xff]  ;;  %v1335_v58 = vunpack.c.h.b16 %v7310_v0  ;;  %v1622_v49 = vld [vmem:[%s6645_s8 + $0x230] sm:$0xff]  ;;  %v5896_v15 = vld [vmem:[%s10147_s2 + $0x1c0] sm:$0xff] }
 0x15f   : > { %10257 = vst [vmem:[#allocation25_spill] sm:$0xff] %v7497_v16  ;;  %1510 = vmatmul.bf16.gmra.mxu1 %v1347_v35  ;;  %v7515_v35 = vpack.c.bf16 %v7497_v16, %v7491_v54  ;;  %2405 = vmatpush.bf16.msra.mxu2 %v5910_v7  ;;  %v1251_v50 = vsub.f32 %v7141_v55, %v1231_v27 }
 0x160   : > { %v726_v31 = vpop.f32.mrf.mxu3  ;;  %1931 = vmatpush.bf16.msrb.mxu1 %v5898_v1  ;;  %v1274_v38 = vpack.c.bf16 %v1260_v44, %v1258_v8  ;;  %2009 = vmatpush.bf16.msra.mxu3 %v5898_v1  ;;  %v1623_v1 = vld [vmem:[%s6645_s8 + $0x238] sm:$0xff]  ;;  %v1624_v8 = vld [vmem:[%s6645_s8 + $0x2b0] sm:$0xff] }
 0x161   : > { %v7506_v41 = vadd.f32 %v726_v31, %v7319_v21  ;;  %v1762_v54 = vunpack.c.l.b16 %v7515_v35 }
 0x162   : > { %v707_v14 = vpop.f32.mrf.mxu2  ;;  %v7525_v31 = vpop.f32.mrf.mxu0 }
 0x163   : > { %v7523_v21 = vadd.f32 %v707_v14, %v624_v25  ;;  %v1253_v25 = vsub.f32 %v10258_v29, %v1233_v46  ;;  %v1760_v14 = vunpack.c.l.b16 %v7511_v3 }
 0x164   : > { %v625_v42 = vpop.f32.mrf.mxu1  ;;  %1932 = vmatpush.bf16.msrb.mxu1 %v5897_v23  ;;  %2010 = vmatpush.bf16.msra.mxu3 %v5897_v23  ;;  %v1625_v23 = vld [vmem:[%s6645_s8 + $0x2b8] sm:$0xff] }
 0x165   : > { %v626_v16 = vadd.f32 %v625_v42, %v7385_v20  ;;  %v1337_v20 = vunpack.c.h.b16 %v7314_v43  ;;  %1554 = vmatmul.bf16.gmra.mxu2 %v1274_v38  ;;  %v1271_v42 = vpack.c.bf16 %v1253_v25, %v1251_v50  ;;  %v1778_v27 = vpack.c.b16 %v1762_v54, %v1760_v14  ;;  %v7555_v54 = vld [vmem:[%s6637_s25 + $0x40] sm:$0xff] }
 0x166   : > { %v7558_v25 = vmul.f32 %v7555_v54, %v1622_v49  ;;  %v1235_v49 = vunpack.c.h.bf16 %v7207_v52 }
 0x167   : > { %v1349_v7 = vpack.c.b16 %v1337_v20, %v1335_v58  ;;  %v7567_v58 = vld [vmem:[%s6637_s25 + $0x50] sm:$0xff] }
 0x168   : > { %v728_v55 = vpop.f32.mrf.mxu3  ;;  %1933 = vmatpush.bf16.msrb.mxu1 %v5896_v15  ;;  %2011 = vmatpush.bf16.msra.mxu3 %v5896_v15  ;;  %10261 = vst [vmem:[#allocation27_spill] sm:$0xff] %v7567_v58  ;;  %v7570_v20 = vmul.f32 %v7567_v58, %v1624_v8  ;;  %v1242_v15 = vunpack.c.l.bf16 %v7310_v0 }
 0x169   : > { %v7540_v44 = vadd.f32 %v728_v55, %v7338_v11  ;;  %v7573_v55 = vld [vmem:[%s6637_s25 + $0x58] sm:$0xff] }
 0x16a   : > { %v709_v29 = vpop.f32.mrf.mxu2  ;;  %v7548_v38 = vpop.f32.mrf.mxu0  ;;  %10262 = vst [vmem:[#allocation28_spill] sm:$0xff] %v7573_v55 }
 0x16b   : > { %v7546_v46 = vadd.f32 %v709_v29, %v626_v16  ;;  %v7561_v16 = vld [vmem:[%s6637_s25 + $0x48] sm:$0xff] }
 0x16c   : > { %v1067_v11 = vpop.f32.mrf.mxu1  ;;  %10259 = vst [vmem:[#allocation15_spill] sm:$0xff] %v7561_v16  ;;  %v7564_v14 = vmul.f32 %v7561_v16, %v1623_v1  ;;  %v1244_v1 = vunpack.c.l.bf16 %v7314_v43  ;;  %v7629_v16 = vld [vmem:[%s6637_s25 + $0x60] sm:$0xff] }
 0x16d   : > { %v1068_v50 = vadd.f32 %v1067_v11, %v7340_v63  ;;  %1578 = vmatmul.bf16.vlgmr.msrb.gmra.mxu3 %v1271_v42  ;;  %1905 = vmatmul.bf16.gmra.mxu0 %v1778_v27  ;;  %v7576_v63 = vmul.f32 %v7573_v55, %v1625_v23  ;;  %v5909_v42 = vld [vmem:[%s10147_s2 + $0x228] sm:$0xff]  ;;  %v1262_v11 = vsub.f32 %v7288_v4, %v1242_v15  ;;  %v1339_v4 = vunpack.c.h.b16 %v7366_v62  ;;  %v1626_v15 = vld [vmem:[%s6645_s8 + $0x330] sm:$0xff] }
 0x16e   : > { %10260 = vst [vmem:[#allocation26_spill] sm:$0xff] %v7564_v14  ;;  %2328 = vmatpush.bf16.msra.mxu0 %v5909_v42  ;;  %2406 = vmatpush.bf16.msra.mxu2 %v5909_v42 }
 0x16f   : > { %10263 = vst [vmem:[#allocation29_spill] sm:$0xff] %v7576_v63  ;;  %v7579_v29 = vadd.f32 %v1068_v50, %v7427_v24  ;;  %1515 = vmatmul.bf16.gmra.mxu1 %v1349_v7  ;;  %v1237_v24 = vunpack.c.h.bf16 %v7211_v53  ;;  %v7593_v7 = vpack.c.bf16 %v7564_v14, %v7558_v25  ;;  %v7597_v23 = vpack.c.bf16 %v7576_v63, %v7570_v20 }
 0x170   : > { %v731_v27 = vpop.f32.mrf.mxu3  ;;  %v1264_v50 = vsub.f32 %v7294_v36, %v1244_v1  ;;  %v1255_v53 = vsub.f32 %v7190_v2, %v1235_v49  ;;  %v1341_v36 = vunpack.c.h.b16 %v7370_v12  ;;  %v5908_v2 = vld [vmem:[%s10147_s2 + $0x220] sm:$0xff] }
 0x171   : > { %v7588_v8 = vadd.f32 %v731_v27, %v7372_v30  ;;  %v1257_v14 = vsub.f32 %v7196_v10, %v1237_v24  ;;  %v1764_v55 = vunpack.c.l.b16 %v7593_v7  ;;  %v1766_v63 = vunpack.c.l.b16 %v7597_v23 }
 0x172   : > { %v7599_v52 = vpop.f32.mrf.mxu0  ;;  %v1276_v27 = vpack.c.bf16 %v1264_v50, %v1262_v11  ;;  %2329 = vmatpush.bf16.msra.mxu0 %v5908_v2  ;;  %2407 = vmatpush.bf16.msra.mxu2 %v5908_v2  ;;  %v1351_v11 = vpack.c.b16 %v1341_v36, %v1339_v4  ;;  %v1627_v50 = vld [vmem:[%s6645_s8 + $0x338] sm:$0xff] }
 0x173   : > { %v1780_v49 = vpack.c.b16 %v1766_v63, %v1764_v55  ;;  %v7641_v63 = vld [vmem:[%s6637_s25 + $0x70] sm:$0xff]  ;;  %v7647_v4 = vld [vmem:[%s6637_s25 + $0x78] sm:$0xff] }
 0x174   : > { %v1069_v42 = vpop.f32.mrf.mxu1  ;;  %v7620_v1 = vpop.f32.mrf.mxu2  ;;  %10266 = vst [vmem:[#allocation32_spill] sm:$0xff] %v7641_v63  ;;  %v5907_v36 = vld [vmem:[%s10147_s2 + $0x218] sm:$0xff] }
 0x175   : > { %v1070_v30 = vadd.f32 %v1069_v42, %v7374_v57  ;;  %1559 = vmatmul.bf16.gmra.mxu2 %v1276_v27  ;;  %v1628_v42 = vld [vmem:[%s6645_s8 + $0x3b0] sm:$0xff]  ;;  %10267 = vst [vmem:[#allocation33_spill] sm:$0xff] %v7647_v4 }
 0x176   : > { %2330 = vmatpush.bf16.msra.mxu0 %v5907_v36  ;;  %2408 = vmatpush.bf16.msra.mxu2 %v5907_v36 }
 0x177   : > { %v7609_v58 = vadd.f32 %v1070_v30, %v7461_v19  ;;  %v1273_v19 = vpack.c.bf16 %v1257_v14, %v1255_v53  ;;  %v1629_v30 = vld [vmem:[%s6645_s8 + $0x3b8] sm:$0xff]  ;;  %v7635_v14 = vld [vmem:[%s6637_s25 + $0x68] sm:$0xff]  ;;  %v7644_v53 = vmul.f32 %v7641_v63, %v1628_v42 }
 0x178   : > { %v733_v10 = vpop.f32.mrf.mxu3  ;;  %10264 = vst [vmem:[#allocation30_spill] sm:$0xff] %v7635_v14  ;;  %v7638_v55 = vmul.f32 %v7635_v14, %v1627_v50  ;;  %v1248_v50 = vunpack.c.l.bf16 %v7370_v12 }
 0x179   : > { %v7617_v57 = vadd.f32 %v733_v10, %v7388_v34  ;;  %v7632_v34 = vmul.f32 %v7629_v16, %v1626_v15  ;;  %v1246_v15 = vunpack.c.l.bf16 %v7366_v62 }
 0x17a   : > { %v7622_v24 = vpop.f32.mrf.mxu0  ;;  %10265 = vst [vmem:[#allocation31_spill] sm:$0xff] %v7638_v55 }
 0x17c   : > { %v1072_v27 = vpop.f32.mrf.mxu1 }
 0x17d   : > { %v1073_v2 = vadd.f32 %v1072_v27, %v7390_v39  ;;  %1583 = vmatmul.bf16.gmra.mxu3 %v1273_v19  ;;  %1910 = vmatmul.bf16.gmra.mxu0 %v1780_v49  ;;  %v7650_v39 = vmul.f32 %v7647_v4, %v1629_v30  ;;  %v1239_v49 = vunpack.c.h.bf16 %v7260_v17  ;;  %v1241_v30 = vunpack.c.h.bf16 %v7264_v18  ;;  %v5906_v17 = vld [vmem:[%s10147_s2 + $0x210] sm:$0xff] }
 0x17e   : > { %v7667_v27 = vpack.c.bf16 %v7638_v55, %v7632_v34  ;;  %v1268_v18 = vsub.f32 %v7353_v33, %v1248_v50  ;;  %2331 = vmatpush.bf16.msra.mxu0 %v5906_v17  ;;  %2409 = vmatpush.bf16.msra.mxu2 %v5906_v17  ;;  %v5904_v17 = vld [vmem:[%s10147_s2 + $0x200] sm:$0xff] }
 0x17f   : > { %10268 = vst [vmem:[#allocation34_spill] sm:$0xff] %v7650_v39  ;;  %v7656_v10 = vadd.f32 %v1073_v2, %v7506_v41  ;;  %1520 = vmatmul.bf16.gmra.mxu1 %v1351_v11  ;;  %v7671_v41 = vpack.c.bf16 %v7650_v39, %v7644_v53  ;;  %v7673_v11 = vpop.f32.mrf.mxu2  ;;  %v1259_v39 = vsub.f32 %v7244_v22, %v1239_v49  ;;  %v1759_v22 = vunpack.c.h.b16 %v7436_v26 }
 0x180   : > { %v736_v19 = vpop.f32.mrf.mxu3  ;;  %v1261_v4 = vsub.f32 %v7250_v6, %v1241_v30  ;;  %v1768_v63 = vunpack.c.l.b16 %v7667_v27  ;;  %v1630_v30 = vld [vmem:[%s6645_s8 + $0x430] sm:$0xff] }
 0x181   : > { %v7662_v42 = vadd.f32 %v736_v19, %v7441_v32  ;;  %v1266_v32 = vsub.f32 %v7347_v40, %v1246_v15  ;;  %v1770_v14 = vunpack.c.l.b16 %v7671_v41  ;;  %v5905_v40 = vld [vmem:[%s10147_s2 + $0x208] sm:$0xff] }
 0x182   : > { %v7678_v2 = vpop.f32.mrf.mxu0  ;;  %2332 = vmatpush.bf16.msra.mxu0 %v5905_v40  ;;  %2410 = vmatpush.bf16.msra.mxu2 %v5905_v40  ;;  %v1275_v15 = vpack.c.bf16 %v1261_v4, %v1259_v39  ;;  %v7717_v39 = vld [vmem:[%s6637_s25 + $0x88] sm:$0xff] }
 0x183   : > { %v1278_v55 = vpack.c.bf16 %v1268_v18, %v1266_v32  ;;  %v1782_v50 = vpack.c.b16 %v1770_v14, %v1768_v63  ;;  %v1631_v18 = vld [vmem:[%s6645_s8 + $0x438] sm:$0xff]  ;;  %v7711_v63 = vld [vmem:[%s6637_s25 + $0x80] sm:$0xff]  ;;  %10270 = vst [vmem:[#allocation36_spill] sm:$0xff] %v7717_v39 }
 0x184   : > { %v1074_v36 = vpop.f32.mrf.mxu1  ;;  %10269 = vst [vmem:[#allocation35_spill] sm:$0xff] %v7711_v63  ;;  %v7714_v4 = vmul.f32 %v7711_v63, %v1630_v30  ;;  %v7720_v40 = vmul.f32 %v7717_v39, %v1631_v18  ;;  %v1666_v18 = vunpack.c.l.bf16 %v7436_v26 }
 0x185   : > { %v1075_v19 = vadd.f32 %v1074_v36, %v7443_v28  ;;  %v1757_v28 = vunpack.c.h.b16 %v7432_v61  ;;  %1564 = vmatmul.bf16.gmra.mxu2 %v1278_v55  ;;  %v1632_v36 = vld [vmem:[%s6645_s8 + $0x4b0] sm:$0xff] }
 0x186   : > { %2333 = vmatpush.bf16.msra.mxu0 %v5904_v17  ;;  %2411 = vmatpush.bf16.msra.mxu2 %v5904_v17  ;;  %10271 = vst [vmem:[#allocation37_spill] sm:$0xff] %v7720_v40  ;;  %v1664_v17 = vunpack.c.l.bf16 %v7432_v61 }
 0x187   : > { %v7691_v33 = vadd.f32 %v1075_v19, %v7540_v44  ;;  %v7699_v44 = vpop.f32.mrf.mxu2  ;;  %v1777_v55 = vpack.c.b16 %v1759_v22, %v1757_v28  ;;  %v1633_v19 = vld [vmem:[%s6645_s8 + $0x4b8] sm:$0xff]  ;;  %v7723_v28 = vld [vmem:[%s6637_s25 + $0x90] sm:$0xff] }
 0x188   : > { %v738_v6 = vpop.f32.mrf.mxu3  ;;  %10272 = vst [vmem:[#allocation38_spill] sm:$0xff] %v7723_v28  ;;  %v7726_v22 = vmul.f32 %v7723_v28, %v1632_v36  ;;  %v1245_v36 = vunpack.c.h.bf16 %v7314_v43 }
 0x189   : > { %v7696_v49 = vadd.f32 %v738_v6, %v7467_v5  ;;  %v7729_v6 = vld [vmem:[%s6637_s25 + $0x98] sm:$0xff] }
 0x18a   : > { %v7704_v32 = vpop.f32.mrf.mxu0  ;;  %10273 = vst [vmem:[#allocation39_spill] sm:$0xff] %v7726_v22  ;;  %v1265_v28 = vsub.f32 %v7297_v48, %v1245_v36 }
 0x18b   : > { %10274 = vst [vmem:[#allocation40_spill] sm:$0xff] %v7729_v6 }
 0x18c   : > { %v1077_v5 = vpop.f32.mrf.mxu1 }
 0x18d   : > { %v1078_v14 = vadd.f32 %v1077_v5, %v7469_v9  ;;  %1588 = vmatmul.bf16.gmra.mxu3 %v1275_v15  ;;  %1915 = vmatmul.bf16.gmra.mxu0 %v1782_v50  ;;  %v7732_v9 = vmul.f32 %v7729_v6, %v1633_v19  ;;  %v1243_v50 = vunpack.c.h.bf16 %v7310_v0  ;;  %v7746_v19 = vpack.c.bf16 %v7720_v40, %v7714_v4 }
 0x18e   : > { %v1686_v6 = vsub.f32 %v7412_v60, %v1666_v18  ;;  %v1761_v60 = vunpack.c.h.b16 %v7511_v3 }
 0x18f   : > { %10275 = vst [vmem:[#allocation41_spill] sm:$0xff] %v7732_v9  ;;  %v7735_v30 = vadd.f32 %v1078_v14, %v7588_v8  ;;  %1934 = vmatmul.bf16.vlgmr.msrb.gmra.mxu1 %v1777_v55  ;;  %v7750_v8 = vpack.c.bf16 %v7732_v9, %v7726_v22  ;;  %v7752_v55 = vpop.f32.mrf.mxu2  ;;  %v1684_v14 = vsub.f32 %v7400_v47, %v1664_v17  ;;  %v1772_v9 = vunpack.c.l.b16 %v7746_v19 }
 0x190   : > { %v741_v15 = vpop.f32.mrf.mxu3  ;;  %v1263_v40 = vsub.f32 %v7291_v56, %v1243_v50  ;;  %v1763_v17 = vunpack.c.h.b16 %v7515_v35  ;;  %v2048_v50 = vld [vmem:[%s6645_s8 + $0x40] sm:$0xff] }
 0x191   : > { %v7741_v5 = vadd.f32 %v741_v15, %v7523_v21  ;;  %v1704_v15 = vpack.c.bf16 %v1686_v6, %v1684_v14  ;;  %v1774_v39 = vunpack.c.l.b16 %v7750_v8 }
 0x192   : > { %v7754_v0 = vpop.f32.mrf.mxu0  ;;  %v1277_v6 = vpack.c.bf16 %v1265_v28, %v1263_v40  ;;  %v1779_v14 = vpack.c.b16 %v1763_v17, %v1761_v60  ;;  %v5919_v28 = vld [vmem:[%s10147_s2 + $0x278] sm:$0xff] }
 0x193   : > { %v1784_v48 = vpack.c.b16 %v1774_v39, %v1772_v9  ;;  %2438 = vmatpush.bf16.msrb.mxu3 %v5919_v28  ;;  %2360 = vmatpush.bf16.msra.mxu1 %v5919_v28  ;;  %v1249_v9 = vunpack.c.h.bf16 %v7370_v12 }
 0x194   : > { %v1079_v21 = vpop.f32.mrf.mxu1 }
 0x195   : > { %v1080_v43 = vadd.f32 %v1079_v21, %v7525_v31  ;;  %1978 = vmatmul.bf16.vlgmr.msrb.gmra.mxu2 %v1704_v15  ;;  %v2049_v21 = vld [vmem:[%s6645_s8 + $0x48] sm:$0xff]  ;;  %v7781_v15 = vmul.f32 %v7397_v37, %v2048_v50 }
 0x197   : > { %v7764_v47 = vadd.f32 %v1080_v43, %v7617_v57  ;;  %v7772_v18 = vpop.f32.mrf.mxu2  ;;  %v2050_v57 = vld [vmem:[%s6645_s8 + $0xc0] sm:$0xff]  ;;  %v2051_v43 = vld [vmem:[%s6645_s8 + $0xc8] sm:$0xff] }
 0x198   : > { %v743_v31 = vpop.f32.mrf.mxu3  ;;  %v7787_v39 = vmul.f32 %v7409_v13, %v2050_v57  ;;  %v7790_v40 = vmul.f32 %v7415_v45, %v2051_v43  ;;  %v1670_v13 = vunpack.c.l.bf16 %v7515_v35  ;;  %v10279_v43 = vld [vmem:[#allocation16_spill] sm:$0xff] }
 0x199   : > { %v7769_v56 = vadd.f32 %v743_v31, %v7546_v46  ;;  %v7784_v46 = vmul.f32 %v7403_v51, %v2049_v21  ;;  %v1247_v51 = vunpack.c.h.bf16 %v7366_v62  ;;  %v5918_v62 = vld [vmem:[%s10147_s2 + $0x270] sm:$0xff]  ;;  %v10277_v31 = vld [vmem:[#allocation23_spill] sm:$0xff]  ;;  %v10278_v21 = vld [vmem:[#allocation14_spill] sm:$0xff]  ;;  %v1269_v28 = vsub.f32 %v10279_v43, %v1249_v9 }
 0x19a   : > { %v7774_v36 = vpop.f32.mrf.mxu0  ;;  %10276 = vst [vmem:[#allocation42_spill] sm:$0xff] %v7790_v40  ;;  %v1690_v12 = vsub.f32 %v10277_v31, %v1670_v13  ;;  %2361 = vmatpush.bf16.msra.mxu1 %v5918_v62  ;;  %2439 = vmatpush.bf16.msrb.mxu3 %v5918_v62  ;;  %v1765_v13 = vunpack.c.h.b16 %v7593_v7  ;;  %v2055_v43 = vld [vmem:[%s6645_s8 + $0x1c8] sm:$0xff] }
 0x19b   : > { %v7805_v60 = vpack.c.bf16 %v7784_v46, %v7781_v15  ;;  %v1267_v57 = vsub.f32 %v10278_v21, %v1247_v51  ;;  %v5927_v51 = vld [vmem:[%s10147_s2 + $0x2b8] sm:$0xff]  ;;  %v2054_v21 = vld [vmem:[%s6645_s8 + $0x1c0] sm:$0xff] }
 0x19c   : > { %v1082_v63 = vpop.f32.mrf.mxu1  ;;  %2760 = vmatpush.bf16.msrb.mxu0 %v5927_v51  ;;  %2838 = vmatpush.bf16.msrb.mxu2 %v5927_v51 }
 0x19d   : > { %v1083_v22 = vadd.f32 %v1082_v63, %v7548_v38  ;;  %1593 = vmatmul.bf16.gmra.mxu3 %v1277_v6  ;;  %1920 = vmatmul.bf16.gmra.mxu0 %v1784_v48  ;;  %v1668_v63 = vunpack.c.l.bf16 %v7511_v3  ;;  %v1279_v9 = vpack.c.bf16 %v1269_v28, %v1267_v57  ;;  %v10280_v57 = vld [vmem:[#allocation19_spill] sm:$0xff] }
 0x19f   : > { %v7796_v38 = vadd.f32 %v1083_v22, %v7662_v42  ;;  %1939 = vmatmul.bf16.gmra.mxu1 %v1779_v14  ;;  %v7809_v42 = vpack.c.bf16 %v7790_v40, %v7787_v39  ;;  %v7811_v22 = vpop.f32.mrf.mxu2 }
 0x1a0   : > { %v1145_v37 = vpop.f32.mrf.mxu3 }
 0x1a1   : > { %v1146_v45 = vadd.f32 %v1145_v37, %v7620_v1  ;;  %v1688_v1 = vsub.f32 %v7479_v59, %v1668_v63  ;;  %v2190_v37 = vunpack.c.l.b16 %v7805_v60  ;;  %v2192_v59 = vunpack.c.l.b16 %v7809_v42 }
 0x1a2   : > { %v7816_v17 = vpop.f32.mrf.mxu0 }
 0x1a3   : > { %v7821_v6 = vadd.f32 %v1146_v45, %v7579_v29  ;;  %v1706_v14 = vpack.c.bf16 %v1690_v12, %v1688_v1  ;;  %v5917_v29 = vld [vmem:[%s10147_s2 + $0x268] sm:$0xff]  ;;  %v2210_v62 = vpack.c.b16 %v2192_v59, %v2190_v37  ;;  %v2052_v1 = vld [vmem:[%s6645_s8 + $0x140] sm:$0xff]  ;;  %v10281_v37 = vld [vmem:[#allocation20_spill] sm:$0xff] }
 0x1a4   : > { %v1084_v48 = vpop.f32.mrf.mxu1  ;;  %2362 = vmatpush.bf16.msra.mxu1 %v5917_v29  ;;  %2440 = vmatpush.bf16.msrb.mxu3 %v5917_v29  ;;  %v5916_v12 = vld [vmem:[%s10147_s2 + $0x260] sm:$0xff]  ;;  %v7856_v28 = vmul.f32 %v10280_v57, %v2052_v1  ;;  %v1674_v1 = vunpack.c.l.bf16 %v7597_v23  ;;  %v5926_v57 = vld [vmem:[%s10147_s2 + $0x2b0] sm:$0xff] }
 0x1a5   : > { %v1085_v50 = vadd.f32 %v1084_v48, %v7599_v52  ;;  %v1767_v52 = vunpack.c.h.b16 %v7597_v23  ;;  %1983 = vmatmul.bf16.gmra.mxu2 %v1706_v14  ;;  %v2053_v14 = vld [vmem:[%s6645_s8 + $0x148] sm:$0xff]  ;;  %2761 = vmatpush.bf16.msrb.mxu0 %v5926_v57 }
 0x1a6   : > { %v7859_v59 = vmul.f32 %v10281_v37, %v2053_v14  ;;  %v1667_v14 = vunpack.c.h.bf16 %v7436_v26  ;;  %v1694_v26 = vsub.f32 %v7570_v20, %v1674_v1  ;;  %2839 = vmatpush.bf16.msrb.mxu2 %v5926_v57 }
 0x1a7   : > { %v7832_v63 = vadd.f32 %v1085_v50, %v7696_v49  ;;  %v7841_v31 = vpop.f32.mrf.mxu2  ;;  %v1781_v50 = vpack.c.b16 %v1767_v52, %v1765_v13  ;;  %v10282_v13 = vld [vmem:[#allocation22_spill] sm:$0xff] }
 0x1a8   : > { %v1147_v45 = vpop.f32.mrf.mxu3  ;;  %2363 = vmatpush.bf16.msra.mxu1 %v5916_v12  ;;  %2441 = vmatpush.bf16.msrb.mxu3 %v5916_v12  ;;  %v7862_v52 = vmul.f32 %v10282_v13, %v2054_v21  ;;  %v7880_v21 = vpack.c.bf16 %v7859_v59, %v7856_v28 }
 0x1a9   : > { %v1148_v49 = vadd.f32 %v1147_v45, %v7673_v11  ;;  %v10283_v45 = vld [vmem:[#allocation24_spill] sm:$0xff] }
 0x1aa   : > { %v7846_v48 = vpop.f32.mrf.mxu0  ;;  %v7865_v40 = vmul.f32 %v10283_v45, %v2055_v43  ;;  %v10285_v45 = vld [vmem:[#allocation17_spill] sm:$0xff] }
 0x1ab   : > { %v7852_v29 = vadd.f32 %v1148_v49, %v7609_v58  ;;  %v5915_v58 = vld [vmem:[%s10147_s2 + $0x258] sm:$0xff] }
 0x1ac   : > { %v1087_v51 = vpop.f32.mrf.mxu1  ;;  %10284 = vst [vmem:[#allocation23_spill] sm:$0xff] %v7865_v40  ;;  %2364 = vmatpush.bf16.msra.mxu1 %v5915_v58  ;;  %2442 = vmatpush.bf16.msrb.mxu3 %v5915_v58 }
 0x1ad   : > { %v1088_v11 = vadd.f32 %v1087_v51, %v7622_v24  ;;  %1598 = vmatmul.bf16.gmra.mxu3 %v1279_v9  ;;  %2334 = vmatmul.bf16.vlgmr.msra.gmra.mxu0 %v2210_v62  ;;  %v1665_v9 = vunpack.c.h.bf16 %v7432_v61  ;;  %v1672_v62 = vunpack.c.l.bf16 %v7593_v7  ;;  %v5914_v61 = vld [vmem:[%s10147_s2 + $0x250] sm:$0xff] }
 0x1af   : > { %v7871_v24 = vadd.f32 %v1088_v11, %v7741_v5  ;;  %1944 = vmatmul.bf16.gmra.mxu1 %v1781_v50  ;;  %v7884_v5 = vpack.c.bf16 %v7865_v40, %v7862_v52  ;;  %v7886_v50 = vpop.f32.mrf.mxu2  ;;  %v1685_v58 = vsub.f32 %v10285_v45, %v1665_v9  ;;  %v1771_v9 = vunpack.c.h.b16 %v7671_v41  ;;  %v2058_v45 = vld [vmem:[%s6645_s8 + $0x2c0] sm:$0xff] }
 0x1b0   : > { %v1150_v49 = vpop.f32.mrf.mxu3  ;;  %2365 = vmatpush.bf16.msra.mxu1 %v5914_v61  ;;  %2443 = vmatpush.bf16.msrb.mxu3 %v5914_v61 }
 0x1b1   : > { %v1151_v12 = vadd.f32 %v1150_v49, %v7699_v44  ;;  %v1692_v44 = vsub.f32 %v7558_v25, %v1672_v62  ;;  %v10286_v49 = vld [vmem:[#allocation18_spill] sm:$0xff]  ;;  %v2194_v25 = vunpack.c.l.b16 %v7880_v21  ;;  %v2196_v20 = vunpack.c.l.b16 %v7884_v5 }
 0x1b2   : > { %v7891_v43 = vpop.f32.mrf.mxu0  ;;  %v1687_v40 = vsub.f32 %v10286_v49, %v1667_v14 }
 0x1b3   : > { %v7896_v51 = vadd.f32 %v1151_v12, %v7656_v10  ;;  %v1708_v13 = vpack.c.bf16 %v1694_v26, %v1692_v44  ;;  %v5913_v10 = vld [vmem:[%s10147_s2 + $0x248] sm:$0xff]  ;;  %v2212_v61 = vpack.c.b16 %v2196_v20, %v2194_v25  ;;  %v2056_v44 = vld [vmem:[%s6645_s8 + $0x240] sm:$0xff] }
 0x1b4   : > { %v1089_v11 = vpop.f32.mrf.mxu1  ;;  %2366 = vmatpush.bf16.msra.mxu1 %v5913_v10  ;;  %2444 = vmatpush.bf16.msrb.mxu3 %v5913_v10  ;;  %v1705_v14 = vpack.c.bf16 %v1687_v40, %v1685_v58  ;;  %v7931_v40 = vmul.f32 %v7555_v54, %v2056_v44  ;;  %v10287_v58 = vld [vmem:[#allocation15_spill] sm:$0xff] }
 0x1b5   : > { %v1090_v37 = vadd.f32 %v1089_v11, %v7678_v2  ;;  %v1769_v2 = vunpack.c.h.b16 %v7667_v27  ;;  %1988 = vmatmul.bf16.gmra.mxu2 %v1708_v13  ;;  %v2059_v13 = vld [vmem:[%s6645_s8 + $0x2c8] sm:$0xff] }
 0x1b6   : > { %v10289_v20 = vld [vmem:[#allocation27_spill] sm:$0xff] }
 0x1b7   : > { %v7910_v62 = vadd.f32 %v1090_v37, %v7769_v56  ;;  %v7916_v26 = vpop.f32.mrf.mxu2  ;;  %v5912_v56 = vld [vmem:[%s10147_s2 + $0x240] sm:$0xff]  ;;  %v1783_v57 = vpack.c.b16 %v1771_v9, %v1769_v2  ;;  %v2057_v37 = vld [vmem:[%s6645_s8 + $0x248] sm:$0xff]  ;;  %v7937_v2 = vmul.f32 %v10289_v20, %v2058_v45  ;;  %v10290_v9 = vld [vmem:[#allocation28_spill] sm:$0xff] }
 0x1b8   : > { %v1152_v1 = vpop.f32.mrf.mxu3  ;;  %2367 = vmatpush.bf16.msra.mxu1 %v5912_v56  ;;  %2445 = vmatpush.bf16.msrb.mxu3 %v5912_v56  ;;  %v7934_v25 = vmul.f32 %v10287_v58, %v2057_v37  ;;  %v5925_v54 = vld [vmem:[%s10147_s2 + $0x2a8] sm:$0xff]  ;;  %v1671_v56 = vunpack.c.h.bf16 %v7515_v35  ;;  %v10292_v58 = vld [vmem:[#allocation21_spill] sm:$0xff] }
 0x1b9   : > { %v1153_v12 = vadd.f32 %v1152_v1, %v7752_v55  ;;  %v7940_v1 = vmul.f32 %v10290_v9, %v2059_v13  ;;  %2762 = vmatpush.bf16.msrb.mxu0 %v5925_v54  ;;  %2840 = vmatpush.bf16.msrb.mxu2 %v5925_v54  ;;  %v10293_v9 = vld [vmem:[#allocation25_spill] sm:$0xff] }
 0x1ba   : > { %v7921_v11 = vpop.f32.mrf.mxu0  ;;  %10288 = vst [vmem:[#allocation14_spill] sm:$0xff] %v7934_v25  ;;  %v1691_v54 = vsub.f32 %v10293_v9, %v1671_v56 }
 0x1bb   : > { %v7927_v49 = vadd.f32 %v1153_v12, %v7691_v33  ;;  %10291 = vst [vmem:[#allocation16_spill] sm:$0xff] %v7940_v1  ;;  %v1669_v12 = vunpack.c.h.bf16 %v7511_v3 }
 0x1bc   : > { %v1501_v10 = vpop.f32.mrf.mxu1 }
 0x1bd   : > { %v1502_v55 = vadd.f32 %v1501_v10, %v7704_v32  ;;  %2012 = vmatmul.bf16.vlgmr.msra.gmra.mxu3 %v1705_v14  ;;  %2339 = vmatmul.bf16.gmra.mxu0 %v2212_v61  ;;  %v1676_v14 = vunpack.c.l.bf16 %v7667_v27  ;;  %v1678_v61 = vunpack.c.l.bf16 %v7671_v41  ;;  %v1689_v20 = vsub.f32 %v10292_v58, %v1669_v12 }
 0x1bf   : > { %v7943_v33 = vadd.f32 %v1502_v55, %v7821_v6  ;;  %1949 = vmatmul.bf16.gmra.mxu1 %v1783_v57  ;;  %v7955_v6 = vpack.c.bf16 %v7934_v25, %v7931_v40  ;;  %v7959_v57 = vpack.c.bf16 %v7940_v1, %v7937_v2  ;;  %v7961_v37 = vpop.f32.mrf.mxu2  ;;  %v1696_v45 = vsub.f32 %v7632_v34, %v1676_v14 }
 0x1c0   : > { %v1155_v32 = vpop.f32.mrf.mxu3  ;;  %v1698_v13 = vsub.f32 %v7644_v53, %v1678_v61  ;;  %v1773_v53 = vunpack.c.h.b16 %v7746_v19  ;;  %v1707_v61 = vpack.c.bf16 %v1691_v54, %v1689_v20  ;;  %v10296_v20 = vld [vmem:[#allocation32_spill] sm:$0xff] }
 0x1c1   : > { %v1156_v44 = vadd.f32 %v1155_v32, %v7772_v18  ;;  %v2198_v32 = vunpack.c.l.b16 %v7955_v6  ;;  %v2200_v1 = vunpack.c.l.b16 %v7959_v57 }
 0x1c2   : > { %v7963_v3 = vpop.f32.mrf.mxu0  ;;  %v1710_v55 = vpack.c.bf16 %v1698_v13, %v1696_v45 }
 0x1c3   : > { %v7968_v18 = vadd.f32 %v1156_v44, %v7735_v30  ;;  %v1775_v30 = vunpack.c.h.b16 %v7750_v8  ;;  %v2214_v44 = vpack.c.b16 %v2200_v1, %v2198_v32  ;;  %v10297_v32 = vld [vmem:[#allocation33_spill] sm:$0xff] }
 0x1c4   : > { %v1503_v35 = vpop.f32.mrf.mxu1 }
 0x1c5   : > { %v1504_v10 = vadd.f32 %v1503_v35, %v7754_v0  ;;  %1993 = vmatmul.bf16.gmra.mxu2 %v1710_v55  ;;  %v5924_v0 = vld [vmem:[%s10147_s2 + $0x2a0] sm:$0xff]  ;;  %v1785_v13 = vpack.c.b16 %v1775_v30, %v1773_v53  ;;  %v2061_v35 = vld [vmem:[%s6645_s8 + $0x348] sm:$0xff]  ;;  %v1673_v30 = vunpack.c.h.bf16 %v7593_v7  ;;  %v5922_v7 = vld [vmem:[%s10147_s2 + $0x290] sm:$0xff] }
 0x1c6   : > { %2763 = vmatpush.bf16.msrb.mxu0 %v5924_v0  ;;  %2841 = vmatpush.bf16.msrb.mxu2 %v5924_v0  ;;  %v2063_v55 = vld [vmem:[%s6645_s8 + $0x3c8] sm:$0xff] }
 0x1c7   : > { %v7976_v34 = vadd.f32 %v1504_v10, %v7852_v29  ;;  %v2060_v29 = vld [vmem:[%s6645_s8 + $0x340] sm:$0xff]  ;;  %v7985_v56 = vpop.f32.mrf.mxu2  ;;  %v8006_v53 = vmul.f32 %v10297_v32, %v2063_v55 }
 0x1c8   : > { %v1157_v12 = vpop.f32.mrf.mxu3  ;;  %v2062_v10 = vld [vmem:[%s6645_s8 + $0x3c0] sm:$0xff]  ;;  %v7997_v0 = vmul.f32 %v7629_v16, %v2060_v29 }
 0x1c9   : > { %v1158_v14 = vadd.f32 %v1157_v12, %v7811_v22  ;;  %v10294_v22 = vld [vmem:[#allocation30_spill] sm:$0xff]  ;;  %v8003_v54 = vmul.f32 %v10296_v20, %v2062_v10  ;;  %10298 = vst [vmem:[#allocation20_spill] sm:$0xff] %v8006_v53  ;;  %v1680_v12 = vunpack.c.l.bf16 %v7746_v19 }
 0x1ca   : > { %v7987_v45 = vpop.f32.mrf.mxu0  ;;  %v8000_v1 = vmul.f32 %v10294_v22, %v2061_v35  ;;  %v10299_v35 = vld [vmem:[#allocation39_spill] sm:$0xff]  ;;  %v10300_v20 = vld [vmem:[#allocation26_spill] sm:$0xff] }
 0x1cb   : > { %v7993_v58 = vadd.f32 %v1158_v14, %v7764_v47  ;;  %v5923_v47 = vld [vmem:[%s10147_s2 + $0x298] sm:$0xff]  ;;  %v1682_v14 = vunpack.c.l.bf16 %v7750_v8  ;;  %v1693_v32 = vsub.f32 %v10300_v20, %v1673_v30  ;;  %v2193_v30 = vunpack.c.h.b16 %v7809_v42  ;;  %v2066_v20 = vld [vmem:[%s6645_s8 + $0x4c0] sm:$0xff] }
 0x1cc   : > { %v1506_v9 = vpop.f32.mrf.mxu1  ;;  %10295 = vst [vmem:[#allocation19_spill] sm:$0xff] %v8000_v1  ;;  %2764 = vmatpush.bf16.msrb.mxu0 %v5923_v47  ;;  %2842 = vmatpush.bf16.msrb.mxu2 %v5923_v47  ;;  %v8021_v29 = vpack.c.bf16 %v8000_v1, %v7997_v0  ;;  %v10301_v47 = vld [vmem:[#allocation29_spill] sm:$0xff] }
 0x1cd   : > { %v1507_v25 = vadd.f32 %v1506_v9, %v7774_v36  ;;  %2017 = vmatmul.bf16.gmra.mxu3 %v1707_v61  ;;  %2344 = vmatmul.bf16.gmra.mxu0 %v2214_v44  ;;  %v1675_v44 = vunpack.c.h.bf16 %v7597_v23  ;;  %v1702_v23 = vsub.f32 %v10299_v35, %v1682_v14 }
 0x1cf   : > { %v8012_v36 = vadd.f32 %v1507_v25, %v7896_v51  ;;  %1954 = vmatmul.bf16.gmra.mxu1 %v1785_v13  ;;  %v8025_v51 = vpack.c.bf16 %v8006_v53, %v8003_v54  ;;  %v8027_v25 = vpop.f32.mrf.mxu2  ;;  %v2202_v53 = vunpack.c.l.b16 %v8021_v29 }
 0x1d0   : > { %v1160_v16 = vpop.f32.mrf.mxu3  ;;  %2765 = vmatpush.bf16.msrb.mxu0 %v5922_v7  ;;  %2843 = vmatpush.bf16.msrb.mxu2 %v5922_v7 }
 0x1d1   : > { %v1161_v61 = vadd.f32 %v1160_v16, %v7841_v31  ;;  %v1700_v31 = vsub.f32 %v7714_v4, %v1680_v12  ;;  %v1695_v16 = vsub.f32 %v10301_v47, %v1675_v44  ;;  %v2204_v4 = vunpack.c.l.b16 %v8025_v51 }
 0x1d2   : > { %v8032_v13 = vpop.f32.mrf.mxu0 }
 0x1d3   : > { %v8037_v10 = vadd.f32 %v1161_v61, %v7796_v38  ;;  %v1712_v22 = vpack.c.bf16 %v1702_v23, %v1700_v31  ;;  %v5921_v38 = vld [vmem:[%s10147_s2 + $0x288] sm:$0xff]  ;;  %v1709_v44 = vpack.c.bf16 %v1695_v16, %v1693_v32  ;;  %v2216_v7 = vpack.c.b16 %v2204_v4, %v2202_v53  ;;  %v2064_v31 = vld [vmem:[%s6645_s8 + $0x440] sm:$0xff]  ;;  %v10303_v16 = vld [vmem:[#allocation36_spill] sm:$0xff] }
 0x1d4   : > { %v1508_v55 = vpop.f32.mrf.mxu1  ;;  %2766 = vmatpush.bf16.msrb.mxu0 %v5921_v38  ;;  %2844 = vmatpush.bf16.msrb.mxu2 %v5921_v38  ;;  %v10302_v53 = vld [vmem:[#allocation35_spill] sm:$0xff] }
 0x1d5   : > { %v1509_v9 = vadd.f32 %v1508_v55, %v7816_v17  ;;  %v2191_v17 = vunpack.c.h.b16 %v7805_v60  ;;  %1998 = vmatmul.bf16.gmra.mxu2 %v1712_v22  ;;  %v2067_v22 = vld [vmem:[%s6645_s8 + $0x4c8] sm:$0xff]  ;;  %v8069_v32 = vmul.f32 %v10302_v53, %v2064_v31  ;;  %v2098_v31 = vunpack.c.l.bf16 %v7805_v60 }
 0x1d6   : > { %v10308_v53 = vld [vmem:[#allocation31_spill] sm:$0xff] }
 0x1d7   : > { %v8048_v12 = vadd.f32 %v1509_v9, %v7927_v49  ;;  %v5920_v49 = vld [vmem:[%s10147_s2 + $0x280] sm:$0xff]  ;;  %v2211_v55 = vpack.c.b16 %v2193_v30, %v2191_v17  ;;  %v2065_v9 = vld [vmem:[%s6645_s8 + $0x448] sm:$0xff] }
 0x1d8   : > { %v1162_v14 = vpop.f32.mrf.mxu3  ;;  %v8054_v35 = vpop.f32.mrf.mxu2  ;;  %2767 = vmatpush.bf16.msrb.mxu0 %v5920_v49  ;;  %2845 = vmatpush.bf16.msrb.mxu2 %v5920_v49  ;;  %v8072_v4 = vmul.f32 %v10303_v16, %v2065_v9  ;;  %v10305_v17 = vld [vmem:[#allocation38_spill] sm:$0xff]  ;;  %v1679_v49 = vunpack.c.h.bf16 %v7671_v41 }
 0x1d9   : > { %v1163_v61 = vadd.f32 %v1162_v14, %v7886_v50  ;;  %v8075_v30 = vmul.f32 %v10305_v17, %v2066_v20  ;;  %v10306_v14 = vld [vmem:[#allocation40_spill] sm:$0xff]  ;;  %v10309_v17 = vld [vmem:[#allocation34_spill] sm:$0xff] }
 0x1da   : > { %v8059_v23 = vpop.f32.mrf.mxu0  ;;  %10304 = vst [vmem:[#allocation22_spill] sm:$0xff] %v8072_v4  ;;  %v8078_v1 = vmul.f32 %v10306_v14, %v2067_v22  ;;  %v8090_v9 = vpack.c.bf16 %v8072_v4, %v8069_v32  ;;  %v1699_v14 = vsub.f32 %v10309_v17, %v1679_v49  ;;  %v2482_v49 = vld [vmem:[%s6645_s8 + $0x50] sm:$0xff] }
 0x1db   : > { %v8065_v47 = vadd.f32 %v1163_v61, %v7832_v63 }
 0x1dc   : > { %v1511_v38 = vpop.f32.mrf.mxu1  ;;  %10307 = vst [vmem:[#allocation24_spill] sm:$0xff] %v8078_v1 }
 0x1dd   : > { %v1512_v50 = vadd.f32 %v1511_v38, %v7846_v48  ;;  %2022 = vmatmul.bf16.gmra.mxu3 %v1709_v44  ;;  %2349 = vmatmul.bf16.gmra.mxu0 %v2216_v7  ;;  %v1677_v48 = vunpack.c.h.bf16 %v7667_v27  ;;  %v2100_v44 = vunpack.c.l.bf16 %v7809_v42  ;;  %v2118_v27 = vsub.f32 %v7781_v15, %v2098_v31 }
 0x1de   : > { %v2197_v31 = vunpack.c.h.b16 %v7884_v5 }
 0x1df   : > { %v8081_v63 = vadd.f32 %v1512_v50, %v7968_v18  ;;  %2368 = vmatmul.bf16.vlgmr.msra.gmra.mxu1 %v2211_v55  ;;  %v8094_v18 = vpack.c.bf16 %v8078_v1, %v8075_v30  ;;  %v2120_v22 = vsub.f32 %v7787_v39, %v2100_v44  ;;  %v1697_v16 = vsub.f32 %v10308_v53, %v1677_v48  ;;  %v2485_v53 = vld [vmem:[%s6645_s8 + $0xd8] sm:$0xff] }
 0x1e0   : > { %v1165_v61 = vpop.f32.mrf.mxu3  ;;  %v8096_v55 = vpop.f32.mrf.mxu2  ;;  %v10315_v1 = vld [vmem:[#allocation37_spill] sm:$0xff] }
 0x1e1   : > { %v1166_v7 = vadd.f32 %v1165_v61, %v7916_v26  ;;  %v2138_v50 = vpack.c.bf16 %v2120_v22, %v2118_v27  ;;  %v2206_v61 = vunpack.c.l.b16 %v8090_v9  ;;  %v2208_v15 = vunpack.c.l.b16 %v8094_v18 }
 0x1e2   : > { %v8098_v20 = vpop.f32.mrf.mxu0  ;;  %v1711_v44 = vpack.c.bf16 %v1699_v14, %v1697_v16  ;;  %v8129_v16 = vld [vmem:[%s6637_s25] sm:$0xff] }
 0x1e3   : > { %v8103_v26 = vadd.f32 %v1166_v7, %v7871_v24  ;;  %v2195_v24 = vunpack.c.h.b16 %v7880_v21  ;;  %v2218_v7 = vpack.c.b16 %v2208_v15, %v2206_v61  ;;  %v8132_v14 = vmul.f32 %v8129_v16, %v2482_v49  ;;  %v8135_v61 = vld [vmem:[%s6637_s25 + $0x8] sm:$0xff] }
 0x1e4   : > { %v1513_v41 = vpop.f32.mrf.mxu1  ;;  %10310 = vst [vmem:[#allocation17_spill] sm:$0xff] %v8135_v61  ;;  %v2102_v49 = vunpack.c.l.bf16 %v7880_v21 }
 0x1e5   : > { %v1514_v38 = vadd.f32 %v1513_v41, %v7891_v43  ;;  %2412 = vmatmul.bf16.vlgmr.msra.gmra.mxu2 %v2138_v50  ;;  %v2483_v41 = vld [vmem:[%s6645_s8 + $0x58] sm:$0xff] }
 0x1e6   : > { %v8138_v15 = vmul.f32 %v8135_v61, %v2483_v41  ;;  %v2104_v41 = vunpack.c.l.bf16 %v7884_v5 }
 0x1e7   : > { %v8111_v39 = vadd.f32 %v1514_v38, %v7993_v58  ;;  %v2213_v58 = vpack.c.b16 %v2197_v31, %v2195_v24  ;;  %v2484_v38 = vld [vmem:[%s6645_s8 + $0xd0] sm:$0xff]  ;;  %v8147_v31 = vld [vmem:[%s6637_s25 + $0x18] sm:$0xff] }
 0x1e8   : > { %v1167_v43 = vpop.f32.mrf.mxu3  ;;  %v8117_v27 = vpop.f32.mrf.mxu2  ;;  %10311 = vst [vmem:[#allocation18_spill] sm:$0xff] %v8138_v15  ;;  %v8141_v24 = vld [vmem:[%s6637_s25 + $0x10] sm:$0xff] }
 0x1e9   : > { %v1168_v48 = vadd.f32 %v1167_v43, %v7961_v37  ;;  %10312 = vst [vmem:[#allocation15_spill] sm:$0xff] %v8141_v24  ;;  %v5935_v43 = vld [vmem:[%s10147_s2 + $0x2f8] sm:$0xff] }
 0x1ea   : > { %v8119_v22 = vpop.f32.mrf.mxu0  ;;  %10313 = vst [vmem:[#allocation27_spill] sm:$0xff] %v8147_v31  ;;  %2872 = vmatpush.bf16.msra.mxu3 %v5935_v43  ;;  %2794 = vmatpush.bf16.msrb.mxu1 %v5935_v43 }
 0x1eb   : > { %v8125_v17 = vadd.f32 %v1168_v48, %v7910_v62  ;;  %v8144_v62 = vmul.f32 %v8141_v24, %v2484_v38 }
 0x1ec   : > { %v1516_v50 = vpop.f32.mrf.mxu1 }
 0x1ed   : > { %v1517_v37 = vadd.f32 %v1516_v50, %v7921_v11  ;;  %2027 = vmatmul.bf16.gmra.mxu3 %v1711_v44  ;;  %2354 = vmatmul.bf16.gmra.mxu0 %v2218_v7  ;;  %v8150_v11 = vmul.f32 %v8147_v31, %v2485_v53  ;;  %v1681_v7 = vunpack.c.h.bf16 %v7746_v19  ;;  %v1683_v53 = vunpack.c.h.bf16 %v7750_v8  ;;  %v5934_v19 = vld [vmem:[%s10147_s2 + $0x2f0] sm:$0xff]  ;;  %v10316_v31 = vld [vmem:[#allocation41_spill] sm:$0xff] }
 0x1ee   : > { %v8165_v50 = vpack.c.bf16 %v8138_v15, %v8132_v14  ;;  %v2124_v8 = vsub.f32 %v7862_v52, %v2104_v41  ;;  %2795 = vmatpush.bf16.msrb.mxu1 %v5934_v19  ;;  %2873 = vmatpush.bf16.msra.mxu3 %v5934_v19  ;;  %v5933_v52 = vld [vmem:[%s10147_s2 + $0x2e8] sm:$0xff]  ;;  %v2486_v41 = vld [vmem:[%s6645_s8 + $0x150] sm:$0xff] }
 0x1ef   : > { %10314 = vst [vmem:[#allocation28_spill] sm:$0xff] %v8150_v11  ;;  %v8156_v48 = vadd.f32 %v1517_v37, %v8037_v10  ;;  %2373 = vmatmul.bf16.gmra.mxu1 %v2213_v58  ;;  %v8169_v10 = vpack.c.bf16 %v8150_v11, %v8144_v62  ;;  %v1701_v4 = vsub.f32 %v10315_v1, %v1681_v7  ;;  %v5943_v1 = vld [vmem:[%s10147_s2 + $0x338] sm:$0xff] }
 0x1f0   : > { %v1579_v44 = vpop.f32.mrf.mxu3  ;;  %v8171_v58 = vpop.f32.mrf.mxu2  ;;  %v1703_v24 = vsub.f32 %v10316_v31, %v1683_v53  ;;  %v2624_v61 = vunpack.c.l.b16 %v8165_v50  ;;  %3194 = vmatpush.bf16.msra.mxu0 %v5943_v1  ;;  %3272 = vmatpush.bf16.msra.mxu2 %v5943_v1  ;;  %v8234_v1 = vld [vmem:[%s6637_s25 + $0x38] sm:$0xff] }
 0x1f1   : > { %v1580_v38 = vadd.f32 %v1579_v44, %v7985_v56  ;;  %v2122_v56 = vsub.f32 %v7856_v28, %v2102_v49  ;;  %v2626_v28 = vunpack.c.l.b16 %v8169_v10  ;;  %v2199_v49 = vunpack.c.h.b16 %v7955_v6  ;;  %10320 = vst [vmem:[#allocation32_spill] sm:$0xff] %v8234_v1 }
 0x1f2   : > { %v8176_v37 = vpop.f32.mrf.mxu0  ;;  %2796 = vmatpush.bf16.msrb.mxu1 %v5933_v52  ;;  %2874 = vmatpush.bf16.msra.mxu3 %v5933_v52  ;;  %v8222_v52 = vld [vmem:[%s6637_s25 + $0x28] sm:$0xff] }
 0x1f3   : > { %v8181_v43 = vadd.f32 %v1580_v38, %v7943_v33  ;;  %v2140_v15 = vpack.c.bf16 %v2124_v8, %v2122_v56  ;;  %v2644_v7 = vpack.c.b16 %v2626_v28, %v2624_v61  ;;  %v2487_v56 = vld [vmem:[%s6645_s8 + $0x158] sm:$0xff]  ;;  %v2488_v8 = vld [vmem:[%s6645_s8 + $0x1d0] sm:$0xff]  ;;  %10317 = vst [vmem:[#allocation21_spill] sm:$0xff] %v8222_v52 }
 0x1f4   : > { %v1518_v44 = vpop.f32.mrf.mxu1 }
 0x1f5   : > { %v1519_v11 = vadd.f32 %v1518_v44, %v7963_v3  ;;  %v2201_v3 = vunpack.c.h.b16 %v7959_v57  ;;  %2417 = vmatmul.bf16.gmra.mxu2 %v2140_v15  ;;  %v5932_v15 = vld [vmem:[%s10147_s2 + $0x2e0] sm:$0xff]  ;;  %v2489_v44 = vld [vmem:[%s6645_s8 + $0x1d8] sm:$0xff] }
 0x1f6   : > { %2797 = vmatpush.bf16.msrb.mxu1 %v5932_v15  ;;  %2875 = vmatpush.bf16.msra.mxu3 %v5932_v15  ;;  %v2108_v15 = vunpack.c.l.bf16 %v7959_v57 }
 0x1f7   : > { %v8192_v33 = vadd.f32 %v1519_v11, %v8065_v47  ;;  %v1713_v11 = vpack.c.bf16 %v1703_v24, %v1701_v4  ;;  %v2215_v19 = vpack.c.b16 %v2201_v3, %v2199_v49  ;;  %v8216_v24 = vld [vmem:[%s6637_s25 + $0x20] sm:$0xff]  ;;  %v8225_v49 = vmul.f32 %v8222_v52, %v2487_v56  ;;  %v8228_v3 = vld [vmem:[%s6637_s25 + $0x30] sm:$0xff] }
 0x1f8   : > { %v1581_v31 = vpop.f32.mrf.mxu3  ;;  %v8201_v38 = vpop.f32.mrf.mxu2  ;;  %v8219_v28 = vmul.f32 %v8216_v24, %v2486_v41  ;;  %10319 = vst [vmem:[#allocation30_spill] sm:$0xff] %v8228_v3  ;;  %v2106_v41 = vunpack.c.l.bf16 %v7955_v6 }
 0x1f9   : > { %v1582_v47 = vadd.f32 %v1581_v31, %v8027_v25  ;;  %10318 = vst [vmem:[#allocation25_spill] sm:$0xff] %v8225_v49  ;;  %v5931_v31 = vld [vmem:[%s10147_s2 + $0x2d8] sm:$0xff] }
 0x1fa   : > { %v8206_v53 = vpop.f32.mrf.mxu0  ;;  %2798 = vmatpush.bf16.msrb.mxu1 %v5931_v31  ;;  %2876 = vmatpush.bf16.msra.mxu3 %v5931_v31 }
 0x1fb   : > { %v8212_v25 = vadd.f32 %v1582_v47, %v7976_v34  ;;  %v8231_v34 = vmul.f32 %v8228_v3, %v2488_v8  ;;  %v2101_v8 = vunpack.c.h.bf16 %v7809_v42  ;;  %v2128_v42 = vsub.f32 %v7937_v2, %v2108_v15  ;;  %v10322_v3 = vld [vmem:[#allocation42_spill] sm:$0xff] }
 0x1fc   : > { %v1521_v4 = vpop.f32.mrf.mxu1 }
 0x1fd   : > { %v1522_v61 = vadd.f32 %v1521_v4, %v7987_v45  ;;  %2032 = vmatmul.bf16.gmra.mxu3 %v1713_v11  ;;  %2768 = vmatmul.bf16.vlgmr.msrb.gmra.mxu0 %v2644_v7  ;;  %v8237_v45 = vmul.f32 %v8234_v1, %v2489_v44  ;;  %v2099_v7 = vunpack.c.h.bf16 %v7805_v60  ;;  %v8252_v44 = vpack.c.bf16 %v8225_v49, %v8219_v28  ;;  %v5930_v60 = vld [vmem:[%s10147_s2 + $0x2d0] sm:$0xff] }
 0x1fe   : > { %2799 = vmatpush.bf16.msrb.mxu1 %v5930_v60  ;;  %2877 = vmatpush.bf16.msra.mxu3 %v5930_v60  ;;  %v2121_v52 = vsub.f32 %v10322_v3, %v2101_v8  ;;  %v2490_v8 = vld [vmem:[%s6645_s8 + $0x250] sm:$0xff] }
 0x1ff   : > { %10321 = vst [vmem:[#allocation33_spill] sm:$0xff] %v8237_v45  ;;  %v8243_v47 = vadd.f32 %v1522_v61, %v8103_v26  ;;  %2378 = vmatmul.bf16.gmra.mxu1 %v2215_v19  ;;  %v8256_v26 = vpack.c.bf16 %v8237_v45, %v8231_v34  ;;  %v2119_v1 = vsub.f32 %v7784_v46, %v2099_v7  ;;  %v2203_v46 = vunpack.c.h.b16 %v8021_v29 }
 0x200   : > { %v1584_v11 = vpop.f32.mrf.mxu3  ;;  %v8258_v19 = vpop.f32.mrf.mxu2 }
 0x201   : > { %v1585_v56 = vadd.f32 %v1584_v11, %v8054_v35  ;;  %v2126_v35 = vsub.f32 %v7931_v40, %v2106_v41  ;;  %v5942_v11 = vld [vmem:[%s10147_s2 + $0x330] sm:$0xff]  ;;  %v2628_v40 = vunpack.c.l.b16 %v8252_v44  ;;  %v2630_v2 = vunpack.c.l.b16 %v8256_v26 }
 0x202   : > { %v8263_v4 = vpop.f32.mrf.mxu0  ;;  %3195 = vmatpush.bf16.msra.mxu0 %v5942_v11  ;;  %3273 = vmatpush.bf16.msra.mxu2 %v5942_v11  ;;  %v2139_v15 = vpack.c.bf16 %v2121_v52, %v2119_v1  ;;  %v8303_v11 = vld [vmem:[%s6637_s25 + $0x40] sm:$0xff] }
 0x203   : > { %v8268_v61 = vadd.f32 %v1585_v56, %v8012_v36  ;;  %v2142_v49 = vpack.c.bf16 %v2128_v42, %v2126_v35  ;;  %v5929_v36 = vld [vmem:[%s10147_s2 + $0x2c8] sm:$0xff]  ;;  %v2646_v56 = vpack.c.b16 %v2630_v2, %v2628_v40  ;;  %v2491_v35 = vld [vmem:[%s6645_s8 + $0x258] sm:$0xff]  ;;  %v2492_v42 = vld [vmem:[%s6645_s8 + $0x2d0] sm:$0xff]  ;;  %v8306_v40 = vmul.f32 %v8303_v11, %v2490_v8 }
 0x204   : > { %v1523_v31 = vpop.f32.mrf.mxu1  ;;  %2800 = vmatpush.bf16.msrb.mxu1 %v5929_v36  ;;  %2878 = vmatpush.bf16.msra.mxu3 %v5929_v36  ;;  %v8309_v2 = vld [vmem:[%s6637_s25 + $0x48] sm:$0xff]  ;;  %v2110_v8 = vunpack.c.l.bf16 %v8021_v29 }
 0x205   : > { %v1524_v45 = vadd.f32 %v1523_v31, %v8032_v13  ;;  %v2205_v13 = vunpack.c.h.b16 %v8025_v51  ;;  %2422 = vmatmul.bf16.gmra.mxu2 %v2142_v49  ;;  %v2493_v31 = vld [vmem:[%s6645_s8 + $0x2d8] sm:$0xff]  ;;  %10323 = vst [vmem:[#allocation39_spill] sm:$0xff] %v8309_v2  ;;  %v8312_v36 = vmul.f32 %v8309_v2, %v2491_v35 }
 0x207   : > { %v8282_v41 = vadd.f32 %v1524_v45, %v8125_v17  ;;  %v5928_v17 = vld [vmem:[%s10147_s2 + $0x2c0] sm:$0xff]  ;;  %v2217_v49 = vpack.c.b16 %v2205_v13, %v2203_v46  ;;  %10324 = vst [vmem:[#allocation26_spill] sm:$0xff] %v8312_v36  ;;  %v8315_v46 = vld [vmem:[%s6637_s25 + $0x50] sm:$0xff]  ;;  %v8321_v13 = vld [vmem:[%s6637_s25 + $0x58] sm:$0xff] }
 0x208   : > { %v1586_v3 = vpop.f32.mrf.mxu3  ;;  %v8288_v60 = vpop.f32.mrf.mxu2  ;;  %2801 = vmatpush.bf16.msrb.mxu1 %v5928_v17  ;;  %2879 = vmatpush.bf16.msra.mxu3 %v5928_v17  ;;  %10325 = vst [vmem:[#allocation29_spill] sm:$0xff] %v8315_v46  ;;  %v2112_v17 = vunpack.c.l.bf16 %v8025_v51 }
 0x209   : > { %v1587_v7 = vadd.f32 %v1586_v3, %v8096_v55  ;;  %10326 = vst [vmem:[#allocation35_spill] sm:$0xff] %v8321_v13 }
 0x20a   : > { %v8293_v45 = vpop.f32.mrf.mxu0 }
 0x20b   : > { %v8299_v55 = vadd.f32 %v1587_v7, %v8048_v12  ;;  %v8318_v12 = vmul.f32 %v8315_v46, %v2492_v42  ;;  %v5941_v7 = vld [vmem:[%s10147_s2 + $0x328] sm:$0xff]  ;;  %v2105_v42 = vunpack.c.h.bf16 %v7884_v5 }
 0x20c   : > { %v1935_v52 = vpop.f32.mrf.mxu1  ;;  %3196 = vmatpush.bf16.msra.mxu0 %v5941_v7  ;;  %3274 = vmatpush.bf16.msra.mxu2 %v5941_v7 }
 0x20d   : > { %v1936_v1 = vadd.f32 %v1935_v52, %v8059_v23  ;;  %2446 = vmatmul.bf16.vlgmr.msrb.gmra.mxu3 %v2139_v15  ;;  %2773 = vmatmul.bf16.gmra.mxu0 %v2646_v56  ;;  %v8324_v23 = vmul.f32 %v8321_v13, %v2493_v31  ;;  %v2103_v56 = vunpack.c.h.bf16 %v7880_v21  ;;  %v2130_v52 = vsub.f32 %v7997_v0, %v2110_v8  ;;  %v2494_v8 = vld [vmem:[%s6645_s8 + $0x350] sm:$0xff] }
 0x20f   : > { %10327 = vst [vmem:[#allocation36_spill] sm:$0xff] %v8324_v23  ;;  %v8327_v3 = vadd.f32 %v1936_v1, %v8181_v43  ;;  %2383 = vmatmul.bf16.gmra.mxu1 %v2217_v49  ;;  %v8339_v43 = vpack.c.bf16 %v8312_v36, %v8306_v40  ;;  %v8343_v49 = vpack.c.bf16 %v8324_v23, %v8318_v12  ;;  %v10328_v23 = vld [vmem:[#allocation23_spill] sm:$0xff] }
 0x210   : > { %v1589_v15 = vpop.f32.mrf.mxu3  ;;  %v8345_v31 = vpop.f32.mrf.mxu2  ;;  %v2132_v1 = vsub.f32 %v8003_v54, %v2112_v17  ;;  %v2123_v36 = vsub.f32 %v7859_v59, %v2103_v56  ;;  %v2125_v13 = vsub.f32 %v10328_v23, %v2105_v42  ;;  %v2207_v54 = vunpack.c.h.b16 %v8090_v9  ;;  %v5940_v59 = vld [vmem:[%s10147_s2 + $0x320] sm:$0xff] }
 0x211   : > { %v1590_v35 = vadd.f32 %v1589_v15, %v8117_v27  ;;  %v2632_v46 = vunpack.c.l.b16 %v8339_v43  ;;  %v2634_v2 = vunpack.c.l.b16 %v8343_v49  ;;  %3197 = vmatpush.bf16.msra.mxu0 %v5940_v59  ;;  %3275 = vmatpush.bf16.msra.mxu2 %v5940_v59  ;;  %v5939_v59 = vld [vmem:[%s10147_s2 + $0x318] sm:$0xff] }
 0x212   : > { %v8347_v21 = vpop.f32.mrf.mxu0  ;;  %v2144_v15 = vpack.c.bf16 %v2132_v1, %v2130_v52  ;;  %v2141_v56 = vpack.c.bf16 %v2125_v13, %v2123_v36  ;;  %v2495_v52 = vld [vmem:[%s6645_s8 + $0x358] sm:$0xff]  ;;  %v2496_v1 = vld [vmem:[%s6645_s8 + $0x3d0] sm:$0xff]  ;;  %v8381_v36 = vld [vmem:[%s6637_s25 + $0x60] sm:$0xff] }
 0x213   : > { %v8352_v27 = vadd.f32 %v1590_v35, %v8081_v63  ;;  %v2209_v63 = vunpack.c.h.b16 %v8094_v18  ;;  %10329 = vst [vmem:[#allocation38_spill] sm:$0xff] %v8381_v36 }
 0x214   : > { %v1937_v5 = vpop.f32.mrf.mxu1 }
 0x215   : > { %v1938_v7 = vadd.f32 %v1937_v5, %v8098_v20  ;;  %2427 = vmatmul.bf16.gmra.mxu2 %v2144_v15  ;;  %v2219_v42 = vpack.c.b16 %v2209_v63, %v2207_v54  ;;  %v2497_v5 = vld [vmem:[%s6645_s8 + $0x3d8] sm:$0xff]  ;;  %v8393_v54 = vld [vmem:[%s6637_s25 + $0x70] sm:$0xff]  ;;  %3198 = vmatpush.bf16.msra.mxu0 %v5939_v59 }
 0x216   : > { %10332 = vst [vmem:[#allocation34_spill] sm:$0xff] %v8393_v54  ;;  %v8399_v63 = vld [vmem:[%s6637_s25 + $0x78] sm:$0xff]  ;;  %3276 = vmatpush.bf16.msra.mxu2 %v5939_v59 }
 0x217   : > { %v8360_v0 = vadd.f32 %v1938_v7, %v8212_v25  ;;  %v2648_v25 = vpack.c.b16 %v2634_v2, %v2632_v46  ;;  %v8384_v2 = vmul.f32 %v8381_v36, %v2494_v8  ;;  %v8387_v46 = vld [vmem:[%s6637_s25 + $0x68] sm:$0xff]  ;;  %10333 = vst [vmem:[#allocation37_spill] sm:$0xff] %v8399_v63  ;;  %v2116_v8 = vunpack.c.l.bf16 %v8094_v18 }
 0x218   : > { %v1591_v20 = vpop.f32.mrf.mxu3  ;;  %v8369_v17 = vpop.f32.mrf.mxu2  ;;  %10330 = vst [vmem:[#allocation40_spill] sm:$0xff] %v8387_v46  ;;  %v8390_v13 = vmul.f32 %v8387_v46, %v2495_v52 }
 0x219   : > { %v1592_v23 = vadd.f32 %v1591_v20, %v8171_v58 }
 0x21a   : > { %v8371_v35 = vpop.f32.mrf.mxu0  ;;  %10331 = vst [vmem:[#allocation31_spill] sm:$0xff] %v8390_v13 }
 0x21b   : > { %v8377_v7 = vadd.f32 %v1592_v23, %v8111_v39  ;;  %v8396_v39 = vmul.f32 %v8393_v54, %v2496_v1  ;;  %v2109_v1 = vunpack.c.h.bf16 %v7959_v57  ;;  %v2136_v57 = vsub.f32 %v8075_v30, %v2116_v8  ;;  %v10336_v54 = vld [vmem:[#allocation16_spill] sm:$0xff]  ;;  %v5937_v30 = vld [vmem:[%s10147_s2 + $0x308] sm:$0xff] }
 0x21c   : > { %v1940_v15 = vpop.f32.mrf.mxu1 }
 0x21d   : > { %v1941_v58 = vadd.f32 %v1940_v15, %v8119_v22  ;;  %2451 = vmatmul.bf16.gmra.mxu3 %v2141_v56  ;;  %2778 = vmatmul.bf16.gmra.mxu0 %v2648_v25  ;;  %v8402_v22 = vmul.f32 %v8399_v63, %v2497_v5  ;;  %v2107_v56 = vunpack.c.h.bf16 %v7955_v6  ;;  %v2114_v25 = vunpack.c.l.bf16 %v8090_v9  ;;  %v5938_v6 = vld [vmem:[%s10147_s2 + $0x310] sm:$0xff] }
 0x21e   : > { %v8417_v5 = vpack.c.bf16 %v8390_v13, %v8384_v2  ;;  %3199 = vmatpush.bf16.msra.mxu0 %v5938_v6  ;;  %3277 = vmatpush.bf16.msra.mxu2 %v5938_v6  ;;  %v10335_v13 = vld [vmem:[#allocation14_spill] sm:$0xff]  ;;  %v2129_v46 = vsub.f32 %v10336_v54, %v2109_v1 }
 0x21f   : > { %10334 = vst [vmem:[#allocation41_spill] sm:$0xff] %v8402_v22  ;;  %v8408_v20 = vadd.f32 %v1941_v58, %v8268_v61  ;;  %2388 = vmatmul.bf16.gmra.mxu1 %v2219_v42  ;;  %v8421_v61 = vpack.c.bf16 %v8402_v22, %v8396_v39  ;;  %v2127_v63 = vsub.f32 %v10335_v13, %v2107_v56  ;;  %v2627_v13 = vunpack.c.h.b16 %v8169_v10 }
 0x220   : > { %v1594_v23 = vpop.f32.mrf.mxu3  ;;  %v8423_v42 = vpop.f32.mrf.mxu2  ;;  %v2636_v36 = vunpack.c.l.b16 %v8417_v5 }
 0x221   : > { %v1595_v52 = vadd.f32 %v1594_v23, %v8201_v38  ;;  %v2134_v38 = vsub.f32 %v8069_v32, %v2114_v25  ;;  %v2638_v32 = vunpack.c.l.b16 %v8421_v61  ;;  %v2143_v25 = vpack.c.bf16 %v2129_v46, %v2127_v63  ;;  %v8465_v63 = vld [vmem:[%s6637_s25 + $0x80] sm:$0xff] }
 0x222   : > { %v8428_v15 = vpop.f32.mrf.mxu0  ;;  %3200 = vmatpush.bf16.msra.mxu0 %v5937_v30  ;;  %3278 = vmatpush.bf16.msra.mxu2 %v5937_v30  ;;  %10337 = vst [vmem:[#allocation42_spill] sm:$0xff] %v8465_v63 }
 0x223   : > { %v8433_v58 = vadd.f32 %v1595_v52, %v8156_v48  ;;  %v2146_v22 = vpack.c.bf16 %v2136_v57, %v2134_v38  ;;  %v2650_v8 = vpack.c.b16 %v2638_v32, %v2636_v36  ;;  %v2498_v52 = vld [vmem:[%s6645_s8 + $0x450] sm:$0xff]  ;;  %v2499_v38 = vld [vmem:[%s6645_s8 + $0x458] sm:$0xff]  ;;  %v8471_v32 = vld [vmem:[%s6637_s25 + $0x88] sm:$0xff] }
 0x224   : > { %v1942_v59 = vpop.f32.mrf.mxu1  ;;  %v2500_v57 = vld [vmem:[%s6645_s8 + $0x4d0] sm:$0xff]  ;;  %10338 = vst [vmem:[#allocation23_spill] sm:$0xff] %v8471_v32  ;;  %v8474_v30 = vmul.f32 %v8471_v32, %v2499_v38  ;;  %v2113_v38 = vunpack.c.h.bf16 %v8025_v51 }
 0x225   : > { %v1943_v23 = vadd.f32 %v1942_v59, %v8176_v37  ;;  %v2625_v37 = vunpack.c.h.b16 %v8165_v50  ;;  %2432 = vmatmul.bf16.gmra.mxu2 %v2146_v22  ;;  %v2501_v59 = vld [vmem:[%s6645_s8 + $0x4d8] sm:$0xff] }
 0x226   : > { %10339 = vst [vmem:[#allocation14_spill] sm:$0xff] %v8474_v30 }
 0x227   : > { %v8444_v48 = vadd.f32 %v1943_v23, %v8299_v55  ;;  %v5936_v55 = vld [vmem:[%s10147_s2 + $0x300] sm:$0xff]  ;;  %v2645_v22 = vpack.c.b16 %v2627_v13, %v2625_v37  ;;  %v8468_v23 = vmul.f32 %v8465_v63, %v2498_v52  ;;  %v8477_v37 = vld [vmem:[%s6637_s25 + $0x90] sm:$0xff]  ;;  %v8483_v13 = vld [vmem:[%s6637_s25 + $0x98] sm:$0xff]  ;;  %v2534_v52 = vunpack.c.l.bf16 %v8169_v10 }
 0x228   : > { %v1596_v54 = vpop.f32.mrf.mxu3  ;;  %v8450_v1 = vpop.f32.mrf.mxu2  ;;  %3201 = vmatpush.bf16.msra.mxu0 %v5936_v55  ;;  %3279 = vmatpush.bf16.msra.mxu2 %v5936_v55  ;;  %10340 = vst [vmem:[#allocation16_spill] sm:$0xff] %v8477_v37 }
 0x229   : > { %v1597_v56 = vadd.f32 %v1596_v54, %v8258_v19  ;;  %10342 = vst [vmem:[#allocation44_spill] sm:$0xff] %v8483_v13 }
 0x22a   : > { %v8455_v6 = vpop.f32.mrf.mxu0 }
 0x22b   : > { %v8461_v19 = vadd.f32 %v1597_v56, %v8192_v33  ;;  %v8480_v33 = vmul.f32 %v8477_v37, %v2500_v57  ;;  %v8498_v57 = vpack.c.bf16 %v8474_v30, %v8468_v23  ;;  %v10344_v30 = vld [vmem:[#allocation19_spill] sm:$0xff] }
 0x22c   : > { %v1945_v36 = vpop.f32.mrf.mxu1 }
 0x22d   : > { %v1946_v46 = vadd.f32 %v1945_v36, %v8206_v53  ;;  %2456 = vmatmul.bf16.gmra.mxu3 %v2143_v25  ;;  %2783 = vmatmul.bf16.gmra.mxu0 %v2650_v8  ;;  %10341 = vst [vmem:[#allocation43_spill] sm:$0xff] %v8480_v33  ;;  %v8486_v53 = vmul.f32 %v8483_v13, %v2501_v59  ;;  %v2111_v25 = vunpack.c.h.bf16 %v8021_v29  ;;  %v2532_v8 = vunpack.c.l.bf16 %v8165_v50 }
 0x22e   : > { %v2554_v36 = vsub.f32 %v8144_v62, %v2534_v52  ;;  %v2640_v32 = vunpack.c.l.b16 %v8498_v57 }
 0x22f   : > { %10343 = vst [vmem:[#allocation45_spill] sm:$0xff] %v8486_v53  ;;  %v8489_v54 = vadd.f32 %v1946_v46, %v8352_v27  ;;  %2802 = vmatmul.bf16.vlgmr.msrb.gmra.mxu1 %v2645_v22  ;;  %v8502_v27 = vpack.c.bf16 %v8486_v53, %v8480_v33  ;;  %v2552_v29 = vsub.f32 %v8132_v14, %v2532_v8  ;;  %v10345_v53 = vld [vmem:[#allocation20_spill] sm:$0xff]  ;;  %v2631_v8 = vunpack.c.h.b16 %v8256_v26 }
 0x230   : > { %v1599_v56 = vpop.f32.mrf.mxu3  ;;  %v8504_v22 = vpop.f32.mrf.mxu2  ;;  %v2131_v13 = vsub.f32 %v10344_v30, %v2111_v25  ;;  %v2133_v37 = vsub.f32 %v10345_v53, %v2113_v38  ;;  %v2916_v53 = vld [vmem:[%s6645_s8 + $0x60] sm:$0xff] }
 0x231   : > { %v1600_v55 = vadd.f32 %v1599_v56, %v8288_v60  ;;  %v2572_v56 = vpack.c.bf16 %v2554_v36, %v2552_v29  ;;  %v2642_v14 = vunpack.c.l.b16 %v8502_v27  ;;  %v2917_v36 = vld [vmem:[%s6645_s8 + $0x68] sm:$0xff]  ;;  %v8537_v33 = vmul.f32 %v8129_v16, %v2916_v53 }
 0x232   : > { %v8506_v59 = vpop.f32.mrf.mxu0  ;;  %v2145_v25 = vpack.c.bf16 %v2133_v37, %v2131_v13  ;;  %v10347_v37 = vld [vmem:[#allocation15_spill] sm:$0xff] }
 0x233   : > { %v8511_v60 = vadd.f32 %v1600_v55, %v8243_v47  ;;  %v2629_v47 = vunpack.c.h.b16 %v8252_v44  ;;  %v2652_v52 = vpack.c.b16 %v2642_v14, %v2640_v32  ;;  %v10348_v14 = vld [vmem:[#allocation27_spill] sm:$0xff] }
 0x234   : > { %v1947_v51 = vpop.f32.mrf.mxu1 }
 0x235   : > { %v1948_v46 = vadd.f32 %v1947_v51, %v8263_v4  ;;  %2846 = vmatmul.bf16.vlgmr.msrb.gmra.mxu2 %v2572_v56  ;;  %v2647_v29 = vpack.c.b16 %v2631_v8, %v2629_v47  ;;  %v2918_v51 = vld [vmem:[%s6645_s8 + $0xe0] sm:$0xff]  ;;  %v2536_v8 = vunpack.c.l.bf16 %v8252_v44 }
 0x236   : > { %v8543_v13 = vmul.f32 %v10347_v37, %v2918_v51 }
 0x237   : > { %v8519_v62 = vadd.f32 %v1948_v46, %v8377_v7  ;;  %v2919_v7 = vld [vmem:[%s6645_s8 + $0xe8] sm:$0xff] }
 0x238   : > { %v1601_v4 = vpop.f32.mrf.mxu3  ;;  %v8525_v55 = vpop.f32.mrf.mxu2  ;;  %v8546_v47 = vmul.f32 %v10348_v14, %v2919_v7  ;;  %v10350_v14 = vld [vmem:[#allocation24_spill] sm:$0xff] }
 0x239   : > { %v1602_v30 = vadd.f32 %v1601_v4, %v8345_v31  ;;  %v10346_v31 = vld [vmem:[#allocation17_spill] sm:$0xff]  ;;  %v2538_v4 = vunpack.c.l.bf16 %v8256_v26 }
 0x23a   : > { %v8527_v38 = vpop.f32.mrf.mxu0  ;;  %v8540_v32 = vmul.f32 %v10346_v31, %v2917_v36  ;;  %v10349_v31 = vld [vmem:[#allocation22_spill] sm:$0xff] }
 0x23b   : > { %v8533_v46 = vadd.f32 %v1602_v30, %v8282_v41  ;;  %v5951_v41 = vld [vmem:[%s10147_s2 + $0x378] sm:$0xff] }
 0x23c   : > { %v1950_v63 = vpop.f32.mrf.mxu1  ;;  %3306 = vmatpush.bf16.msrb.mxu3 %v5951_v41  ;;  %3228 = vmatpush.bf16.msra.mxu1 %v5951_v41 }
 0x23d   : > { %v1951_v56 = vadd.f32 %v1950_v63, %v8293_v45  ;;  %2461 = vmatmul.bf16.gmra.mxu3 %v2145_v25  ;;  %2788 = vmatmul.bf16.gmra.mxu0 %v2652_v52  ;;  %v2115_v63 = vunpack.c.h.bf16 %v8090_v9  ;;  %v2117_v25 = vunpack.c.h.bf16 %v8094_v18  ;;  %v8561_v52 = vpack.c.bf16 %v8540_v32, %v8537_v33  ;;  %v5950_v9 = vld [vmem:[%s10147_s2 + $0x370] sm:$0xff] }
 0x23e   : > { %v2558_v18 = vsub.f32 %v8231_v34, %v2538_v4  ;;  %v5949_v34 = vld [vmem:[%s10147_s2 + $0x368] sm:$0xff] }
 0x23f   : > { %v8552_v45 = vadd.f32 %v1951_v56, %v8433_v58  ;;  %2807 = vmatmul.bf16.gmra.mxu1 %v2647_v29  ;;  %v8565_v58 = vpack.c.bf16 %v8546_v47, %v8543_v13  ;;  %v2135_v37 = vsub.f32 %v10349_v31, %v2115_v63  ;;  %v2137_v41 = vsub.f32 %v10350_v14, %v2117_v25  ;;  %v5959_v63 = vld [vmem:[%s10147_s2 + $0x3b8] sm:$0xff]  ;;  %v2922_v31 = vld [vmem:[%s6645_s8 + $0x1e0] sm:$0xff]  ;;  %v2923_v14 = vld [vmem:[%s6645_s8 + $0x1e8] sm:$0xff] }
 0x240   : > { %v2013_v16 = vpop.f32.mrf.mxu3  ;;  %v8567_v53 = vpop.f32.mrf.mxu2  ;;  %3229 = vmatpush.bf16.msra.mxu1 %v5950_v9  ;;  %3307 = vmatpush.bf16.msrb.mxu3 %v5950_v9  ;;  %v2920_v9 = vld [vmem:[%s6645_s8 + $0x160] sm:$0xff] }
 0x241   : > { %v2014_v30 = vadd.f32 %v2013_v16, %v8369_v17  ;;  %v2556_v17 = vsub.f32 %v8219_v28, %v2536_v8  ;;  %v3058_v16 = vunpack.c.l.b16 %v8561_v52  ;;  %v3060_v28 = vunpack.c.l.b16 %v8565_v58  ;;  %3628 = vmatpush.bf16.msrb.mxu0 %v5959_v63  ;;  %3706 = vmatpush.bf16.msrb.mxu2 %v5959_v63 }
 0x242   : > { %v8572_v29 = vpop.f32.mrf.mxu0  ;;  %v2633_v8 = vunpack.c.h.b16 %v8339_v43 }
 0x243   : > { %v8577_v36 = vadd.f32 %v2014_v30, %v8327_v3  ;;  %v2574_v56 = vpack.c.bf16 %v2558_v18, %v2556_v17  ;;  %v2147_v30 = vpack.c.bf16 %v2137_v41, %v2135_v37  ;;  %v3078_v25 = vpack.c.b16 %v3060_v28, %v3058_v16  ;;  %v5948_v18 = vld [vmem:[%s10147_s2 + $0x360] sm:$0xff]  ;;  %v10351_v41 = vld [vmem:[#allocation21_spill] sm:$0xff] }
 0x244   : > { %v1952_v51 = vpop.f32.mrf.mxu1  ;;  %3230 = vmatpush.bf16.msra.mxu1 %v5949_v34  ;;  %3308 = vmatpush.bf16.msrb.mxu3 %v5949_v34  ;;  %v8612_v37 = vmul.f32 %v8216_v24, %v2920_v9  ;;  %v10353_v28 = vld [vmem:[#allocation30_spill] sm:$0xff] }
 0x245   : > { %v1953_v7 = vadd.f32 %v1952_v51, %v8347_v21  ;;  %v2635_v21 = vunpack.c.h.b16 %v8343_v49  ;;  %2851 = vmatmul.bf16.gmra.mxu2 %v2574_v56  ;;  %v2921_v56 = vld [vmem:[%s6645_s8 + $0x168] sm:$0xff] }
 0x246   : > { %v8615_v16 = vmul.f32 %v10351_v41, %v2921_v56 }
 0x247   : > { %v8588_v3 = vadd.f32 %v1953_v7, %v8461_v19  ;;  %v2649_v7 = vpack.c.b16 %v2635_v21, %v2633_v8  ;;  %v8618_v8 = vmul.f32 %v10353_v28, %v2922_v31  ;;  %v10354_v21 = vld [vmem:[#allocation32_spill] sm:$0xff] }
 0x248   : > { %v2015_v4 = vpop.f32.mrf.mxu3  ;;  %v8597_v17 = vpop.f32.mrf.mxu2  ;;  %3231 = vmatpush.bf16.msra.mxu1 %v5948_v18  ;;  %3309 = vmatpush.bf16.msrb.mxu3 %v5948_v18  ;;  %10352 = vst [vmem:[#allocation19_spill] sm:$0xff] %v8615_v16  ;;  %v2535_v18 = vunpack.c.h.bf16 %v8169_v10  ;;  %v8636_v56 = vpack.c.bf16 %v8615_v16, %v8612_v37 }
 0x249   : > { %v2016_v19 = vadd.f32 %v2015_v4, %v8423_v42  ;;  %v8621_v4 = vmul.f32 %v10354_v21, %v2923_v14  ;;  %v10356_v21 = vld [vmem:[#allocation18_spill] sm:$0xff] }
 0x24a   : > { %v8602_v51 = vpop.f32.mrf.mxu0 }
 0x24b   : > { %v8608_v34 = vadd.f32 %v2016_v19, %v8360_v0  ;;  %10355 = vst [vmem:[#allocation20_spill] sm:$0xff] %v8621_v4  ;;  %v5947_v0 = vld [vmem:[%s10147_s2 + $0x358] sm:$0xff]  ;;  %v2533_v19 = vunpack.c.h.bf16 %v8165_v50  ;;  %v5946_v50 = vld [vmem:[%s10147_s2 + $0x350] sm:$0xff] }
 0x24c   : > { %v1955_v63 = vpop.f32.mrf.mxu1  ;;  %3232 = vmatpush.bf16.msra.mxu1 %v5947_v0  ;;  %3310 = vmatpush.bf16.msrb.mxu3 %v5947_v0 }
 0x24d   : > { %v1956_v42 = vadd.f32 %v1955_v63, %v8371_v35  ;;  %2466 = vmatmul.bf16.gmra.mxu3 %v2147_v30  ;;  %3202 = vmatmul.bf16.vlgmr.msra.gmra.mxu0 %v3078_v25  ;;  %v2540_v30 = vunpack.c.l.bf16 %v8339_v43  ;;  %v2542_v25 = vunpack.c.l.bf16 %v8343_v49  ;;  %v2553_v0 = vsub.f32 %v10356_v21, %v2533_v19  ;;  %v2926_v21 = vld [vmem:[%s6645_s8 + $0x2e0] sm:$0xff] }
 0x24e   : > { %v2639_v19 = vunpack.c.h.b16 %v8421_v61 }
 0x24f   : > { %v8627_v35 = vadd.f32 %v1956_v42, %v8511_v60  ;;  %2812 = vmatmul.bf16.gmra.mxu1 %v2649_v7  ;;  %v8640_v60 = vpack.c.bf16 %v8621_v4, %v8618_v8  ;;  %v2562_v10 = vsub.f32 %v8318_v12, %v2542_v25  ;;  %v5958_v42 = vld [vmem:[%s10147_s2 + $0x3b0] sm:$0xff] }
 0x250   : > { %v2018_v24 = vpop.f32.mrf.mxu3  ;;  %v8642_v7 = vpop.f32.mrf.mxu2  ;;  %3233 = vmatpush.bf16.msra.mxu1 %v5946_v50  ;;  %3311 = vmatpush.bf16.msrb.mxu3 %v5946_v50 }
 0x251   : > { %v2019_v9 = vadd.f32 %v2018_v24, %v8450_v1  ;;  %v2560_v1 = vsub.f32 %v8306_v40, %v2540_v30  ;;  %v10357_v24 = vld [vmem:[#allocation28_spill] sm:$0xff]  ;;  %v3062_v40 = vunpack.c.l.b16 %v8636_v56  ;;  %v3064_v12 = vunpack.c.l.b16 %v8640_v60  ;;  %3629 = vmatpush.bf16.msrb.mxu0 %v5958_v42  ;;  %3707 = vmatpush.bf16.msrb.mxu2 %v5958_v42 }
 0x252   : > { %v8647_v31 = vpop.f32.mrf.mxu0  ;;  %v2555_v4 = vsub.f32 %v10357_v24, %v2535_v18 }
 0x253   : > { %v8652_v14 = vadd.f32 %v2019_v9, %v8408_v20  ;;  %v2576_v28 = vpack.c.bf16 %v2562_v10, %v2560_v1  ;;  %v5945_v20 = vld [vmem:[%s10147_s2 + $0x348] sm:$0xff]  ;;  %v3080_v50 = vpack.c.b16 %v3064_v12, %v3062_v40  ;;  %v2924_v1 = vld [vmem:[%s6645_s8 + $0x260] sm:$0xff]  ;;  %v10360_v12 = vld [vmem:[#allocation29_spill] sm:$0xff] }
 0x254   : > { %v1957_v63 = vpop.f32.mrf.mxu1  ;;  %3234 = vmatpush.bf16.msra.mxu1 %v5945_v20  ;;  %3312 = vmatpush.bf16.msrb.mxu3 %v5945_v20  ;;  %v2573_v18 = vpack.c.bf16 %v2555_v4, %v2553_v0  ;;  %v8687_v4 = vmul.f32 %v8303_v11, %v2924_v1  ;;  %v10358_v0 = vld [vmem:[#allocation39_spill] sm:$0xff] }
 0x255   : > { %v1958_v41 = vadd.f32 %v1957_v63, %v8428_v15  ;;  %v2637_v15 = vunpack.c.h.b16 %v8417_v5  ;;  %2856 = vmatmul.bf16.gmra.mxu2 %v2576_v28  ;;  %v2927_v28 = vld [vmem:[%s6645_s8 + $0x2e8] sm:$0xff] }
 0x256   : > { %v5957_v11 = vld [vmem:[%s10147_s2 + $0x3a8] sm:$0xff] }
 0x257   : > { %v8666_v30 = vadd.f32 %v1958_v41, %v8533_v46  ;;  %v5944_v46 = vld [vmem:[%s10147_s2 + $0x340] sm:$0xff]  ;;  %v2651_v42 = vpack.c.b16 %v2639_v19, %v2637_v15  ;;  %v2925_v41 = vld [vmem:[%s6645_s8 + $0x268] sm:$0xff]  ;;  %v8693_v15 = vmul.f32 %v10360_v12, %v2926_v21  ;;  %3630 = vmatpush.bf16.msrb.mxu0 %v5957_v11  ;;  %3708 = vmatpush.bf16.msrb.mxu2 %v5957_v11 }
 0x258   : > { %v2020_v25 = vpop.f32.mrf.mxu3  ;;  %v8672_v10 = vpop.f32.mrf.mxu2  ;;  %3235 = vmatpush.bf16.msra.mxu1 %v5944_v46  ;;  %3313 = vmatpush.bf16.msrb.mxu3 %v5944_v46  ;;  %v8690_v40 = vmul.f32 %v10358_v0, %v2925_v41  ;;  %v10361_v19 = vld [vmem:[#allocation35_spill] sm:$0xff]  ;;  %v2539_v46 = vunpack.c.h.bf16 %v8256_v26  ;;  %v10363_v0 = vld [vmem:[#allocation25_spill] sm:$0xff] }
 0x259   : > { %v2021_v9 = vadd.f32 %v2020_v25, %v8504_v22  ;;  %v8696_v25 = vmul.f32 %v10361_v19, %v2927_v28  ;;  %v10364_v19 = vld [vmem:[#allocation33_spill] sm:$0xff] }
 0x25a   : > { %v8677_v63 = vpop.f32.mrf.mxu0  ;;  %10359 = vst [vmem:[#allocation17_spill] sm:$0xff] %v8690_v40  ;;  %v2559_v11 = vsub.f32 %v10364_v19, %v2539_v46 }
 0x25b   : > { %v8683_v24 = vadd.f32 %v2021_v9, %v8444_v48  ;;  %10362 = vst [vmem:[#allocation15_spill] sm:$0xff] %v8696_v25  ;;  %v2537_v9 = vunpack.c.h.bf16 %v8252_v44 }
 0x25c   : > { %v2369_v20 = vpop.f32.mrf.mxu1 }
 0x25d   : > { %v2370_v22 = vadd.f32 %v2369_v20, %v8455_v6  ;;  %2880 = vmatmul.bf16.vlgmr.msra.gmra.mxu3 %v2573_v18  ;;  %3207 = vmatmul.bf16.gmra.mxu0 %v3080_v50  ;;  %v2544_v18 = vunpack.c.l.bf16 %v8417_v5  ;;  %v2546_v50 = vunpack.c.l.bf16 %v8421_v61  ;;  %v2557_v12 = vsub.f32 %v10363_v0, %v2537_v9 }
 0x25f   : > { %v8699_v48 = vadd.f32 %v2370_v22, %v8577_v36  ;;  %2817 = vmatmul.bf16.gmra.mxu1 %v2651_v42  ;;  %v8711_v36 = vpack.c.bf16 %v8690_v40, %v8687_v4  ;;  %v8715_v42 = vpack.c.bf16 %v8696_v25, %v8693_v15  ;;  %v2564_v21 = vsub.f32 %v8384_v2, %v2544_v18 }
 0x260   : > { %v2023_v6 = vpop.f32.mrf.mxu3  ;;  %v8717_v41 = vpop.f32.mrf.mxu2  ;;  %v2566_v28 = vsub.f32 %v8396_v39, %v2546_v50  ;;  %v2641_v39 = vunpack.c.h.b16 %v8498_v57  ;;  %v2575_v50 = vpack.c.bf16 %v2559_v11, %v2557_v12  ;;  %v10368_v12 = vld [vmem:[#allocation34_spill] sm:$0xff] }
 0x261   : > { %v2024_v1 = vadd.f32 %v2023_v6, %v8525_v55  ;;  %v3066_v6 = vunpack.c.l.b16 %v8711_v36  ;;  %v3068_v25 = vunpack.c.l.b16 %v8715_v42 }
 0x262   : > { %v8719_v44 = vpop.f32.mrf.mxu0  ;;  %v2578_v22 = vpack.c.bf16 %v2566_v28, %v2564_v21 }
 0x263   : > { %v8724_v55 = vadd.f32 %v2024_v1, %v8489_v54  ;;  %v2643_v54 = vunpack.c.h.b16 %v8502_v27  ;;  %v3082_v1 = vpack.c.b16 %v3068_v25, %v3066_v6  ;;  %v10369_v6 = vld [vmem:[#allocation37_spill] sm:$0xff] }
 0x264   : > { %v2371_v26 = vpop.f32.mrf.mxu1 }
 0x265   : > { %v2372_v20 = vadd.f32 %v2371_v26, %v8506_v59  ;;  %2861 = vmatmul.bf16.gmra.mxu2 %v2578_v22  ;;  %v5956_v59 = vld [vmem:[%s10147_s2 + $0x3a0] sm:$0xff]  ;;  %v2653_v28 = vpack.c.b16 %v2643_v54, %v2641_v39  ;;  %v2929_v26 = vld [vmem:[%s6645_s8 + $0x368] sm:$0xff] }
 0x266   : > { %3631 = vmatpush.bf16.msrb.mxu0 %v5956_v59  ;;  %3709 = vmatpush.bf16.msrb.mxu2 %v5956_v59  ;;  %v2931_v22 = vld [vmem:[%s6645_s8 + $0x3e8] sm:$0xff]  ;;  %v10365_v59 = vld [vmem:[#allocation38_spill] sm:$0xff] }
 0x267   : > { %v8732_v2 = vadd.f32 %v2372_v20, %v8608_v34  ;;  %v2928_v34 = vld [vmem:[%s6645_s8 + $0x360] sm:$0xff]  ;;  %v8762_v39 = vmul.f32 %v10369_v6, %v2931_v22 }
 0x268   : > { %v2025_v9 = vpop.f32.mrf.mxu3  ;;  %v8741_v46 = vpop.f32.mrf.mxu2  ;;  %v2930_v20 = vld [vmem:[%s6645_s8 + $0x3e0] sm:$0xff]  ;;  %v8753_v16 = vmul.f32 %v10365_v59, %v2928_v34  ;;  %v2543_v34 = vunpack.c.h.bf16 %v8343_v49 }
 0x269   : > { %v2026_v18 = vadd.f32 %v2025_v9, %v8567_v53  ;;  %v10366_v53 = vld [vmem:[#allocation40_spill] sm:$0xff]  ;;  %v8759_v11 = vmul.f32 %v10368_v12, %v2930_v20  ;;  %10370 = vst [vmem:[#allocation22_spill] sm:$0xff] %v8762_v39  ;;  %v2541_v9 = vunpack.c.h.bf16 %v8339_v43  ;;  %v10371_v20 = vld [vmem:[#allocation43_spill] sm:$0xff]  ;;  %v10372_v12 = vld [vmem:[#allocation26_spill] sm:$0xff] }
 0x26a   : > { %v8743_v21 = vpop.f32.mrf.mxu0  ;;  %v8756_v25 = vmul.f32 %v10366_v53, %v2929_v26  ;;  %v5954_v43 = vld [vmem:[%s10147_s2 + $0x390] sm:$0xff] }
 0x26b   : > { %v8749_v0 = vadd.f32 %v2026_v18, %v8519_v62  ;;  %v5955_v62 = vld [vmem:[%s10147_s2 + $0x398] sm:$0xff]  ;;  %v2548_v18 = vunpack.c.l.bf16 %v8498_v57  ;;  %v2561_v6 = vsub.f32 %v10372_v12, %v2541_v9  ;;  %v3061_v9 = vunpack.c.h.b16 %v8565_v58  ;;  %v2934_v12 = vld [vmem:[%s6645_s8 + $0x4e0] sm:$0xff] }
 0x26c   : > { %v2374_v19 = vpop.f32.mrf.mxu1  ;;  %10367 = vst [vmem:[#allocation27_spill] sm:$0xff] %v8756_v25  ;;  %3632 = vmatpush.bf16.msrb.mxu0 %v5955_v62  ;;  %3710 = vmatpush.bf16.msrb.mxu2 %v5955_v62  ;;  %v8777_v26 = vpack.c.bf16 %v8756_v25, %v8753_v16  ;;  %v10373_v62 = vld [vmem:[#allocation36_spill] sm:$0xff] }
 0x26d   : > { %v2375_v40 = vadd.f32 %v2374_v19, %v8527_v38  ;;  %2885 = vmatmul.bf16.gmra.mxu3 %v2575_v50  ;;  %3212 = vmatmul.bf16.gmra.mxu0 %v3082_v1  ;;  %v2550_v50 = vunpack.c.l.bf16 %v8502_v27 }
 0x26f   : > { %v8768_v38 = vadd.f32 %v2375_v40, %v8652_v14  ;;  %2822 = vmatmul.bf16.gmra.mxu1 %v2653_v28  ;;  %v8781_v14 = vpack.c.bf16 %v8762_v39, %v8759_v11  ;;  %v2570_v49 = vsub.f32 %v10371_v20, %v2550_v50  ;;  %v3070_v39 = vunpack.c.l.b16 %v8777_v26 }
 0x270   : > { %v2028_v54 = vpop.f32.mrf.mxu3  ;;  %v8783_v40 = vpop.f32.mrf.mxu2  ;;  %3633 = vmatpush.bf16.msrb.mxu0 %v5954_v43  ;;  %3711 = vmatpush.bf16.msrb.mxu2 %v5954_v43 }
 0x271   : > { %v2029_v1 = vadd.f32 %v2028_v54, %v8597_v17  ;;  %v2568_v17 = vsub.f32 %v8468_v23, %v2548_v18  ;;  %v2563_v54 = vsub.f32 %v10373_v62, %v2543_v34  ;;  %v3072_v23 = vunpack.c.l.b16 %v8781_v14 }
 0x272   : > { %v8788_v28 = vpop.f32.mrf.mxu0 }
 0x273   : > { %v8793_v22 = vadd.f32 %v2029_v1, %v8552_v45  ;;  %v2580_v53 = vpack.c.bf16 %v2570_v49, %v2568_v17  ;;  %v5953_v45 = vld [vmem:[%s10147_s2 + $0x388] sm:$0xff]  ;;  %v2577_v34 = vpack.c.bf16 %v2563_v54, %v2561_v6  ;;  %v3084_v43 = vpack.c.b16 %v3072_v23, %v3070_v39  ;;  %v2932_v17 = vld [vmem:[%s6645_s8 + $0x460] sm:$0xff] }
 0x274   : > { %v2376_v19 = vpop.f32.mrf.mxu1  ;;  %3634 = vmatpush.bf16.msrb.mxu0 %v5953_v45  ;;  %3712 = vmatpush.bf16.msrb.mxu2 %v5953_v45  ;;  %v10374_v39 = vld [vmem:[#allocation42_spill] sm:$0xff]  ;;  %v10375_v54 = vld [vmem:[#allocation23_spill] sm:$0xff] }
 0x275   : > { %v2377_v59 = vadd.f32 %v2376_v19, %v8572_v29  ;;  %v3059_v29 = vunpack.c.h.b16 %v8561_v52  ;;  %2866 = vmatmul.bf16.gmra.mxu2 %v2580_v53  ;;  %v2935_v53 = vld [vmem:[%s6645_s8 + $0x4e8] sm:$0xff]  ;;  %v8825_v6 = vmul.f32 %v10374_v39, %v2932_v17  ;;  %v2966_v17 = vunpack.c.l.bf16 %v8561_v52 }
 0x276   : > { %v10379_v39 = vld [vmem:[#allocation31_spill] sm:$0xff] }
 0x277   : > { %v8804_v18 = vadd.f32 %v2377_v59, %v8683_v24  ;;  %v5952_v24 = vld [vmem:[%s10147_s2 + $0x380] sm:$0xff]  ;;  %v3079_v19 = vpack.c.b16 %v3061_v9, %v3059_v29  ;;  %v2933_v59 = vld [vmem:[%s6645_s8 + $0x468] sm:$0xff]  ;;  %v10376_v29 = vld [vmem:[#allocation16_spill] sm:$0xff] }
 0x278   : > { %v2030_v50 = vpop.f32.mrf.mxu3  ;;  %v8810_v20 = vpop.f32.mrf.mxu2  ;;  %3635 = vmatpush.bf16.msrb.mxu0 %v5952_v24  ;;  %3713 = vmatpush.bf16.msrb.mxu2 %v5952_v24  ;;  %v8828_v23 = vmul.f32 %v10375_v54, %v2933_v59  ;;  %v8831_v9 = vmul.f32 %v10376_v29, %v2934_v12  ;;  %v2547_v24 = vunpack.c.h.bf16 %v8421_v61  ;;  %v10380_v29 = vld [vmem:[#allocation41_spill] sm:$0xff] }
 0x279   : > { %v2031_v1 = vadd.f32 %v2030_v50, %v8642_v7  ;;  %v10377_v50 = vld [vmem:[#allocation44_spill] sm:$0xff] }
 0x27a   : > { %v8815_v49 = vpop.f32.mrf.mxu0  ;;  %v8834_v25 = vmul.f32 %v10377_v50, %v2935_v53  ;;  %v8846_v59 = vpack.c.bf16 %v8828_v23, %v8825_v6  ;;  %v2567_v50 = vsub.f32 %v10380_v29, %v2547_v24  ;;  %v3350_v24 = vld [vmem:[%s6645_s8 + $0x70] sm:$0xff] }
 0x27b   : > { %v8821_v62 = vadd.f32 %v2031_v1, %v8588_v3 }
 0x27c   : > { %v2379_v45 = vpop.f32.mrf.mxu1  ;;  %10378 = vst [vmem:[#allocation24_spill] sm:$0xff] %v8834_v25 }
 0x27d   : > { %v2380_v7 = vadd.f32 %v2379_v45, %v8602_v51  ;;  %2890 = vmatmul.bf16.gmra.mxu3 %v2577_v34  ;;  %3217 = vmatmul.bf16.gmra.mxu0 %v3084_v43  ;;  %v2545_v51 = vunpack.c.h.bf16 %v8417_v5  ;;  %v2968_v34 = vunpack.c.l.bf16 %v8565_v58  ;;  %v2986_v5 = vsub.f32 %v8537_v33, %v2966_v17 }
 0x27e   : > { %v3065_v17 = vunpack.c.h.b16 %v8640_v60 }
 0x27f   : > { %v8837_v3 = vadd.f32 %v2380_v7, %v8724_v55  ;;  %3236 = vmatmul.bf16.vlgmr.msra.gmra.mxu1 %v3079_v19  ;;  %v8850_v55 = vpack.c.bf16 %v8834_v25, %v8831_v9  ;;  %v2988_v53 = vsub.f32 %v8543_v13, %v2968_v34  ;;  %v2565_v54 = vsub.f32 %v10379_v39, %v2545_v51  ;;  %v3353_v39 = vld [vmem:[%s6645_s8 + $0xf8] sm:$0xff] }
 0x280   : > { %v2033_v1 = vpop.f32.mrf.mxu3  ;;  %v8852_v19 = vpop.f32.mrf.mxu2 }
 0x281   : > { %v2034_v43 = vadd.f32 %v2033_v1, %v8672_v10  ;;  %v3006_v7 = vpack.c.bf16 %v2988_v53, %v2986_v5  ;;  %v3074_v1 = vunpack.c.l.b16 %v8846_v59  ;;  %v3076_v33 = vunpack.c.l.b16 %v8850_v55 }
 0x282   : > { %v8854_v12 = vpop.f32.mrf.mxu0  ;;  %v2579_v34 = vpack.c.bf16 %v2567_v50, %v2565_v54  ;;  %v6203_v54 = vld [vmem:[%s6637_s25] sm:$0xff] }
 0x283   : > { %v8859_v10 = vadd.f32 %v2034_v43, %v8627_v35  ;;  %v3063_v35 = vunpack.c.h.b16 %v8636_v56  ;;  %v3086_v43 = vpack.c.b16 %v3076_v33, %v3074_v1  ;;  %v8885_v50 = vmul.f32 %v6203_v54, %v3350_v24  ;;  %v6204_v1 = vld [vmem:[%s6637_s25 + $0x8] sm:$0xff] }
 0x284   : > { %v2381_v61 = vpop.f32.mrf.mxu1  ;;  %v2972_v24 = vunpack.c.l.bf16 %v8640_v60 }
 0x285   : > { %v2382_v45 = vadd.f32 %v2381_v61, %v8647_v31  ;;  %3280 = vmatmul.bf16.vlgmr.msra.gmra.mxu2 %v3006_v7  ;;  %v3351_v61 = vld [vmem:[%s6645_s8 + $0x78] sm:$0xff] }
 0x286   : > { %v8888_v33 = vmul.f32 %v6204_v1, %v3351_v61 }
 0x287   : > { %v8867_v13 = vadd.f32 %v2382_v45, %v8749_v0  ;;  %v3081_v0 = vpack.c.b16 %v3065_v17, %v3063_v35  ;;  %v3352_v45 = vld [vmem:[%s6645_s8 + $0xf0] sm:$0xff]  ;;  %v6206_v35 = vld [vmem:[%s6637_s25 + $0x18] sm:$0xff] }
 0x288   : > { %v2035_v31 = vpop.f32.mrf.mxu3  ;;  %v8873_v5 = vpop.f32.mrf.mxu2  ;;  %10381 = vst [vmem:[#allocation21_spill] sm:$0xff] %v8888_v33  ;;  %v8894_v17 = vmul.f32 %v6206_v35, %v3353_v39  ;;  %v8909_v39 = vpack.c.bf16 %v8888_v33, %v8885_v50  ;;  %v10383_v35 = vld [vmem:[#allocation14_spill] sm:$0xff] }
 0x289   : > { %v2036_v51 = vadd.f32 %v2035_v31, %v8717_v41  ;;  %v6205_v31 = vld [vmem:[%s6637_s25 + $0x10] sm:$0xff] }
 0x28a   : > { %v8875_v53 = vpop.f32.mrf.mxu0  ;;  %v8891_v25 = vmul.f32 %v6205_v31, %v3352_v45  ;;  %10382 = vst [vmem:[#allocation30_spill] sm:$0xff] %v8894_v17  ;;  %v2551_v45 = vunpack.c.h.bf16 %v8502_v27  ;;  %v2992_v27 = vsub.f32 %v8618_v8, %v2972_v24  ;;  %v3492_v33 = vunpack.c.l.b16 %v8909_v39  ;;  %v5965_v8 = vld [vmem:[%s10147_s2 + $0x3e8] sm:$0xff] }
 0x28b   : > { %v8881_v29 = vadd.f32 %v2036_v51, %v8666_v30  ;;  %v5967_v30 = vld [vmem:[%s10147_s2 + $0x3f8] sm:$0xff] }
 0x28c   : > { %v2384_v7 = vpop.f32.mrf.mxu1  ;;  %3740 = vmatpush.bf16.msra.mxu3 %v5967_v30  ;;  %5987 = vmatpush.bf16.msrb.mxu1 %v5967_v30 }
 0x28d   : > { %v2385_v41 = vadd.f32 %v2384_v7, %v8677_v63  ;;  %2895 = vmatmul.bf16.gmra.mxu3 %v2579_v34  ;;  %3222 = vmatmul.bf16.gmra.mxu0 %v3086_v43  ;;  %v2549_v34 = vunpack.c.h.bf16 %v8498_v57  ;;  %v2970_v43 = vunpack.c.l.bf16 %v8636_v56  ;;  %v5966_v57 = vld [vmem:[%s10147_s2 + $0x3f0] sm:$0xff] }
 0x28e   : > { %3662 = vmatpush.bf16.msra.mxu0 %v5967_v30 }
 0x28f   : > { %v8900_v63 = vadd.f32 %v2385_v41, %v8793_v22  ;;  %3241 = vmatmul.bf16.gmra.mxu1 %v3081_v0  ;;  %v8913_v22 = vpack.c.bf16 %v8894_v17, %v8891_v25  ;;  %v2569_v30 = vsub.f32 %v10383_v35, %v2549_v34  ;;  %v3069_v34 = vunpack.c.h.b16 %v8715_v42  ;;  %v3357_v35 = vld [vmem:[%s6645_s8 + $0x1f8] sm:$0xff] }
 0x290   : > { %v2447_v51 = vpop.f32.mrf.mxu3  ;;  %v8915_v0 = vpop.f32.mrf.mxu2  ;;  %5988 = vmatpush.bf16.msrb.mxu1 %v5966_v57  ;;  %3741 = vmatpush.bf16.msra.mxu3 %v5966_v57 }
 0x291   : > { %v2448_v61 = vadd.f32 %v2447_v51, %v8741_v46  ;;  %v2990_v46 = vsub.f32 %v8612_v37, %v2970_v43  ;;  %v10384_v51 = vld [vmem:[#allocation45_spill] sm:$0xff]  ;;  %v3494_v37 = vunpack.c.l.b16 %v8913_v22 }
 0x292   : > { %v8920_v7 = vpop.f32.mrf.mxu0  ;;  %3663 = vmatpush.bf16.msra.mxu0 %v5966_v57  ;;  %v2571_v17 = vsub.f32 %v10384_v51, %v2551_v45  ;;  %v3354_v57 = vld [vmem:[%s6645_s8 + $0x170] sm:$0xff] }
 0x293   : > { %v8925_v41 = vadd.f32 %v2448_v61, %v8699_v48  ;;  %v3008_v31 = vpack.c.bf16 %v2992_v27, %v2990_v46  ;;  %v3512_v45 = vpack.c.b16 %v3494_v37, %v3492_v33  ;;  %v5964_v46 = vld [vmem:[%s10147_s2 + $0x3e0] sm:$0xff]  ;;  %v6208_v37 = vld [vmem:[%s6637_s25 + $0x28] sm:$0xff] }
 0x294   : > { %v2386_v54 = vpop.f32.mrf.mxu1  ;;  %5989 = vmatpush.bf16.msrb.mxu1 %v5965_v8  ;;  %3742 = vmatpush.bf16.msra.mxu3 %v5965_v8  ;;  %v2581_v61 = vpack.c.bf16 %v2571_v17, %v2569_v30  ;;  %v6207_v30 = vld [vmem:[%s6637_s25 + $0x20] sm:$0xff] }
 0x295   : > { %v2387_v1 = vadd.f32 %v2386_v54, %v8719_v44  ;;  %v3067_v44 = vunpack.c.h.b16 %v8711_v36  ;;  %3285 = vmatmul.bf16.gmra.mxu2 %v3008_v31  ;;  %v3356_v31 = vld [vmem:[%s6645_s8 + $0x1f0] sm:$0xff]  ;;  %v8957_v51 = vmul.f32 %v6207_v30, %v3354_v57  ;;  %v2974_v57 = vunpack.c.l.bf16 %v8711_v36 }
 0x296   : > { %3664 = vmatpush.bf16.msra.mxu0 %v5965_v8 }
 0x297   : > { %v8936_v48 = vadd.f32 %v2387_v1, %v8821_v62  ;;  %v3083_v54 = vpack.c.b16 %v3069_v34, %v3067_v44  ;;  %v3355_v1 = vld [vmem:[%s6645_s8 + $0x178] sm:$0xff]  ;;  %v6209_v44 = vld [vmem:[%s6637_s25 + $0x30] sm:$0xff] }
 0x298   : > { %v2449_v43 = vpop.f32.mrf.mxu3  ;;  %v8942_v62 = vpop.f32.mrf.mxu2  ;;  %5990 = vmatpush.bf16.msrb.mxu1 %v5964_v46  ;;  %3743 = vmatpush.bf16.msra.mxu3 %v5964_v46  ;;  %v8960_v8 = vmul.f32 %v6208_v37, %v3355_v1  ;;  %v8963_v34 = vmul.f32 %v6209_v44, %v3356_v31  ;;  %v2969_v31 = vunpack.c.h.bf16 %v8565_v58 }
 0x299   : > { %v2450_v24 = vadd.f32 %v2449_v43, %v8783_v40  ;;  %v6210_v43 = vld [vmem:[%s6637_s25 + $0x38] sm:$0xff] }
 0x29a   : > { %v8947_v27 = vpop.f32.mrf.mxu0  ;;  %3665 = vmatpush.bf16.msra.mxu0 %v5964_v46  ;;  %v2976_v46 = vunpack.c.l.bf16 %v8715_v42 }
 0x29b   : > { %v8953_v40 = vadd.f32 %v2450_v24, %v8732_v2  ;;  %v8966_v2 = vmul.f32 %v6210_v43, %v3357_v35  ;;  %v5963_v24 = vld [vmem:[%s10147_s2 + $0x3d8] sm:$0xff]  ;;  %v8981_v35 = vpack.c.bf16 %v8960_v8, %v8957_v51 }
 0x29c   : > { %v2389_v33 = vpop.f32.mrf.mxu1  ;;  %5991 = vmatpush.bf16.msrb.mxu1 %v5963_v24  ;;  %3744 = vmatpush.bf16.msra.mxu3 %v5963_v24  ;;  %v2996_v58 = vsub.f32 %v8693_v15, %v2976_v46  ;;  %v5961_v15 = vld [vmem:[%s10147_s2 + $0x3c8] sm:$0xff] }
 0x29d   : > { %v2390_v17 = vadd.f32 %v2389_v33, %v8743_v21  ;;  %2900 = vmatmul.bf16.gmra.mxu3 %v2581_v61  ;;  %3636 = vmatmul.bf16.vlgmr.msrb.gmra.mxu0 %v3512_v45  ;;  %v2967_v45 = vunpack.c.h.bf16 %v8561_v52  ;;  %v5962_v52 = vld [vmem:[%s10147_s2 + $0x3d0] sm:$0xff] }
 0x29e   : > { %3666 = vmatpush.bf16.msra.mxu0 %v5963_v24  ;;  %v2989_v24 = vsub.f32 %v8546_v47, %v2969_v31  ;;  %v5960_v31 = vld [vmem:[%s10147_s2 + $0x3c0] sm:$0xff] }
 0x29f   : > { %v8972_v21 = vadd.f32 %v2390_v17, %v8859_v10  ;;  %3246 = vmatmul.bf16.gmra.mxu1 %v3083_v54  ;;  %v8985_v10 = vpack.c.bf16 %v8966_v2, %v8963_v34  ;;  %v2987_v43 = vsub.f32 %v8540_v32, %v2967_v45  ;;  %v3073_v32 = vunpack.c.h.b16 %v8781_v14 }
 0x2a0   : > { %v2452_v61 = vpop.f32.mrf.mxu3  ;;  %v8987_v54 = vpop.f32.mrf.mxu2  ;;  %5992 = vmatpush.bf16.msrb.mxu1 %v5962_v52  ;;  %3745 = vmatpush.bf16.msra.mxu3 %v5962_v52 }
 0x2a1   : > { %v2453_v1 = vadd.f32 %v2452_v61, %v8810_v20  ;;  %v2994_v20 = vsub.f32 %v8687_v4, %v2974_v57  ;;  %v3496_v61 = vunpack.c.l.b16 %v8981_v35  ;;  %v3498_v4 = vunpack.c.l.b16 %v8985_v10 }
 0x2a2   : > { %v8992_v33 = vpop.f32.mrf.mxu0  ;;  %3667 = vmatpush.bf16.msra.mxu0 %v5962_v52  ;;  %v3007_v57 = vpack.c.bf16 %v2989_v24, %v2987_v43  ;;  %v6211_v24 = vld [vmem:[%s6637_s25 + $0x40] sm:$0xff] }
 0x2a3   : > { %v8997_v17 = vadd.f32 %v2453_v1, %v8768_v38  ;;  %v3010_v44 = vpack.c.bf16 %v2996_v58, %v2994_v20  ;;  %v3514_v46 = vpack.c.b16 %v3498_v4, %v3496_v61  ;;  %v3358_v1 = vld [vmem:[%s6645_s8 + $0x270] sm:$0xff]  ;;  %v3359_v58 = vld [vmem:[%s6645_s8 + $0x278] sm:$0xff]  ;;  %v6212_v4 = vld [vmem:[%s6637_s25 + $0x48] sm:$0xff] }
 0x2a4   : > { %v2391_v30 = vpop.f32.mrf.mxu1  ;;  %5993 = vmatpush.bf16.msrb.mxu1 %v5961_v15  ;;  %3746 = vmatpush.bf16.msra.mxu3 %v5961_v15  ;;  %v9029_v61 = vmul.f32 %v6211_v24, %v3358_v1  ;;  %v2971_v1 = vunpack.c.h.bf16 %v8636_v56 }
 0x2a5   : > { %v2392_v37 = vadd.f32 %v2391_v30, %v8788_v28  ;;  %v3071_v28 = vunpack.c.h.b16 %v8777_v26  ;;  %3290 = vmatmul.bf16.gmra.mxu2 %v3010_v44  ;;  %v3360_v30 = vld [vmem:[%s6645_s8 + $0x2f0] sm:$0xff] }
 0x2a6   : > { %3668 = vmatpush.bf16.msra.mxu0 %v5961_v15  ;;  %v9032_v15 = vmul.f32 %v6212_v4, %v3359_v58  ;;  %v2973_v58 = vunpack.c.h.bf16 %v8640_v60  ;;  %v10387_v4 = vld [vmem:[#allocation19_spill] sm:$0xff] }
 0x2a7   : > { %v9008_v38 = vadd.f32 %v2392_v37, %v8881_v29  ;;  %v3085_v20 = vpack.c.b16 %v3073_v32, %v3071_v28  ;;  %v3361_v37 = vld [vmem:[%s6645_s8 + $0x2f8] sm:$0xff]  ;;  %v6213_v28 = vld [vmem:[%s6637_s25 + $0x50] sm:$0xff] }
 0x2a8   : > { %v2454_v47 = vpop.f32.mrf.mxu3  ;;  %v9014_v29 = vpop.f32.mrf.mxu2  ;;  %5994 = vmatpush.bf16.msrb.mxu1 %v5960_v31  ;;  %3747 = vmatpush.bf16.msra.mxu3 %v5960_v31  ;;  %10385 = vst [vmem:[#allocation32_spill] sm:$0xff] %v9032_v15  ;;  %v9035_v32 = vmul.f32 %v6213_v28, %v3360_v30  ;;  %v9050_v30 = vpack.c.bf16 %v9032_v15, %v9029_v61 }
 0x2a9   : > { %v2455_v45 = vadd.f32 %v2454_v47, %v8852_v19  ;;  %v6214_v47 = vld [vmem:[%s6637_s25 + $0x58] sm:$0xff]  ;;  %v2991_v28 = vsub.f32 %v10387_v4, %v2971_v1 }
 0x2aa   : > { %v9019_v52 = vpop.f32.mrf.mxu0  ;;  %3669 = vmatpush.bf16.msra.mxu0 %v5960_v31  ;;  %v2978_v31 = vunpack.c.l.bf16 %v8777_v26  ;;  %v3365_v4 = vld [vmem:[%s6645_s8 + $0x3f8] sm:$0xff] }
 0x2ab   : > { %v9025_v19 = vadd.f32 %v2455_v45, %v8804_v18  ;;  %v9038_v18 = vmul.f32 %v6214_v47, %v3361_v37  ;;  %v10388_v47 = vld [vmem:[#allocation20_spill] sm:$0xff] }
 0x2ac   : > { %v2803_v44 = vpop.f32.mrf.mxu1  ;;  %v2998_v56 = vsub.f32 %v8753_v16, %v2978_v31  ;;  %v3077_v31 = vunpack.c.h.b16 %v8850_v55 }
 0x2ad   : > { %v2804_v43 = vadd.f32 %v2803_v44, %v8815_v49  ;;  %3314 = vmatmul.bf16.vlgmr.msrb.gmra.mxu3 %v3007_v57  ;;  %3641 = vmatmul.bf16.gmra.mxu0 %v3514_v46  ;;  %10386 = vst [vmem:[#allocation18_spill] sm:$0xff] %v9038_v18  ;;  %v2980_v57 = vunpack.c.l.bf16 %v8781_v14 }
 0x2af   : > { %v9041_v45 = vadd.f32 %v2804_v43, %v8925_v41  ;;  %3251 = vmatmul.bf16.gmra.mxu1 %v3085_v20  ;;  %v9054_v41 = vpack.c.bf16 %v9038_v18, %v9035_v32  ;;  %v3000_v44 = vsub.f32 %v8759_v11, %v2980_v57  ;;  %v3500_v18 = vunpack.c.l.b16 %v9050_v30 }
 0x2b0   : > { %v2457_v49 = vpop.f32.mrf.mxu3  ;;  %v9056_v20 = vpop.f32.mrf.mxu2 }
 0x2b1   : > { %v2458_v46 = vadd.f32 %v2457_v49, %v8873_v5  ;;  %v3012_v24 = vpack.c.bf16 %v3000_v44, %v2998_v56  ;;  %v2993_v49 = vsub.f32 %v10388_v47, %v2973_v58  ;;  %v3502_v16 = vunpack.c.l.b16 %v9054_v41  ;;  %v3362_v58 = vld [vmem:[%s6645_s8 + $0x370] sm:$0xff] }
 0x2b2   : > { %v9058_v37 = vpop.f32.mrf.mxu0 }
 0x2b3   : > { %v9063_v5 = vadd.f32 %v2458_v46, %v8837_v3  ;;  %v3075_v3 = vunpack.c.h.b16 %v8846_v59  ;;  %v3009_v57 = vpack.c.bf16 %v2993_v49, %v2991_v28  ;;  %v3516_v46 = vpack.c.b16 %v3502_v16, %v3500_v18  ;;  %v6215_v28 = vld [vmem:[%s6637_s25 + $0x60] sm:$0xff]  ;;  %v6216_v18 = vld [vmem:[%s6637_s25 + $0x68] sm:$0xff] }
 0x2b4   : > { %v2805_v60 = vpop.f32.mrf.mxu1  ;;  %v9089_v49 = vmul.f32 %v6215_v28, %v3362_v58  ;;  %v2982_v58 = vunpack.c.l.bf16 %v8846_v59 }
 0x2b5   : > { %v2806_v43 = vadd.f32 %v2805_v60, %v8854_v12  ;;  %3295 = vmatmul.bf16.gmra.mxu2 %v3012_v24  ;;  %v3363_v60 = vld [vmem:[%s6645_s8 + $0x378] sm:$0xff] }
 0x2b6   : > { %v9092_v16 = vmul.f32 %v6216_v18, %v3363_v60  ;;  %v2977_v60 = vunpack.c.h.bf16 %v8715_v42  ;;  %v10391_v18 = vld [vmem:[#allocation17_spill] sm:$0xff] }
 0x2b7   : > { %v9071_v11 = vadd.f32 %v2806_v43, %v8953_v40  ;;  %v3087_v40 = vpack.c.b16 %v3077_v31, %v3075_v3  ;;  %v3364_v43 = vld [vmem:[%s6645_s8 + $0x3f0] sm:$0xff]  ;;  %v6218_v3 = vld [vmem:[%s6637_s25 + $0x78] sm:$0xff] }
 0x2b8   : > { %v2459_v12 = vpop.f32.mrf.mxu3  ;;  %v9077_v56 = vpop.f32.mrf.mxu2  ;;  %10389 = vst [vmem:[#allocation28_spill] sm:$0xff] %v9092_v16  ;;  %v9098_v31 = vmul.f32 %v6218_v3, %v3365_v4  ;;  %v10392_v3 = vld [vmem:[#allocation15_spill] sm:$0xff] }
 0x2b9   : > { %v2460_v1 = vadd.f32 %v2459_v12, %v8915_v0  ;;  %v6217_v12 = vld [vmem:[%s6637_s25 + $0x70] sm:$0xff] }
 0x2ba   : > { %v9079_v44 = vpop.f32.mrf.mxu0  ;;  %v9095_v15 = vmul.f32 %v6217_v12, %v3364_v43  ;;  %10390 = vst [vmem:[#allocation39_spill] sm:$0xff] %v9098_v31  ;;  %v9110_v43 = vpack.c.bf16 %v9092_v16, %v9089_v49 }
 0x2bb   : > { %v9085_v47 = vadd.f32 %v2460_v1, %v8867_v13 }
 0x2bc   : > { %v2808_v24 = vpop.f32.mrf.mxu1 }
 0x2bd   : > { %v2809_v0 = vadd.f32 %v2808_v24, %v8875_v53  ;;  %3319 = vmatmul.bf16.gmra.mxu3 %v3009_v57  ;;  %3646 = vmatmul.bf16.gmra.mxu0 %v3516_v46  ;;  %v2975_v53 = vunpack.c.h.bf16 %v8711_v36  ;;  %v2984_v57 = vunpack.c.l.bf16 %v8850_v55  ;;  %v3002_v36 = vsub.f32 %v8825_v6, %v2982_v58 }
 0x2be   : > { %v3499_v58 = vunpack.c.h.b16 %v8985_v10 }
 0x2bf   : > { %v9101_v13 = vadd.f32 %v2809_v0, %v8997_v17  ;;  %3256 = vmatmul.bf16.gmra.mxu1 %v3087_v40  ;;  %v9114_v17 = vpack.c.bf16 %v9098_v31, %v9095_v15  ;;  %v3004_v24 = vsub.f32 %v8831_v9, %v2984_v57  ;;  %v2995_v12 = vsub.f32 %v10391_v18, %v2975_v53  ;;  %v3369_v18 = vld [vmem:[%s6645_s8 + $0x4f8] sm:$0xff] }
 0x2c0   : > { %v2462_v1 = vpop.f32.mrf.mxu3  ;;  %v9116_v40 = vpop.f32.mrf.mxu2  ;;  %v3504_v31 = vunpack.c.l.b16 %v9110_v43 }
 0x2c1   : > { %v2463_v46 = vadd.f32 %v2462_v1, %v8942_v62  ;;  %v3014_v28 = vpack.c.bf16 %v3004_v24, %v3002_v36  ;;  %v2997_v1 = vsub.f32 %v10392_v3, %v2977_v60  ;;  %v3506_v6 = vunpack.c.l.b16 %v9114_v17  ;;  %v3366_v60 = vld [vmem:[%s6645_s8 + $0x470] sm:$0xff] }
 0x2c2   : > { %v9118_v4 = vpop.f32.mrf.mxu0 }
 0x2c3   : > { %v9123_v62 = vadd.f32 %v2463_v46, %v8900_v63  ;;  %v3497_v63 = vunpack.c.h.b16 %v8981_v35  ;;  %v3011_v57 = vpack.c.bf16 %v2997_v1, %v2995_v12  ;;  %v3518_v46 = vpack.c.b16 %v3506_v6, %v3504_v31  ;;  %v6219_v12 = vld [vmem:[%s6637_s25 + $0x80] sm:$0xff]  ;;  %v6220_v31 = vld [vmem:[%s6637_s25 + $0x88] sm:$0xff] }
 0x2c4   : > { %v2810_v42 = vpop.f32.mrf.mxu1  ;;  %v9149_v1 = vmul.f32 %v6219_v12, %v3366_v60  ;;  %v3400_v60 = vunpack.c.l.bf16 %v8909_v39 }
 0x2c5   : > { %v2811_v0 = vadd.f32 %v2810_v42, %v8920_v7  ;;  %3300 = vmatmul.bf16.gmra.mxu2 %v3014_v28  ;;  %v3367_v42 = vld [vmem:[%s6645_s8 + $0x478] sm:$0xff] }
 0x2c6   : > { %v9152_v6 = vmul.f32 %v6220_v31, %v3367_v42  ;;  %v2981_v42 = vunpack.c.h.bf16 %v8781_v14  ;;  %v10396_v31 = vld [vmem:[#allocation27_spill] sm:$0xff] }
 0x2c7   : > { %v9131_v9 = vadd.f32 %v2811_v0, %v9025_v19  ;;  %v3515_v19 = vpack.c.b16 %v3499_v58, %v3497_v63  ;;  %v3368_v0 = vld [vmem:[%s6645_s8 + $0x4f0] sm:$0xff]  ;;  %v6222_v63 = vld [vmem:[%s6637_s25 + $0x98] sm:$0xff]  ;;  %s6427_s8 = smov 3  }
 0x2c8   : > { %v2464_v7 = vpop.f32.mrf.mxu3  ;;  %v9137_v36 = vpop.f32.mrf.mxu2  ;;  %10393 = vst [vmem:[#allocation29_spill] sm:$0xff] %v9152_v6  ;;  %v9158_v58 = vmul.f32 %v6222_v63, %v3369_v18  ;;  %v10397_v63 = vld [vmem:[#allocation22_spill] sm:$0xff] }
 0x2c9   : > { %v2465_v53 = vadd.f32 %v2464_v7, %v8987_v54  ;;  %v6221_v7 = vld [vmem:[%s6637_s25 + $0x90] sm:$0xff]  ;;  %s3794_s25 = smul.u32 80, %s6484_s19 }
 0x2ca   : > { %v9139_v24 = vpop.f32.mrf.mxu0  ;;  %v9155_v16 = vmul.f32 %v6221_v7, %v3368_v0  ;;  %10394 = vst [vmem:[#allocation35_spill] sm:$0xff] %v9158_v58  ;;  %v9170_v0 = vpack.c.bf16 %v9152_v6, %v9149_v1 }
 0x2cb   : > { %v9145_v3 = vadd.f32 %v2465_v53, %v8936_v48 }
 0x2cc   : > { %v2813_v28 = vpop.f32.mrf.mxu1 }
 0x2cd   : > { %v2814_v54 = vadd.f32 %v2813_v28, %v8947_v27  ;;  %3324 = vmatmul.bf16.gmra.mxu3 %v3011_v57  ;;  %3651 = vmatmul.bf16.gmra.mxu0 %v3518_v46  ;;  %v2979_v27 = vunpack.c.h.bf16 %v8777_v26  ;;  %v3402_v57 = vunpack.c.l.bf16 %v8913_v22  ;;  %v3420_v26 = vsub.f32 %v8885_v50, %v3400_v60 }
 0x2ce   : > { %v3501_v50 = vunpack.c.h.b16 %v9050_v30 }
 0x2cf   : > { %v9161_v48 = vadd.f32 %v2814_v54, %v9063_v5  ;;  %3675 = vmatmul.bf16.vlgmr.msrb.gmra.mxu1 %v3515_v19  ;;  %v9174_v5 = vpack.c.bf16 %v9158_v58, %v9155_v16  ;;  %v3422_v28 = vsub.f32 %v8891_v25, %v3402_v57  ;;  %v2999_v7 = vsub.f32 %v10396_v31, %v2979_v27 }
 0x2d0   : > { %v2467_v53 = vpop.f32.mrf.mxu3  ;;  %v9176_v19 = vpop.f32.mrf.mxu2  ;;  %v3508_v58 = vunpack.c.l.b16 %v9170_v0  ;;  %v3503_v25 = vunpack.c.h.b16 %v9054_v41 }
 0x2d1   : > { %v2468_v46 = vadd.f32 %v2467_v53, %v9014_v29  ;;  %v3440_v12 = vpack.c.bf16 %v3422_v28, %v3420_v26  ;;  %v3001_v53 = vsub.f32 %v10397_v63, %v2981_v42  ;;  %v3510_v6 = vunpack.c.l.b16 %v9174_v5 }
 0x2d2   : > { %v9178_v18 = vpop.f32.mrf.mxu0  ;;  %v3517_v42 = vpack.c.b16 %v3503_v25, %v3501_v50 }
 0x2d3   : > { %10395 = vst [vmem:[#allocation25_spill] sm:$0xff] %v9178_v18  ;;  %v2480_v29 = vadd.f32 %v2468_v46, %v8972_v21  ;;  %v3013_v60 = vpack.c.bf16 %v3001_v53, %v2999_v7  ;;  %v3520_v57 = vpack.c.b16 %v3510_v6, %v3508_v58  ;;  %v3404_v6 = vunpack.c.l.bf16 %v8981_v35 }
 0x2d4   : > { %v2815_v54 = vpop.f32.mrf.mxu1  ;;  %v3406_v58 = vunpack.c.l.bf16 %v8985_v10 }
 0x2d5   : > { %v2816_v14 = vadd.f32 %v2815_v54, %v8992_v33  ;;  %3714 = vmatmul.bf16.vlgmr.msrb.gmra.mxu2 %v3440_v12  ;;  %v2983_v12 = vunpack.c.h.bf16 %v8846_v59  ;;  %v3424_v7 = vsub.f32 %v8957_v51, %v3404_v6  ;;  %v3505_v51 = vunpack.c.h.b16 %v9110_v43 }
 0x2d7   : > { %v9189_v18 = vadd.f32 %v2816_v14, %v9085_v47 }
 0x2d8   : > { %v2469_v21 = vpop.f32.mrf.mxu3  ;;  %v9194_v27 = vpop.f32.mrf.mxu2 }
 0x2d9   : > { %v2470_v33 = vadd.f32 %v2469_v21, %v9056_v20  ;;  %v10398_v21 = vld [vmem:[#allocation24_spill] sm:$0xff] }
 0x2da   : > { %v9196_v46 = vpop.f32.mrf.mxu0 }
 0x2db   : > { %v9199_v26 = vadd.f32 %v2470_v33, %v9008_v38  ;;  %v2985_v38 = vunpack.c.h.bf16 %v8850_v55  ;;  %v3493_v55 = vunpack.c.h.b16 %v8909_v39  ;;  %v3495_v33 = vunpack.c.h.b16 %v8913_v22 }
 0x2dc   : > { %v2818_v47 = vpop.f32.mrf.mxu1 }
 0x2dd   : > { %v2819_v28 = vadd.f32 %v2818_v47, %v9019_v52  ;;  %3329 = vmatmul.bf16.gmra.mxu3 %v3013_v60  ;;  %3656 = vmatmul.bf16.gmra.mxu0 %v3520_v57  ;;  %v3005_v59 = vsub.f32 %v10398_v21, %v2985_v38  ;;  %v3403_v38 = vunpack.c.h.bf16 %v8913_v22  ;;  %v3410_v22 = vunpack.c.l.bf16 %v9054_v41 }
 0x2df   : > { %v9203_v54 = vadd.f32 %v2819_v28, %v9123_v62  ;;  %3680 = vmatmul.bf16.gmra.mxu1 %v3517_v42  ;;  %v3426_v62 = vsub.f32 %v8963_v34, %v3406_v58  ;;  %v3507_v34 = vunpack.c.h.b16 %v9114_v17  ;;  %v3513_v42 = vpack.c.b16 %v3495_v33, %v3493_v55 }
 0x2e0   : > { %v2881_v20 = vpop.f32.mrf.mxu3  ;;  %v9210_v31 = vpop.f32.mrf.mxu2 }
 0x2e1   : > { %v2882_v14 = vadd.f32 %v2881_v20, %v9077_v56  ;;  %v3442_v25 = vpack.c.bf16 %v3426_v62, %v3424_v7  ;;  %v3003_v56 = vsub.f32 %v8828_v23, %v2983_v12  ;;  %v3519_v28 = vpack.c.b16 %v3507_v34, %v3505_v51 }
 0x2e2   : > { %v9212_v52 = vpop.f32.mrf.mxu0  ;;  %v3401_v12 = vunpack.c.h.bf16 %v8909_v39  ;;  %v3408_v39 = vunpack.c.l.bf16 %v9050_v30 }
 0x2e3   : > { %v2906_v63 = vadd.f32 %v2882_v14, %v9041_v45  ;;  %v3015_v57 = vpack.c.bf16 %v3005_v59, %v3003_v56  ;;  %v3509_v56 = vunpack.c.h.b16 %v9170_v0 }
 0x2e4   : > { %v2820_v53 = vpop.f32.mrf.mxu1  ;;  %v3428_v34 = vsub.f32 %v9029_v61, %v3408_v39  ;;  %v3407_v61 = vunpack.c.h.bf16 %v8985_v10 }
 0x2e5   : > { %v2821_v50 = vadd.f32 %v2820_v53, %v9058_v37  ;;  %3719 = vmatmul.bf16.gmra.mxu2 %v3442_v25 }
 0x2e7   : > { %v9223_v60 = vadd.f32 %v2821_v50, %v9145_v3 }
 0x2e8   : > { %v2883_v45 = vpop.f32.mrf.mxu3  ;;  %v9228_v23 = vpop.f32.mrf.mxu2 }
 0x2e9   : > { %v2884_v37 = vadd.f32 %v2883_v45, %v9116_v40  ;;  %v3430_v45 = vsub.f32 %v9035_v32, %v3410_v22  ;;  %v3409_v22 = vunpack.c.h.bf16 %v9050_v30 }
 0x2ea   : > { %v9230_v47 = vpop.f32.mrf.mxu0 }
 0x2eb   : > { %v9233_v20 = vadd.f32 %v2884_v37, %v9071_v11 }
 0x2ec   : > { %v2823_v3 = vpop.f32.mrf.mxu1 }
 0x2ed   : > { %v2824_v6 = vadd.f32 %v2823_v3, %v9079_v44  ;;  %3334 = vmatmul.bf16.gmra.mxu3 %v3015_v57  ;;  %3670 = vmatmul.bf16.vlgmr.msra.gmra.mxu0 %v3513_v42  ;;  %v10399_v44 = vld [vmem:[#allocation21_spill] sm:$0xff] }
 0x2ee   : > { %v3421_v50 = vsub.f32 %v10399_v44, %v3401_v12  ;;  %v3412_v44 = vunpack.c.l.bf16 %v9110_v43 }
 0x2ef   : > { %v9236_v58 = vadd.f32 %v2824_v6, %v2480_v29  ;;  %3685 = vmatmul.bf16.gmra.mxu1 %v3519_v28  ;;  %v10400_v29 = vld [vmem:[#allocation30_spill] sm:$0xff]  ;;  %v3444_v28 = vpack.c.bf16 %v3430_v45, %v3428_v34 }
 0x2f0   : > { %v2886_v14 = vpop.f32.mrf.mxu3  ;;  %v9241_v7 = vpop.f32.mrf.mxu2  ;;  %v3423_v25 = vsub.f32 %v10400_v29, %v3403_v38  ;;  %v10402_v34 = vld [vmem:[#allocation18_spill] sm:$0xff] }
 0x2f1   : > { %v2887_v40 = vadd.f32 %v2886_v14, %v9137_v36  ;;  %v3511_v36 = vunpack.c.h.b16 %v9174_v5  ;;  %v3405_v14 = vunpack.c.h.bf16 %v8981_v35 }
 0x2f2   : > { %v9243_v62 = vpop.f32.mrf.mxu0  ;;  %v3441_v55 = vpack.c.bf16 %v3423_v25, %v3421_v50  ;;  %v3432_v25 = vsub.f32 %v9089_v49, %v3412_v44  ;;  %v3411_v49 = vunpack.c.h.bf16 %v9054_v41  ;;  %v3413_v44 = vunpack.c.h.bf16 %v9110_v43 }
 0x2f3   : > { %v2908_v11 = vadd.f32 %v2887_v40, %v9101_v13  ;;  %v3521_v51 = vpack.c.b16 %v3511_v36, %v3509_v56 }
 0x2f4   : > { %v9246_v53 = vpop.f32.mrf.mxu1 }
 0x2f5   : > { %3724 = vmatmul.bf16.gmra.mxu2 %v3444_v28 }
 0x2f8   : > { %v2888_v21 = vpop.f32.mrf.mxu3  ;;  %v9255_v33 = vpop.f32.mrf.mxu2 }
 0x2f9   : > { %v2889_v59 = vadd.f32 %v2888_v21, %v9176_v19 }
 0x2fa   : > { %v9257_v13 = vpop.f32.mrf.mxu0 }
 0x2fb   : > { %v9262_v37 = vadd.f32 %v2889_v59, %v9131_v9 }
 0x2fc   : > { %v3237_v57 = vpop.f32.mrf.mxu1 }
 0x2fd   : > { %v3238_v42 = vadd.f32 %v3237_v57, %v9139_v24  ;;  %3748 = vmatmul.bf16.vlgmr.msra.gmra.mxu3 %v3441_v55  ;;  %v3425_v24 = vsub.f32 %v8960_v8, %v3405_v14  ;;  %v3416_v57 = vunpack.c.l.bf16 %v9170_v0 }
 0x2ff   : > { %v9265_v3 = vadd.f32 %v3238_v42, %v2906_v63  ;;  %3690 = vmatmul.bf16.gmra.mxu1 %v3521_v51  ;;  %v3427_v63 = vsub.f32 %v8966_v2, %v3407_v61  ;;  %v3436_v28 = vsub.f32 %v9149_v1, %v3416_v57  ;;  %v3415_v1 = vunpack.c.h.bf16 %v9114_v17 }
 0x300   : > { %v2891_v19 = vpop.f32.mrf.mxu3  ;;  %v2869_v32 = vpop.f32.mrf.mxu2 }
 0x301   : > { %v2892_v6 = vadd.f32 %v2891_v19, %v9194_v27  ;;  %v3414_v27 = vunpack.c.l.bf16 %v9114_v17  ;;  %v3443_v50 = vpack.c.bf16 %v3427_v63, %v3425_v24 }
 0x302   : > { %v9270_v40 = vpop.f32.mrf.mxu0 }
 0x303   : > { %v2910_v9 = vadd.f32 %v2892_v6, %v9161_v48  ;;  %v3434_v48 = vsub.f32 %v9095_v15, %v3414_v27 }
 0x304   : > { %v9273_v12 = vpop.f32.mrf.mxu1 }
 0x305   : > { %v3446_v36 = vpack.c.bf16 %v3434_v48, %v3432_v25 }
 0x307   : > { %3729 = vmatmul.bf16.gmra.mxu2 %v3446_v36 }
 0x308   : > { %v2893_v38 = vpop.f32.mrf.mxu3  ;;  %v3281_v10 = vpop.f32.mrf.mxu2 }
 0x309   : > { %v2894_v35 = vadd.f32 %v2893_v38, %v9210_v31 }
 0x30a   : > { %v9280_v29 = vpop.f32.mrf.mxu0 }
 0x30b   : > { %v9285_v56 = vadd.f32 %v2894_v35, %v9189_v18  ;;  %v10403_v35 = vld [vmem:[#allocation28_spill] sm:$0xff] }
 0x30c   : > { %v3242_v8 = vpop.f32.mrf.mxu1 }
 0x30d   : > { %v3243_v2 = vadd.f32 %v3242_v8, %v9196_v46  ;;  %3753 = vmatmul.bf16.gmra.mxu3 %v3443_v50  ;;  %v10401_v46 = vld [vmem:[#allocation32_spill] sm:$0xff]  ;;  %v3433_v50 = vsub.f32 %v10403_v35, %v3413_v44 }
 0x30e   : > { %v3429_v51 = vsub.f32 %v10401_v46, %v3409_v22 }
 0x30f   : > { %v9288_v21 = vadd.f32 %v3243_v2, %v2908_v11  ;;  %v3431_v11 = vsub.f32 %v10402_v34, %v3411_v49  ;;  %v3419_v49 = vunpack.c.h.bf16 %v9174_v5  ;;  %v10405_v34 = vld [vmem:[#allocation25_spill] sm:$0xff] }
 0x310   : > { %v2896_v31 = vpop.f32.mrf.mxu3  ;;  %v3283_v55 = vpop.f32.mrf.mxu2 }
 0x311   : > { %v2897_v39 = vadd.f32 %v2896_v31, %v9228_v23  ;;  %v3418_v23 = vunpack.c.l.bf16 %v9174_v5  ;;  %v3445_v42 = vpack.c.bf16 %v3431_v11, %v3429_v51  ;;  %v3240_v11 = vadd.f32 %v9273_v12, %v10405_v34 }
 0x312   : > { %v9293_v59 = vpop.f32.mrf.mxu0 }
 0x313   : > { %v2912_v15 = vadd.f32 %v2897_v39, %v9203_v54  ;;  %v3438_v54 = vsub.f32 %v9155_v16, %v3418_v23 }
 0x314   : > { %v9296_v18 = vpop.f32.mrf.mxu1 }
 0x315   : > { %v3448_v61 = vpack.c.bf16 %v3438_v54, %v3436_v28 }
 0x317   : > { %3734 = vmatmul.bf16.gmra.mxu2 %v3448_v61 }
 0x318   : > { %v2898_v45 = vpop.f32.mrf.mxu3  ;;  %v3286_v24 = vpop.f32.mrf.mxu2 }
 0x319   : > { %v2899_v30 = vadd.f32 %v2898_v45, %v9241_v7  ;;  %v10406_v45 = vld [vmem:[#allocation29_spill] sm:$0xff] }
 0x31a   : > { %v9303_v41 = vpop.f32.mrf.mxu0 }
 0x31b   : > { %v9308_v19 = vadd.f32 %v2899_v30, %v9223_v60 }
 0x31c   : > { %v3247_v6 = vpop.f32.mrf.mxu1 }
 0x31d   : > { %v3248_v14 = vadd.f32 %v3247_v6, %v9230_v47  ;;  %3758 = vmatmul.bf16.gmra.mxu3 %v3445_v42  ;;  %v2826_v47 = vadd.f32 %v9246_v53, %v9118_v4  ;;  %v3417_v53 = vunpack.c.h.bf16 %v9170_v0 }
 0x31f   : > { %v9311_v63 = vadd.f32 %v3248_v14, %v2910_v9  ;;  %v10404_v9 = vld [vmem:[#allocation39_spill] sm:$0xff]  ;;  %v3437_v57 = vsub.f32 %v10406_v45, %v3417_v53 }
 0x320   : > { %v2901_v7 = vpop.f32.mrf.mxu3  ;;  %v3435_v25 = vsub.f32 %v10404_v9, %v3415_v1  ;;  %v3288_v48 = vpop.f32.mrf.mxu2 }
 0x321   : > { %v2902_v38 = vadd.f32 %v2901_v7, %v9255_v33  ;;  %v2837_v33 = vadd.f32 %v2826_v47, %v9199_v26 }
 0x322   : > { %v9316_v16 = vpop.f32.mrf.mxu0  ;;  %v3447_v43 = vpack.c.bf16 %v3435_v25, %v3433_v50 }
 0x323   : > { %v2914_v60 = vadd.f32 %v2902_v38, %v9236_v58  ;;  %v3245_v38 = vadd.f32 %v9296_v18, %v9212_v52 }
 0x324   : > { %v3249_v27 = vpop.f32.mrf.mxu1 }
 0x325   : > { %v3265_v1 = vadd.f32 %v3245_v38, %v9262_v37  ;;  %v3250_v52 = vadd.f32 %v3249_v27, %v9243_v62  ;;  %v3795_v38 = vlaneseq }
 0x327   : > { %v3267_v37 = vadd.f32 %v3250_v52, %v9285_v56 }
 0x328   : > { %v2903_v8 = vpop.f32.mrf.mxu3  ;;  %v3291_v46 = vpop.f32.mrf.mxu2 }
 0x329   : > { %v2904_v2 = vadd.f32 %v2903_v8, %v2869_v32 }
 0x32a   : > { %v3642_v36 = vpop.f32.mrf.mxu0 }
 0x32b   : > { %v9324_v17 = vadd.f32 %v2904_v2, %v2837_v33 }
 0x32c   : > { %v3252_v31 = vpop.f32.mrf.mxu1 }
 0x32d   : > { %v3253_v58 = vadd.f32 %v3252_v31, %v9257_v13  ;;  %3763 = vmatmul.bf16.gmra.mxu3 %v3447_v43  ;;  %v10407_v13 = vld [vmem:[#allocation35_spill] sm:$0xff] }
 0x32e   : > { %v3439_v23 = vsub.f32 %v10407_v13, %v3419_v49 }
 0x32f   : > { %v3268_v39 = vadd.f32 %v3253_v58, %v2912_v15 }
 0x330   : > { %v3315_v22 = vpop.f32.mrf.mxu3  ;;  %v3449_v0 = vpack.c.bf16 %v3439_v23, %v3437_v57  ;;  %v3293_v28 = vpop.f32.mrf.mxu2 }
 0x331   : > { %v3316_v4 = vadd.f32 %v3315_v22, %v3281_v10  ;;  %v3263_v10 = vadd.f32 %v3240_v11, %v9233_v20 }
 0x332   : > { %v3644_v51 = vpop.f32.mrf.mxu0 }
 0x333   : > { %v9330_v26 = vadd.f32 %v3316_v4, %v9265_v3 }
 0x334   : > { %v3254_v32 = vpop.f32.mrf.mxu1 }
 0x335   : > { %v3255_v27 = vadd.f32 %v3254_v32, %v9270_v40 }
 0x337   : > { %v3269_v57 = vadd.f32 %v3255_v27, %v9308_v19 }
 0x338   : > { %v3317_v15 = vpop.f32.mrf.mxu3  ;;  %v3296_v20 = vpop.f32.mrf.mxu2 }
 0x339   : > { %v3318_v30 = vadd.f32 %v3317_v15, %v3283_v55 }
 0x33a   : > { %v3647_v54 = vpop.f32.mrf.mxu0 }
 0x33b   : > { %v9337_v42 = vadd.f32 %v3318_v30, %v3263_v10 }
 0x33c   : > { %v3257_v5 = vpop.f32.mrf.mxu1 }
 0x33d   : > { %v3258_v3 = vadd.f32 %v3257_v5, %v9280_v29  ;;  %3768 = vmatmul.bf16.gmra.mxu3 %v3449_v0 }
 0x33f   : > { %v3270_v6 = vadd.f32 %v3258_v3, %v2914_v60 }
 0x340   : > { %v3320_v14 = vpop.f32.mrf.mxu3  ;;  %v3298_v60 = vpop.f32.mrf.mxu2 }
 0x341   : > { %v3321_v12 = vadd.f32 %v3320_v14, %v3286_v24 }
 0x342   : > { %v3649_v55 = vpop.f32.mrf.mxu0 }
 0x343   : > { %v3342_v61 = vadd.f32 %v3321_v12, %v9288_v21 }
 0x344   : > { %v3259_v7 = vpop.f32.mrf.mxu1 }
 0x345   : > { %v3260_v32 = vadd.f32 %v3259_v7, %v9293_v59  ;;  %v9370_v59 = vstv %s3794_s25 }
 0x348   : > { %v3322_v44 = vpop.f32.mrf.mxu3  ;;  %v3301_v31 = vpop.f32.mrf.mxu2 }
 0x349   : > { %v3323_v47 = vadd.f32 %v3322_v44, %v3288_v48 }
 0x34a   : > { %v3652_v25 = vpop.f32.mrf.mxu0 }
 0x34b   : > { %v3343_v35 = vadd.f32 %v3323_v47, %v3265_v1 }
 0x34c   : > { %v3676_v50 = vpop.f32.mrf.mxu1 }
 0x34d   : > { %v3677_v29 = vadd.f32 %v3676_v50, %v3642_v36 }
 0x34f   : > { %v9344_v9 = vadd.f32 %v3677_v29, %v3342_v61 }
 0x350   : > { %v3325_v24 = vpop.f32.mrf.mxu3 }
 0x351   : > { %v3326_v8 = vadd.f32 %v3325_v24, %v3291_v46 }
 0x352   : > { %v3654_v36 = vpop.f32.mrf.mxu0 }
 0x353   : > { %v3344_v21 = vadd.f32 %v3326_v8, %v9311_v63 }
 0x354   : > { %v3678_v33 = vpop.f32.mrf.mxu1 }
 0x355   : > { %v3679_v2 = vadd.f32 %v3678_v33, %v3644_v51  ;;  %v3303_v51 = vpop.f32.mrf.mxu2 }
 0x357   : > { %v9348_v18 = vadd.f32 %v3679_v2, %v3343_v35 }
 0x358   : > { %v3327_v43 = vpop.f32.mrf.mxu3 }
 0x359   : > { %v3328_v48 = vadd.f32 %v3327_v43, %v3293_v28 }
 0x35a   : > { %v3657_v11 = vpop.f32.mrf.mxu0 }
 0x35b   : > { %v3345_v58 = vadd.f32 %v3328_v48, %v3267_v37 }
 0x35c   : > { %v3681_v22 = vpop.f32.mrf.mxu1 }
 0x35d   : > { %v3682_v4 = vadd.f32 %v3681_v22, %v3647_v54  ;;  %v3715_v30 = vpop.f32.mrf.mxu2 }
 0x35f   : > { %v9351_v53 = vadd.f32 %v3682_v4, %v3344_v21 }
 0x360   : > { %v3330_v49 = vpop.f32.mrf.mxu3 }
 0x361   : > { %v3331_v46 = vadd.f32 %v3330_v49, %v3296_v20  ;;  %v3271_v20 = vadd.f32 %v3260_v32, %v9324_v17 }
 0x362   : > { %v3659_v0 = vpop.f32.mrf.mxu0 }
 0x363   : > { %v3346_v63 = vadd.f32 %v3331_v46, %v3268_v39 }
 0x364   : > { %v3683_v34 = vpop.f32.mrf.mxu1 }
 0x365   : > { %v3684_v62 = vadd.f32 %v3683_v34, %v3649_v55  ;;  %v3717_v19 = vpop.f32.mrf.mxu2 }
 0x367   : > { %v9354_v45 = vadd.f32 %v3684_v62, %v3345_v58 }
 0x368   : > { %v3332_v56 = vpop.f32.mrf.mxu3 }
 0x369   : > { %v3333_v13 = vadd.f32 %v3332_v56, %v3298_v60 }
 0x36a   : > { %v3671_v12 = vpop.f32.mrf.mxu0 }
 0x36b   : > { %v3347_v23 = vadd.f32 %v3333_v13, %v3269_v57  ;;  %v3672_v35 = vadd.f32 %v3671_v12, %v9303_v41 }
 0x36c   : > { %v3686_v15 = vpop.f32.mrf.mxu1 }
 0x36d   : > { %v3687_v10 = vadd.f32 %v3686_v15, %v3652_v25  ;;  %v3696_v17 = vadd.f32 %v3672_v35, %v9330_v26  ;;  %v3720_v24 = vpop.f32.mrf.mxu2 }
 0x36f   : > { %v9357_v5 = vadd.f32 %v3687_v10, %v3346_v63 }
 0x370   : > { %v3335_v39 = vpop.f32.mrf.mxu3 }
 0x371   : > { %v3336_v28 = vadd.f32 %v3335_v39, %v3301_v31 }
 0x372   : > { %v3673_v25 = vpop.f32.mrf.mxu0 }
 0x373   : > { %v3348_v3 = vadd.f32 %v3336_v28, %v3270_v6  ;;  %v9365_v6 = vshrl.u32 %v3795_v38, 7  ;;  %v3674_v2 = vadd.f32 %v3673_v25, %v9316_v16 }
 0x374   : > { %v3688_v54 = vpop.f32.mrf.mxu1 }
 0x375   : > { %v3689_v40 = vadd.f32 %v3688_v54, %v3654_v36  ;;  %v3807_v29 = vadd.s32 %v9370_v59, %v9365_v6  ;;  %v3797_v41 = vadd.s32 8, %v9365_v6  ;;  %v3697_v36 = vadd.f32 %v3674_v2, %v9337_v42  ;;  %v3722_v4 = vpop.f32.mrf.mxu2 }
 0x376   : > { %v3798_v16 = vadd.s32 16, %v9365_v6  ;;  %v3799_v27 = vadd.s32 24, %v9365_v6 }
 0x377   : > { %v9360_v14 = vadd.f32 %v3689_v40, %v3347_v23  ;;  %vm3817_vm0 = vcmp.lt.s32.totalorder %v3807_v29, 300  ;;  %v3808_v31 = vadd.s32 %v9370_v59, %v3797_v41  ;;  %v3803_v41 = vadd.s32 56, %v9365_v6 }
 0x378   : > { %v3337_v61 = vpop.f32.mrf.mxu3  ;;  %v3810_v15 = vadd.s32 %v9370_v59, %v3799_v27 }
 0x379   : > { %v3338_v55 = vadd.f32 %v3337_v61, %v3303_v51  ;;  %vm3818_vm2 = vcmp.lt.s32.totalorder %v3808_v31, 300  ;;  %v3809_v51 = vadd.s32 %v9370_v59, %v3798_v16 }
 0x37a   : > { %vm3820_vm4 = vcmp.lt.s32.totalorder %v3810_v15, 300 }
 0x37b   : > { %v3349_v44 = vadd.f32 %v3338_v55, %v3271_v20  ;;  %vm3819_vm3 = vcmp.lt.s32.totalorder %v3809_v51, 300 }
 0x37c   : > { %v3691_v1 = vpop.f32.mrf.mxu1 }
 0x37d   : > { %v3692_v47 = vadd.f32 %v3691_v1, %v3657_v11  ;;  %v3725_v62 = vpop.f32.mrf.mxu2 }
 0x37f   : > { %v9372_v7 = vadd.f32 %v3692_v47, %v3348_v3 }
 0x380   : > { %v3749_v50 = vpop.f32.mrf.mxu3 }
 0x381   : > { %v3750_v60 = vadd.f32 %v3749_v50, %v3715_v30 }
 0x383   : > { %v3774_v8 = vadd.f32 %v3750_v60, %v3696_v17 }
 0x384   : > { %v3693_v21 = vpop.f32.mrf.mxu1 }
 0x385   : > { %v3694_v33 = vadd.f32 %v3693_v21, %v3659_v0  ;;  %v3784_v52 = vmul.f32 0.17677669, %v3774_v8  ;;  %v3727_v39 = vpop.f32.mrf.mxu2  ;;  %v5971_v8 = vld [vmem:[#allocation7 + $0x18] sm:$0xff] }
 0x386   : > { %5995 = vmatpush.bf16.msra.mxu2 %v5971_v8  ;;  %4096 = vmatpush.bf16.msra.mxu1 %v5971_v8 }
 0x387   : > { %v9379_v43 = vadd.f32 %v3694_v33, %v3349_v44  ;;  %v9381_v37 = vsel %vm3817_vm0, %v3784_v52, 0.0 }
 0x388   : > { %v3751_v48 = vpop.f32.mrf.mxu3  ;;  %v3858_v26 = vsel %vm3857_vm1, %v9381_v37, -inf }
 0x389   : > { %v3752_v58 = vadd.f32 %v3751_v48, %v3717_v19  ;;  %3859 = vmax.xlane.f32.xlu0 %v3858_v26  ;;  %v5969_v48 = vld [vmem:[#allocation7 + $0x8] sm:$0xff] }
 0x38b   : > { %v3775_v22 = vadd.f32 %v3752_v58, %v3697_v36  ;;  %v3814_v36 = vadd.s32 %v9370_v59, %v3803_v41 }
 0x38d   : > { %v3785_v49 = vmul.f32 0.17677669, %v3775_v22  ;;  %v3730_v44 = vpop.f32.mrf.mxu2  ;;  %vm3824_vm8 = vcmp.lt.s32.totalorder %v3814_v36, 300 }
 0x38f   : > { %v9388_v46 = vsel %vm3818_vm2, %v3785_v49, 0.0 }
 0x390   : > { %v3754_v63 = vpop.f32.mrf.mxu3  ;;  %v3861_v34 = vsel %vm3857_vm1, %v9388_v46, -inf }
 0x391   : > { %v3755_v11 = vadd.f32 %v3754_v63, %v3720_v24  ;;  %3862 = vmax.xlane.f32.xlu0 %v3861_v34 }
 0x393   : > { %v3776_v42 = vadd.f32 %v3755_v11, %v9344_v9  ;;  %v3800_v9 = vadd.s32 32, %v9365_v6 }
 0x395   : > { %v3786_v56 = vmul.f32 0.17677669, %v3776_v42  ;;  %v3811_v40 = vadd.s32 %v9370_v59, %v3800_v9  ;;  %v3732_v21 = vpop.f32.mrf.mxu2 }
 0x397   : > { %v9395_v57 = vsel %vm3819_vm3, %v3786_v56, 0.0  ;;  %vm3821_vm5 = vcmp.lt.s32.totalorder %v3811_v40, 300 }
 0x398   : > { %v3756_v13 = vpop.f32.mrf.mxu3  ;;  %v3864_v23 = vsel %vm3857_vm1, %v9395_v57, -inf }
 0x399   : > { %v3757_v10 = vadd.f32 %v3756_v13, %v3722_v4  ;;  %3865 = vmax.xlane.f32.xlu1 %v3864_v23  ;;  %v3804_v4 = vadd.s32 64, %v9365_v6 }
 0x39b   : > { %v3777_v30 = vadd.f32 %v3757_v10, %v9348_v18  ;;  %v3801_v18 = vadd.s32 40, %v9365_v6  ;;  %v3815_v51 = vadd.s32 %v9370_v59, %v3804_v4 }
 0x39d   : > { %v3787_v0 = vmul.f32 0.17677669, %v3777_v30  ;;  %v3812_v1 = vadd.s32 %v9370_v59, %v3801_v18  ;;  %v3735_v22 = vpop.f32.mrf.mxu2  ;;  %vm3825_vm9 = vcmp.lt.s32.totalorder %v3815_v51, 300 }
 0x39f   : > { %v9402_v28 = vsel %vm3820_vm4, %v3787_v0, 0.0  ;;  %vm3822_vm6 = vcmp.lt.s32.totalorder %v3812_v1, 300  ;;  %v5975_v0 = vld [vmem:[#allocation7 + $0x38] sm:$0xff] }
 0x3a0   : > { %v3759_v3 = vpop.f32.mrf.mxu3  ;;  %v3867_v54 = vsel %vm3857_vm1, %v9402_v28, -inf  ;;  %4038 = vmatpush.bf16.msrb.mxu0 %v5975_v0 }
 0x3a1   : > { %v3760_v32 = vadd.f32 %v3759_v3, %v3725_v62  ;;  %3868 = vmax.xlane.f32.xlu1 %v3867_v54  ;;  %v5973_v3 = vld [vmem:[#allocation7 + $0x28] sm:$0xff]  ;;  %v5968_v54 = vld [vmem:[#allocation7] sm:$0xff] }
 0x3a3   : > { %v3778_v19 = vadd.f32 %v3760_v32, %v9351_v53  ;;  %v3802_v53 = vadd.s32 48, %v9365_v6 }
 0x3a5   : > { %v3788_v12 = vmul.f32 0.17677669, %v3778_v19  ;;  %v3813_v25 = vadd.s32 %v9370_v59, %v3802_v53  ;;  %v3737_v27 = vpop.f32.mrf.mxu2 }
 0x3a7   : > { %v9409_v61 = vsel %vm3821_vm5, %v3788_v12, 0.0  ;;  %vm3823_vm7 = vcmp.lt.s32.totalorder %v3813_v25, 300 }
 0x3a8   : > { %v3761_v20 = vpop.f32.mrf.mxu3  ;;  %v3870_v55 = vsel %vm3857_vm1, %v9409_v61, -inf }
 0x3a9   : > { %v3762_v47 = vadd.f32 %v3761_v20, %v3727_v39  ;;  %3871 = vmax.xlane.f32.xlu2 %v3870_v55  ;;  %v5974_v39 = vld [vmem:[#allocation7 + $0x30] sm:$0xff] }
 0x3aa   : > { %4039 = vmatpush.bf16.msrb.mxu0 %v5974_v39 }
 0x3ab   : > { %v3779_v35 = vadd.f32 %v3762_v47, %v9354_v45  ;;  %v5970_v45 = vld [vmem:[#allocation7 + $0x10] sm:$0xff] }
 0x3ac   : > { %4097 = vmatpush.bf16.msra.mxu1 %v5970_v45  ;;  %5996 = vmatpush.bf16.msra.mxu2 %v5970_v45 }
 0x3ad   : > { %v3789_v50 = vmul.f32 0.17677669, %v3779_v35 }
 0x3ae   : > { %4040 = vmatpush.bf16.msrb.mxu0 %v5973_v3 }
 0x3af   : > { %v9416_v29 = vsel %vm3822_vm6, %v3789_v50, 0.0 }
 0x3b0   : > { %v3764_v17 = vpop.f32.mrf.mxu3  ;;  %v3873_v60 = vsel %vm3857_vm1, %v9416_v29, -inf  ;;  %4098 = vmatpush.bf16.msra.mxu1 %v5969_v48  ;;  %5997 = vmatpush.bf16.msra.mxu2 %v5969_v48 }
 0x3b1   : > { %v3765_v24 = vadd.f32 %v3764_v17, %v3730_v44  ;;  %3874 = vmax.xlane.f32.xlu2 %v3873_v60 }
 0x3b3   : > { %v3780_v33 = vadd.f32 %v3765_v24, %v9357_v5 }
 0x3b4   : > { %4099 = vmatpush.bf16.msra.mxu1 %v5968_v54  ;;  %5998 = vmatpush.bf16.msra.mxu2 %v5968_v54 }
 0x3b5   : > { %v3790_v2 = vmul.f32 0.17677669, %v3780_v33 }
 0x3b7   : > { %v9423_v52 = vsel %vm3823_vm7, %v3790_v2, 0.0 }
 0x3b8   : > { %v3766_v26 = vpop.f32.mrf.mxu3  ;;  %v3876_v31 = vsel %vm3857_vm1, %v9423_v52, -inf }
 0x3b9   : > { %v3767_v58 = vadd.f32 %v3766_v26, %v3732_v21  ;;  %3877 = vmax.xlane.f32.xlu0 %v3876_v31 }
 0x3bb   : > { %v3781_v5 = vadd.f32 %v3767_v58, %v9360_v14  ;;  %v3805_v14 = vadd.s32 72, %v9365_v6 }
 0x3bd   : > { %v3791_v16 = vmul.f32 0.17677669, %v3781_v5  ;;  %v3816_v15 = vadd.s32 %v9370_v59, %v3805_v14  ;;  %v5972_v59 = vld [vmem:[#allocation7 + $0x20] sm:$0xff] }
 0x3be   : > { %4041 = vmatpush.bf16.msrb.mxu0 %v5972_v59 }
 0x3bf   : > { %v9430_v49 = vsel %vm3824_vm8, %v3791_v16, 0.0  ;;  %vm3826_vm10 = vcmp.lt.s32.totalorder %v3816_v15, 300 }
 0x3c0   : > { %v3769_v63 = vpop.f32.mrf.mxu3  ;;  %v3879_v34 = vsel %vm3857_vm1, %v9430_v49, -inf }
 0x3c1   : > { %v3770_v11 = vadd.f32 %v3769_v63, %v3735_v22  ;;  %3880 = vmax.xlane.f32.xlu1 %v3879_v34 }
 0x3c2   : > { %4145 = vmatpush.bf16.msra.mxu0 %v5971_v8 }
 0x3c3   : > { %v3782_v42 = vadd.f32 %v3770_v11, %v9372_v7 }
 0x3c5   : > { %v3792_v62 = vmul.f32 0.17677669, %v3782_v42 }
 0x3c6   : > { %4146 = vmatpush.bf16.msra.mxu0 %v5970_v45 }
 0x3c7   : > { %v9437_v56 = vsel %vm3825_vm9, %v3792_v62, 0.0 }
 0x3c8   : > { %v3771_v13 = vpop.f32.mrf.mxu3  ;;  %v3882_v23 = vsel %vm3857_vm1, %v9437_v56, -inf }
 0x3c9   : > { %v3772_v10 = vadd.f32 %v3771_v13, %v3737_v27  ;;  %3883 = vmax.xlane.f32.xlu2 %v3882_v23 }
 0x3ca   : > { %4147 = vmatpush.bf16.msra.mxu0 %v5969_v48 }
 0x3cb   : > { %v3783_v30 = vadd.f32 %v3772_v10, %v9379_v43 }
 0x3cd   : > { %v3793_v9 = vmul.f32 0.17677669, %v3783_v30 }
 0x3ce   : > { %4148 = vmatpush.bf16.msra.mxu0 %v5968_v54 }
 0x3cf   : > { %v9443_v7 = vsel %vm3826_vm10, %v3793_v9, 0.0 }
 0x3d0   : > { %v3885_v6 = vsel %vm3857_vm1, %v9443_v7, -inf }
 0x3d1   : > { %3886 = vmax.xlane.f32.xlu0 %v3885_v6 }
 0x3fc   : > { %v3860_v43 = vpop.xlane.xlu0 %3859 }
 0x3fd   : > { %v3888_v40 = vsub.f32 %v9381_v37, %v3860_v43 }
 0x3ff   : > { %v3898_v32 = vmul.f32 1.442695, %v3888_v40 }
 0x401   : > { %6083 = vpow2.f32 %v3898_v32 }
 0x404   : > { %v3863_v19 = vpop.xlane.xlu0 %3862 }
 0x405   : > { %v3889_v18 = vsub.f32 %v9388_v46, %v3863_v19 }
 0x407   : > { %v6084_v12 = vpop.eup %6083  ;;  %v3900_v20 = vmul.f32 1.442695, %v3889_v18 }
 0x408   : > { %v3918_v55 = vpack.c.bf16 %v6084_v12, %v6084_v12 }
 0x409   : > { %6085 = vpow2.f32 %v3900_v20 }
 0x40a   : > { %v3928_v44 = vunpack.c.l.bf16 %v3918_v55  ;;  %v3980_v17 = vunpack.c.l.b16 %v3918_v55 }
 0x40c   : > { %v9449_v1 = vsub.f32 %v6084_v12, %v3928_v44  ;;  %v3866_v47 = vpop.xlane.xlu1 %3865 }
 0x40d   : > { %v3890_v35 = vsub.f32 %v9395_v57, %v3866_v47 }
 0x40f   : > { %v6086_v53 = vpop.eup %6085  ;;  %v3902_v50 = vmul.f32 1.442695, %v3890_v35 }
 0x410   : > { %v3919_v37 = vpack.c.bf16 %v6086_v53, %v6086_v53 }
 0x411   : > { %6087 = vpow2.f32 %v3902_v50 }
 0x412   : > { %v3929_v60 = vunpack.c.l.bf16 %v3919_v37  ;;  %v3981_v25 = vunpack.c.l.b16 %v3919_v37 }
 0x414   : > { %v9452_v24 = vsub.f32 %v6086_v53, %v3929_v60  ;;  %v3990_v46 = vpack.c.b16 %v3981_v25, %v3980_v17  ;;  %v3869_v8 = vpop.xlane.xlu1 %3868 }
 0x415   : > { %v3891_v21 = vsub.f32 %v9402_v28, %v3869_v8 }
 0x416   : > { %v3948_v33 = vpack.c.bf16 %v9452_v24, %v9449_v1  ;;  %5796 = vmatmul.msk.bf16.vlgmr.msrb.gmra.mxu0 %vm3857_vm1, %v3990_v46  ;;  %5817 = vmatmul.msk.bf16.vlgmr.msra.gmra.mxu1 %vm3857_vm1, %v3990_v46 }
 0x417   : > { %v3904_v57 = vmul.f32 1.442695, %v3891_v21  ;;  %v6088_v45 = vpop.eup %6087 }
 0x418   : > { %v3920_v41 = vpack.c.bf16 %v6088_v45, %v6088_v45 }
 0x419   : > { %6089 = vpow2.f32 %v3904_v57 }
 0x41a   : > { %v3930_v36 = vunpack.c.l.bf16 %v3920_v41  ;;  %v3982_v28 = vunpack.c.l.b16 %v3920_v41 }
 0x41c   : > { %v3872_v2 = vpop.xlane.xlu2 %3871  ;;  %v3940_v4 = vsub.f32 %v6088_v45, %v3930_v36 }
 0x41d   : > { %v3892_v48 = vsub.f32 %v9409_v61, %v3872_v2 }
 0x41f   : > { %v6090_v26 = vpop.eup %6089  ;;  %v3906_v31 = vmul.f32 1.442695, %v3892_v48 }
 0x420   : > { %v3921_v58 = vpack.c.bf16 %v6090_v26, %v6090_v26 }
 0x421   : > { %6091 = vpow2.f32 %v3906_v31 }
 0x422   : > { %v3931_v5 = vunpack.c.l.bf16 %v3921_v58  ;;  %v3983_v22 = vunpack.c.l.b16 %v3921_v58 }
 0x424   : > { %v3941_v16 = vsub.f32 %v6090_v26, %v3931_v5  ;;  %v3875_v63 = vpop.xlane.xlu2 %3874  ;;  %v3991_v34 = vpack.c.b16 %v3983_v22, %v3982_v28 }
 0x425   : > { %v3893_v51 = vsub.f32 %v9416_v29, %v3875_v63 }
 0x426   : > { %v3949_v11 = vpack.c.bf16 %v3941_v16, %v3940_v4  ;;  %5797 = vmatmul.msk.bf16.gmra.mxu0 %vm3857_vm1, %v3991_v34  ;;  %5818 = vmatmul.msk.bf16.gmra.mxu1 %vm3857_vm1, %v3991_v34 }
 0x427   : > { %v3908_v61 = vmul.f32 1.442695, %v3893_v51  ;;  %v6092_v42 = vpop.eup %6091 }
 0x428   : > { %5823 = vmatmul.msk.bf16.vlgmr.msra.gmra.mxu2 %vm3857_vm1, %v3949_v11  ;;  %v3922_v14 = vpack.c.bf16 %v6092_v42, %v6092_v42 }
 0x429   : > { %6093 = vpow2.f32 %v3908_v61 }
 0x42a   : > { %v3932_v15 = vunpack.c.l.bf16 %v3922_v14  ;;  %v3984_v29 = vunpack.c.l.b16 %v3922_v14 }
 0x42c   : > { %v3878_v62 = vpop.xlane.xlu0 %3877  ;;  %v3942_v6 = vsub.f32 %v6092_v42, %v3932_v15 }
 0x42d   : > { %v3894_v27 = vsub.f32 %v9423_v52, %v3878_v62 }
 0x42f   : > { %v6094_v13 = vpop.eup %6093  ;;  %v3910_v23 = vmul.f32 1.442695, %v3894_v27 }
 0x430   : > { %v3923_v10 = vpack.c.bf16 %v6094_v13, %v6094_v13 }
 0x431   : > { %6095 = vpow2.f32 %v3910_v23 }
 0x432   : > { %v3933_v30 = vunpack.c.l.bf16 %v3923_v10  ;;  %v3985_v9 = vunpack.c.l.b16 %v3923_v10 }
 0x434   : > { %v3943_v0 = vsub.f32 %v6094_v13, %v3933_v30  ;;  %v3881_v39 = vpop.xlane.xlu1 %3880  ;;  %v3992_v3 = vpack.c.b16 %v3985_v9, %v3984_v29 }
 0x435   : > { %v3895_v54 = vsub.f32 %v9430_v49, %v3881_v39 }
 0x436   : > { %5798 = vmatmul.msk.bf16.gmra.mxu0 %vm3857_vm1, %v3992_v3  ;;  %5819 = vmatmul.msk.bf16.gmra.mxu1 %vm3857_vm1, %v3992_v3  ;;  %v3950_v59 = vpack.c.bf16 %v3943_v0, %v3942_v6 }
 0x437   : > { %v3912_v52 = vmul.f32 1.442695, %v3895_v54  ;;  %v6096_v43 = vpop.eup %6095 }
 0x438   : > { %5824 = vmatmul.msk.bf16.gmra.mxu2 %vm3857_vm1, %v3950_v59  ;;  %v3924_v40 = vpack.c.bf16 %v6096_v43, %v6096_v43 }
 0x439   : > { %6097 = vpow2.f32 %v3912_v52 }
 0x43a   : > { %v3934_v20 = vunpack.c.l.bf16 %v3924_v40  ;;  %v3986_v49 = vunpack.c.l.b16 %v3924_v40 }
 0x43c   : > { %v3884_v32 = vpop.xlane.xlu2 %3883  ;;  %v3944_v35 = vsub.f32 %v6096_v43, %v3934_v20 }
 0x43d   : > { %v3896_v19 = vsub.f32 %v9437_v56, %v3884_v32 }
 0x43f   : > { %v6098_v18 = vpop.eup %6097  ;;  %v3914_v12 = vmul.f32 1.442695, %v3896_v19 }
 0x440   : > { %v3925_v55 = vpack.c.bf16 %v6098_v18, %v6098_v18 }
 0x441   : > { %6099 = vpow2.f32 %v3914_v12 }
 0x442   : > { %v3935_v44 = vunpack.c.l.bf16 %v3925_v55  ;;  %v3987_v47 = vunpack.c.l.b16 %v3925_v55 }
 0x444   : > { %v3945_v53 = vsub.f32 %v6098_v18, %v3935_v44  ;;  %v3887_v50 = vpop.xlane.xlu0 %3886  ;;  %v3993_v37 = vpack.c.b16 %v3987_v47, %v3986_v49 }
 0x445   : > { %v3897_v17 = vsub.f32 %v9443_v7, %v3887_v50 }
 0x446   : > { %5799 = vmatmul.msk.bf16.gmra.mxu0 %vm3857_vm1, %v3993_v37  ;;  %5820 = vmatmul.msk.bf16.gmra.mxu1 %vm3857_vm1, %v3993_v37  ;;  %v3951_v60 = vpack.c.bf16 %v3945_v53, %v3944_v35 }
 0x447   : > { %v3916_v56 = vmul.f32 1.442695, %v3897_v17  ;;  %v6100_v25 = vpop.eup %6099 }
 0x448   : > { %5825 = vmatmul.msk.bf16.gmra.mxu2 %vm3857_vm1, %v3951_v60  ;;  %v3926_v46 = vpack.c.bf16 %v6100_v25, %v6100_v25 }
 0x449   : > { %6101 = vpow2.f32 %v3916_v56 }
 0x44a   : > { %v3936_v21 = vunpack.c.l.bf16 %v3926_v46  ;;  %v3988_v41 = vunpack.c.l.b16 %v3926_v46 }
 0x44c   : > { %v3946_v48 = vsub.f32 %v6100_v25, %v3936_v21 }
 0x44f   : > { %v6102_v8 = vpop.eup %6101 }
 0x450   : > { %v3927_v57 = vpack.c.bf16 %v6102_v8, %v6102_v8 }
 0x452   : > { %v3937_v45 = vunpack.c.l.bf16 %v3927_v57  ;;  %v3989_v2 = vunpack.c.l.b16 %v3927_v57 }
 0x454   : > { %v3947_v26 = vsub.f32 %v6102_v8, %v3937_v45  ;;  %v3994_v7 = vpack.c.b16 %v3989_v2, %v3988_v41 }
 0x456   : > { %5800 = vmatmul.msk.bf16.gmra.mxu0 %vm3857_vm1, %v3994_v7  ;;  %5821 = vmatmul.msk.bf16.gmra.mxu1 %vm3857_vm1, %v3994_v7  ;;  %v3952_v31 = vpack.c.bf16 %v3947_v26, %v3946_v48 }
 0x458   : > { %5826 = vmatmul.msk.bf16.gmra.mxu2 %vm3857_vm1, %v3952_v31 }
 0x466   : > { %5822 = vmatmul.msk.bf16.vlgmr.msra.gmra.mxu0 %vm3857_vm1, %v3948_v33 }
 0x493   : > { %v4043_v36 = vpop.f32.mrf.mxu0  ;;  %v4101_v58 = vpop.f32.mrf.mxu1 }
 0x494   : > { %v9481_v5 = vadd.f32 %v4101_v58, %v4043_v36 }
 0x49b   : > { %v4045_v28 = vpop.f32.mrf.mxu0  ;;  %v4103_v22 = vpop.f32.mrf.mxu1 }
 0x49c   : > { %v9483_v4 = vadd.f32 %v4103_v22, %v4045_v28 }
 0x4a3   : > { %v4048_v16 = vpop.f32.mrf.mxu0  ;;  %v4106_v63 = vpop.f32.mrf.mxu1 }
 0x4a4   : > { %v4107_v34 = vadd.f32 %v4106_v63, %v4048_v16 }
 0x4ab   : > { %v4050_v51 = vpop.f32.mrf.mxu0  ;;  %v4108_v11 = vpop.f32.mrf.mxu1 }
 0x4ac   : > { %v4155_v61 = vpop.f32.mrf.mxu2  ;;  %v4109_v1 = vadd.f32 %v4108_v11, %v4050_v51 }
 0x4ad   : > { %v9485_v42 = vadd.f32 %v4155_v61, %v4107_v34 }
 0x4af   : > { %6103 = vrcp.f32 %v9485_v42  ;;  %v4224_v15 = vand.u32 2147483648, %v9485_v42  ;;  %v4222_v30 = vand.u32 2147483647, %v9485_v42  ;;  %vm4218_vm12 = vweird.f32 %v9485_v42 }
 0x4b1   : > { %v4225_v59 = vor.u32 1.1754944e-38, %v4224_v15  ;;  %vm4223_vm14 = vcmp.eq.f32.partialorder %v4222_v30, 8.507059e+37 }
 0x4b3   : > { %v4053_v24 = vpop.f32.mrf.mxu0  ;;  %v4111_v33 = vpop.f32.mrf.mxu1 }
 0x4b4   : > { %v4157_v14 = vpop.f32.mrf.mxu2  ;;  %v4112_v29 = vadd.f32 %v4111_v33, %v4053_v24 }
 0x4b5   : > { %v6104_v62 = vpop.eup %6103  ;;  %v9488_v27 = vadd.f32 %v4157_v14, %v4109_v1 }
 0x4b6   : > { %v4214_v13 = vmul.f32 %v6104_v62, %v9485_v42  ;;  %vm4219_vm11 = vweird.f32 %v6104_v62 }
 0x4b7   : > { %6105 = vrcp.f32 %v9488_v27  ;;  %vm4220_vm13 = vmor %vm4218_vm12, %vm4219_vm11  ;;  %v4238_v19 = vand.u32 2147483648, %v9488_v27  ;;  %v4236_v12 = vand.u32 2147483647, %v9488_v27  ;;  %vm4232_vm0 = vweird.f32 %v9488_v27 }
 0x4b8   : > { %v4215_v23 = vsub.f32 1.0, %v4214_v13 }
 0x4b9   : > { %v4239_v53 = vor.u32 1.1754944e-38, %v4238_v19  ;;  %vm4237_vm2 = vcmp.eq.f32.partialorder %v4236_v12, 8.507059e+37 }
 0x4ba   : > { %v4216_v10 = vmul.f32 %v6104_v62, %v4215_v23 }
 0x4bb   : > { %v4055_v9 = vpop.f32.mrf.mxu0  ;;  %v4113_v6 = vpop.f32.mrf.mxu1 }
 0x4bc   : > { %v4160_v0 = vpop.f32.mrf.mxu2  ;;  %v4217_v39 = vadd.f32 %v6104_v62, %v4216_v10  ;;  %v4114_v20 = vadd.f32 %v4113_v6, %v4055_v9 }
 0x4bd   : > { %v6106_v3 = vpop.eup %6105  ;;  %v9495_v54 = vadd.f32 %v4160_v0, %v4112_v29 }
 0x4be   : > { %v4221_v52 = vsel %vm4220_vm13, %v6104_v62, %v4217_v39  ;;  %v4228_v43 = vmul.f32 %v6106_v3, %v9488_v27  ;;  %vm4233_vm15 = vweird.f32 %v6106_v3 }
 0x4bf   : > { %6107 = vrcp.f32 %v9495_v54  ;;  %v4226_v40 = vsel %vm4223_vm14, %v4225_v59, %v4221_v52  ;;  %vm4234_vm1 = vmor %vm4232_vm0, %vm4233_vm15  ;;  %v4252_v25 = vand.u32 2147483648, %v9495_v54  ;;  %v4250_v8 = vand.u32 2147483647, %v9495_v54 }
 0x4c0   : > { %4419 = vrot.lane.b32.xlu1 %v4226_v40, %s6427_s8  ;;  %4379 = vrot.lane.b32.xlu2 %v4226_v40, %s6428_s13  ;;  %v4229_v32 = vsub.f32 1.0, %v4228_v43  ;;  %vm4246_vm4 = vweird.f32 %v9495_v54 }
 0x4c1   : > { %4339 = vrot.lane.b32.xlu0 %v4226_v40, %s6429_s3  ;;  %v4253_v26 = vor.u32 1.1754944e-38, %v4252_v25  ;;  %vm4251_vm6 = vcmp.eq.f32.partialorder %v4250_v8, 8.507059e+37 }
 0x4c2   : > { %v4230_v18 = vmul.f32 %v6106_v3, %v4229_v32 }
 0x4c3   : > { %v4058_v55 = vpop.f32.mrf.mxu0  ;;  %v4116_v50 = vpop.f32.mrf.mxu1 }
 0x4c4   : > { %v4162_v44 = vpop.f32.mrf.mxu2  ;;  %v4231_v49 = vadd.f32 %v6106_v3, %v4230_v18  ;;  %v4117_v21 = vadd.f32 %v4116_v50, %v4058_v55 }
 0x4c5   : > { %v6108_v47 = vpop.eup %6107  ;;  %v9505_v35 = vadd.f32 %v4162_v44, %v4114_v20 }
 0x4c6   : > { %v4235_v37 = vsel %vm4234_vm1, %v6106_v3, %v4231_v49  ;;  %v4242_v17 = vmul.f32 %v6108_v47, %v9495_v54  ;;  %vm4247_vm3 = vweird.f32 %v6108_v47 }
 0x4c7   : > { %6109 = vrcp.f32 %v9505_v35  ;;  %v4240_v60 = vsel %vm4237_vm2, %v4239_v53, %v4235_v37  ;;  %vm4248_vm5 = vmor %vm4246_vm4, %vm4247_vm3  ;;  %v4266_v33 = vand.u32 2147483648, %v9505_v35  ;;  %vm4260_vm8 = vweird.f32 %v9505_v35 }
 0x4c8   : > { %4519 = vrot.lane.b32.xlu2 %v4226_v40, %s6430_s20  ;;  %4381 = vrot.lane.b32.xlu1 %v4240_v60, %s6428_s13  ;;  %v4243_v56 = vsub.f32 1.0, %v4242_v17  ;;  %v4264_v62 = vand.u32 2147483647, %v9505_v35 }
 0x4c9   : > { %4421 = vrot.lane.b32.xlu0 %v4240_v60, %s6427_s8  ;;  %v4267_v9 = vor.u32 1.1754944e-38, %v4266_v33 }
 0x4ca   : > { %v4244_v46 = vmul.f32 %v6108_v47, %v4243_v56  ;;  %vm4265_vm10 = vcmp.eq.f32.partialorder %v4264_v62, 8.507059e+37 }
 0x4cb   : > { %v4060_v57 = vpop.f32.mrf.mxu0  ;;  %v4118_v58 = vpop.f32.mrf.mxu1 }
 0x4cc   : > { %v4165_v45 = vpop.f32.mrf.mxu2  ;;  %v4245_v41 = vadd.f32 %v6108_v47, %v4244_v46  ;;  %v4119_v22 = vadd.f32 %v4118_v58, %v4060_v57 }
 0x4cd   : > { %v6110_v2 = vpop.eup %6109  ;;  %v9515_v48 = vadd.f32 %v4165_v45, %v4117_v21 }
 0x4ce   : > { %v4249_v7 = vsel %vm4248_vm5, %v6108_v47, %v4245_v41  ;;  %v4256_v31 = vmul.f32 %v6110_v2, %v9505_v35  ;;  %vm4261_vm7 = vweird.f32 %v6110_v2 }
 0x4cf   : > { %6111 = vrcp.f32 %v9515_v48  ;;  %v4254_v36 = vsel %vm4251_vm6, %v4253_v26, %v4249_v7  ;;  %vm4262_vm9 = vmor %vm4260_vm8, %vm4261_vm7  ;;  %v4280_v59 = vand.u32 2147483648, %v9515_v48  ;;  %vm4274_vm12 = vweird.f32 %v9515_v48 }
 0x4d0   : > { %4521 = vrot.lane.b32.xlu1 %v4240_v60, %s6430_s20  ;;  %4341 = vrot.lane.b32.xlu2 %v4240_v60, %s6429_s3  ;;  %v4257_v28 = vsub.f32 1.0, %v4256_v31  ;;  %v4278_v43 = vand.u32 2147483647, %v9515_v48 }
 0x4d1   : > { %4383 = vrot.lane.b32.xlu0 %v4254_v36, %s6428_s13  ;;  %v4281_v19 = vor.u32 1.1754944e-38, %v4280_v59 }
 0x4d2   : > { %v4258_v34 = vmul.f32 %v6110_v2, %v4257_v28  ;;  %vm4279_vm14 = vcmp.eq.f32.partialorder %v4278_v43, 8.507059e+37 }
 0x4d3   : > { %v4063_v16 = vpop.f32.mrf.mxu0  ;;  %v4121_v14 = vpop.f32.mrf.mxu1 }
 0x4d4   : > { %v4167_v63 = vpop.f32.mrf.mxu2  ;;  %v4259_v1 = vadd.f32 %v6110_v2, %v4258_v34  ;;  %v4122_v29 = vadd.f32 %v4121_v14, %v4063_v16 }
 0x4d5   : > { %v6112_v51 = vpop.eup %6111  ;;  %v9522_v11 = vadd.f32 %v4167_v63, %v4119_v22 }
 0x4d6   : > { %v4270_v61 = vmul.f32 %v6112_v51, %v9515_v48  ;;  %v4263_v15 = vsel %vm4262_vm9, %v6110_v2, %v4259_v1  ;;  %vm4275_vm11 = vweird.f32 %v6112_v51 }
 0x4d7   : > { %6113 = vrcp.f32 %v9522_v11  ;;  %v4268_v39 = vsel %vm4265_vm10, %v4267_v9, %v4263_v15  ;;  %vm4276_vm13 = vmor %vm4274_vm12, %vm4275_vm11  ;;  %v4294_v47 = vand.u32 2147483648, %v9522_v11  ;;  %vm4288_vm0 = vweird.f32 %v9522_v11 }
 0x4d8   : > { %4423 = vrot.lane.b32.xlu2 %v4254_v36, %s6427_s8  ;;  %4343 = vrot.lane.b32.xlu1 %v4254_v36, %s6429_s3  ;;  %v4271_v24 = vsub.f32 1.0, %v4270_v61 }
 0x4d9   : > { %4523 = vrot.lane.b32.xlu0 %v4254_v36, %s6430_s20  ;;  %v4295_v60 = vor.u32 1.1754944e-38, %v4294_v47 }
 0x4da   : > { %v4272_v10 = vmul.f32 %v6112_v51, %v4271_v24 }
 0x4db   : > { %v4065_v13 = vpop.f32.mrf.mxu0  ;;  %v4123_v49 = vpop.f32.mrf.mxu1 }
 0x4dc   : > { %v4170_v23 = vpop.f32.mrf.mxu2  ;;  %v4273_v3 = vadd.f32 %v6112_v51, %v4272_v10  ;;  %v4124_v37 = vadd.f32 %v4123_v49, %v4065_v13 }
 0x4dd   : > { %v6114_v30 = vpop.eup %6113  ;;  %v9533_v0 = vadd.f32 %v4170_v23, %v4122_v29 }
 0x4de   : > { %v4284_v6 = vmul.f32 %v6114_v30, %v9522_v11  ;;  %v4277_v32 = vsel %vm4276_vm13, %v6112_v51, %v4273_v3  ;;  %vm4289_vm15 = vweird.f32 %v6114_v30 }
 0x4df   : > { %6115 = vrcp.f32 %v9533_v0  ;;  %v4282_v20 = vsel %vm4279_vm14, %v4281_v19, %v4277_v32  ;;  %vm4290_vm1 = vmor %vm4288_vm0, %vm4289_vm15  ;;  %v4308_v31 = vand.u32 2147483648, %v9533_v0  ;;  %vm4302_vm4 = vweird.f32 %v9533_v0 }
 0x4e0   : > { %4425 = vrot.lane.b32.xlu1 %v4268_v39, %s6427_s8  ;;  %4385 = vrot.lane.b32.xlu2 %v4268_v39, %s6428_s13  ;;  %v4285_v52 = vsub.f32 1.0, %v4284_v6  ;;  %v4306_v36 = vand.u32 2147483647, %v9533_v0 }
 0x4e1   : > { %4345 = vrot.lane.b32.xlu0 %v4268_v39, %s6429_s3  ;;  %v4309_v22 = vor.u32 1.1754944e-38, %v4308_v31 }
 0x4e2   : > { %v4286_v18 = vmul.f32 %v6114_v30, %v4285_v52  ;;  %vm4307_vm6 = vcmp.eq.f32.partialorder %v4306_v36, 8.507059e+37 }
 0x4e3   : > { %v4150_v40 = vpop.f32.mrf.mxu0 }
 0x4e4   : > { %v9543_v12 = vadd.f32 %v4150_v40, %v9481_v5  ;;  %v4287_v44 = vadd.f32 %v6114_v30, %v4286_v18  ;;  %v4292_v5 = vand.u32 2147483647, %v9522_v11  ;;  %v4172_v53 = vpop.f32.mrf.mxu2 }
 0x4e5   : > { %v6116_v55 = vpop.eup %6115  ;;  %v9553_v56 = vadd.f32 %v4172_v53, %v4124_v37 }
 0x4e6   : > { %6117 = vrcp.f32 %v9543_v12  ;;  %v4298_v50 = vmul.f32 %v6116_v55, %v9533_v0  ;;  %v4291_v17 = vsel %vm4290_vm1, %v6114_v30, %v4287_v44  ;;  %vm4293_vm2 = vcmp.eq.f32.partialorder %v4292_v5, 8.507059e+37 }
 0x4e7   : > { %v4296_v25 = vsel %vm4293_vm2, %v4295_v60, %v4291_v17  ;;  %6119 = vrcp.f32 %v9553_v56  ;;  %vm4303_vm3 = vweird.f32 %v6116_v55  ;;  %v4196_v61 = vand.u32 2147483648, %v9543_v12 }
 0x4e8   : > { %4525 = vrot.lane.b32.xlu2 %v4268_v39, %s6430_s20  ;;  %4387 = vrot.lane.b32.xlu1 %v4282_v20, %s6428_s13  ;;  %v4299_v46 = vsub.f32 1.0, %v4298_v50  ;;  %vm4304_vm5 = vmor %vm4302_vm4, %vm4303_vm3  ;;  %vm4190_vm8 = vweird.f32 %v9543_v12  ;;  %v4194_v1 = vand.u32 2147483647, %v9543_v12  ;;  %v4322_v10 = vand.u32 2147483648, %v9553_v56 }
 0x4e9   : > { %4427 = vrot.lane.b32.xlu0 %v4282_v20, %s6427_s8  ;;  %v4197_v62 = vor.u32 1.1754944e-38, %v4196_v61  ;;  %vm4316_vm12 = vweird.f32 %v9553_v56  ;;  %v4320_v30 = vand.u32 2147483647, %v9553_v56 }
 0x4ea   : > { %v4300_v57 = vmul.f32 %v6116_v55, %v4299_v46  ;;  %vm4195_vm10 = vcmp.eq.f32.partialorder %v4194_v1, 8.507059e+37  ;;  %v4323_v6 = vor.u32 1.1754944e-38, %v4322_v10 }
 0x4eb   : > { %v4152_v21 = vpop.f32.mrf.mxu0  ;;  %vm4321_vm14 = vcmp.eq.f32.partialorder %v4320_v30, 8.507059e+37 }
 0x4ec   : > { %v6118_v8 = vpop.eup %6117  ;;  %v9561_v41 = vadd.f32 %v4152_v21, %v9483_v4  ;;  %v4301_v2 = vadd.f32 %v6116_v55, %v4300_v57 }
 0x4ed   : > { %v4186_v45 = vmul.f32 %v6118_v8, %v9543_v12  ;;  %v6120_v7 = vpop.eup %6119  ;;  %vm4191_vm7 = vweird.f32 %v6118_v8 }
 0x4ee   : > { %6121 = vrcp.f32 %v9561_v41  ;;  %v4305_v4 = vsel %vm4304_vm5, %v6116_v55, %v4301_v2  ;;  %v4312_v28 = vmul.f32 %v6120_v7, %v9553_v56  ;;  %vm4192_vm9 = vmor %vm4190_vm8, %vm4191_vm7  ;;  %vm4317_vm11 = vweird.f32 %v6120_v7 }
 0x4ef   : > { %v4187_v26 = vsub.f32 1.0, %v4186_v45  ;;  %v4310_v16 = vsel %vm4307_vm6, %v4309_v22, %v4305_v4  ;;  %vm4318_vm13 = vmor %vm4316_vm12, %vm4317_vm11  ;;  %v4210_v59 = vand.u32 2147483648, %v9561_v41  ;;  %vm4204_vm0 = vweird.f32 %v9561_v41 }
 0x4f0   : > { %4527 = vrot.lane.b32.xlu1 %v4282_v20, %s6430_s20  ;;  %4347 = vrot.lane.b32.xlu2 %v4282_v20, %s6429_s3  ;;  %v4313_v34 = vsub.f32 1.0, %v4312_v28  ;;  %v4208_v52 = vand.u32 2147483647, %v9561_v41 }
 0x4f1   : > { %4389 = vrot.lane.b32.xlu0 %v4296_v25, %s6428_s13  ;;  %v4188_v58 = vmul.f32 %v6118_v8, %v4187_v26  ;;  %v4211_v40 = vor.u32 1.1754944e-38, %v4210_v59 }
 0x4f2   : > { %v4314_v33 = vmul.f32 %v6120_v7, %v4313_v34  ;;  %vm4209_vm2 = vcmp.eq.f32.partialorder %v4208_v52, 8.507059e+37 }
 0x4f3   : > { %v4189_v63 = vadd.f32 %v6118_v8, %v4188_v58 }
 0x4f4   : > { %v6122_v51 = vpop.eup %6121  ;;  %v4315_v23 = vadd.f32 %v6120_v7, %v4314_v33 }
 0x4f5   : > { %v4193_v24 = vsel %vm4192_vm9, %v6118_v8, %v4189_v63  ;;  %v4200_v14 = vmul.f32 %v6122_v51, %v9561_v41  ;;  %vm4205_vm15 = vweird.f32 %v6122_v51 }
 0x4f6   : > { %v4198_v13 = vsel %vm4195_vm10, %v4197_v62, %v4193_v24  ;;  %v4319_v29 = vsel %vm4318_vm13, %v6120_v7, %v4315_v23  ;;  %vm4206_vm1 = vmor %vm4204_vm0, %vm4205_vm15 }
 0x4f7   : > { %v4201_v15 = vsub.f32 1.0, %v4200_v14  ;;  %v4324_v39 = vsel %vm4321_vm14, %v4323_v6, %v4319_v29 }
 0x4f8   : > { %4429 = vrot.lane.b32.xlu2 %v4296_v25, %s6427_s8  ;;  %4349 = vrot.lane.b32.xlu1 %v4296_v25, %s6429_s3 }
 0x4f9   : > { %4529 = vrot.lane.b32.xlu0 %v4296_v25, %s6430_s20  ;;  %v4202_v9 = vmul.f32 %v6122_v51, %v4201_v15 }
 0x4fb   : > { %v4203_v3 = vadd.f32 %v6122_v51, %v4202_v9 }
 0x4fd   : > { %v4207_v43 = vsel %vm4206_vm1, %v6122_v51, %v4203_v3 }
 0x4fe   : > { %v4212_v32 = vsel %vm4209_vm2, %v4211_v40, %v4207_v43 }
 0x500   : > { %4431 = vrot.lane.b32.xlu1 %v4310_v16, %s6427_s8  ;;  %4391 = vrot.lane.b32.xlu2 %v4310_v16, %s6428_s13 }
 0x501   : > { %4351 = vrot.lane.b32.xlu0 %v4310_v16, %s6429_s3 }
 0x508   : > { %4335 = vrot.lane.b32.xlu1 %v4198_v13, %s6429_s3  ;;  %4531 = vrot.lane.b32.xlu2 %v4310_v16, %s6430_s20 }
 0x509   : > { %4415 = vrot.lane.b32.xlu0 %v4198_v13, %s6427_s8 }
 0x510   : > { %4375 = vrot.lane.b32.xlu1 %v4198_v13, %s6428_s13  ;;  %4353 = vrot.lane.b32.xlu2 %v4324_v39, %s6429_s3 }
 0x511   : > { %4433 = vrot.lane.b32.xlu0 %v4324_v39, %s6427_s8 }
 0x518   : > { %4393 = vrot.lane.b32.xlu1 %v4324_v39, %s6428_s13  ;;  %4337 = vrot.lane.b32.xlu2 %v4212_v32, %s6429_s3 }
 0x519   : > { %4377 = vrot.lane.b32.xlu0 %v4212_v32, %s6428_s13 }
 0x51a   : > { %v4380_v19 = vpop.permute.xlu2 %4379 }
 0x51b   : > { %v9600_v20 = vmul.f32 %v4380_v19, %v9485_v42 }
 0x51d   : > { %v4557_v47 = vmul.f32 %v9600_v20, %v9600_v20 }
 0x520   : > { %4515 = vrot.lane.b32.xlu1 %v4198_v13, %s6430_s20  ;;  %4417 = vrot.lane.b32.xlu2 %v4212_v32, %s6427_s8 }
 0x521   : > { %4517 = vrot.lane.b32.xlu0 %v4212_v32, %s6430_s20 }
 0x522   : > { %v9596_v18 = vpop.permute.xlu2 %4519 }
 0x528   : > { %4533 = vrot.lane.b32.xlu1 %v4324_v39, %s6430_s20  ;;  %v6431_v39 = vmov 2  }
 0x529   : > { %6071 = vset.pattern.permute.xlu2 %v6431_v39  ;;  %6073 = vset.pattern.permute.xlu1 %v6431_v39 }
 0x52a   : > { %v4342_v55 = vpop.permute.xlu2 %4341  ;;  %6072 = vset.pattern.permute.xlu0 %v6431_v39 }
 0x52b   : > { %v9603_v44 = vmul.f32 %v4342_v55, %v9488_v27 }
 0x52d   : > { %v4458_v49 = vmul.f32 %v9603_v44, %v9603_v44 }
 0x52f   : > { %4481 = vrot.lane.b32.xlu2 %v4458_v49, %s6428_s13 }
 0x530   : > { %4579 = vrot.lane.b32.xlu1 %v4557_v47, %s6428_s13 }
 0x532   : > { %v9611_v5 = vpop.permute.xlu2 %4423  ;;  %v9613_v53 = vpop.permute.xlu1 %4419 }
 0x533   : > { %v4340_v50 = vpop.permute.xlu0 %4339 }
 0x534   : > { %v9616_v37 = vmul.f32 %v4340_v50, %v9485_v42 }
 0x536   : > { %v4457_v17 = vmul.f32 %v9616_v37, %v9616_v37 }
 0x538   : > { %4479 = vrot.lane.b32.xlu0 %v4457_v17, %s6428_s13 }
 0x53a   : > { %v4386_v60 = vpop.permute.xlu2 %4385  ;;  %v4382_v25 = vpop.permute.xlu1 %4381 }
 0x53b   : > { %v9621_v46 = vpop.permute.xlu0 %4421  ;;  %v9624_v8 = vmul.f32 %v4382_v25, %v9488_v27  ;;  %v9654_v63 = vmul.f32 %v4386_v60, %v9505_v35 }
 0x53d   : > { %v4558_v21 = vmul.f32 %v9624_v8, %v9624_v8  ;;  %v4560_v24 = vmul.f32 %v9654_v63, %v9654_v63 }
 0x540   : > { %4581 = vrot.lane.b32.xlu0 %v4558_v21, %s6428_s13 }
 0x542   : > { %v9629_v57 = vpop.permute.xlu2 %4525  ;;  %v9631_v45 = vpop.permute.xlu1 %4521 }
 0x543   : > { %v4384_v2 = vpop.permute.xlu0 %4383 }
 0x544   : > { %v9634_v26 = vmul.f32 %v4384_v2, %v9495_v54 }
 0x546   : > { %v4559_v7 = vmul.f32 %v9634_v26, %v9634_v26 }
 0x548   : > { %4583 = vrot.lane.b32.xlu2 %v4559_v7, %s6428_s13 }
 0x54a   : > { %v4348_v31 = vpop.permute.xlu2 %4347  ;;  %v4344_v36 = vpop.permute.xlu1 %4343 }
 0x54b   : > { %v9639_v4 = vpop.permute.xlu0 %4523  ;;  %v9642_v58 = vmul.f32 %v4348_v31, %v9515_v48  ;;  %v9645_v28 = vmul.f32 %v4344_v36, %v9495_v54 }
 0x54d   : > { %v4461_v22 = vmul.f32 %v9642_v58, %v9642_v58  ;;  %v4459_v16 = vmul.f32 %v9645_v28, %v9645_v28 }
 0x54f   : > { %4483 = vrot.lane.b32.xlu1 %v4459_v16, %s6428_s13  ;;  %v9716_v16 = vmul.f32 %v9621_v46, %v9488_v27 }
 0x550   : > { %4487 = vrot.lane.b32.xlu2 %v4461_v22, %s6428_s13 }
 0x552   : > { %v9656_v34 = vpop.permute.xlu2 %4429  ;;  %v9658_v51 = vpop.permute.xlu1 %4425 }
 0x553   : > { %v4346_v61 = vpop.permute.xlu0 %4345 }
 0x554   : > { %v9661_v1 = vmul.f32 %v4346_v61, %v9505_v35 }
 0x556   : > { %v4460_v33 = vmul.f32 %v9661_v1, %v9661_v1 }
 0x557   : > { %4585 = vrot.lane.b32.xlu1 %v4560_v24, %s6428_s13 }
 0x558   : > { %4485 = vrot.lane.b32.xlu0 %v4460_v33, %s6428_s13 }
 0x55a   : > { %v4392_v14 = vpop.permute.xlu2 %4391  ;;  %v4388_v62 = vpop.permute.xlu1 %4387 }
 0x55b   : > { %v9669_v13 = vpop.permute.xlu0 %4427  ;;  %v9672_v23 = vmul.f32 %v4388_v62, %v9515_v48  ;;  %v9692_v32 = vmul.f32 %v4392_v14, %v9533_v0 }
 0x55d   : > { %v4561_v15 = vmul.f32 %v9672_v23, %v9672_v23  ;;  %v4563_v47 = vmul.f32 %v9692_v32, %v9692_v32 }
 0x560   : > { %4587 = vrot.lane.b32.xlu0 %v4561_v15, %s6428_s13 }
 0x562   : > { %v9677_v10 = vpop.permute.xlu1 %4527  ;;  %v9679_v29 = vpop.permute.xlu2 %4531 }
 0x563   : > { %v4390_v30 = vpop.permute.xlu0 %4389 }
 0x564   : > { %v4412_v9 = vmul.f32 %v4390_v30, %v9522_v11 }
 0x566   : > { %v4562_v6 = vmul.f32 %v4412_v9, %v4412_v9 }
 0x568   : > { %4589 = vrot.lane.b32.xlu2 %v4562_v6, %s6428_s13 }
 0x56a   : > { %v4350_v3 = vpop.permute.xlu1 %4349  ;;  %v4354_v43 = vpop.permute.xlu2 %4353 }
 0x56b   : > { %v9683_v59 = vpop.permute.xlu0 %4529  ;;  %v9686_v52 = vmul.f32 %v4350_v3, %v9522_v11  ;;  %v9726_v39 = vmul.f32 %v4354_v43, %v9553_v56 }
 0x56d   : > { %v4462_v40 = vmul.f32 %v9686_v52, %v9686_v52 }
 0x56f   : > { %4489 = vrot.lane.b32.xlu1 %v4462_v40, %s6428_s13  ;;  %v4464_v40 = vmul.f32 %v9726_v39, %v9726_v39 }
 0x572   : > { %v9694_v19 = vpop.permute.xlu1 %4431  ;;  %v4338_v17 = vpop.permute.xlu2 %4337 }
 0x573   : > { %v4352_v55 = vpop.permute.xlu0 %4351  ;;  %v9730_v46 = vmul.f32 %v4338_v17, %v9561_v41  ;;  %v4549_v17 = vmul.f32 %v9639_v4, %v9495_v54  ;;  %v9760_v4 = vmul.f32 %v9669_v13, %v9515_v48  ;;  %v4548_v13 = vmul.f32 %v9631_v45, %v9488_v27 }
 0x574   : > { %v9697_v49 = vmul.f32 %v4352_v55, %v9533_v0 }
 0x575   : > { %v4456_v55 = vmul.f32 %v9730_v46, %v9730_v46 }
 0x576   : > { %v4463_v50 = vmul.f32 %v9697_v49, %v9697_v49 }
 0x577   : > { %4591 = vrot.lane.b32.xlu1 %v4563_v47, %s6428_s13 }
 0x578   : > { %4491 = vrot.lane.b32.xlu0 %v4463_v50, %s6428_s13  ;;  %v4547_v50 = vmul.f32 %v9596_v18, %v9485_v42  ;;  %v9756_v18 = vmul.f32 %v9613_v53, %v9485_v42 }
 0x57a   : > { %v4336_v60 = vpop.permute.xlu1 %4335  ;;  %v9707_v21 = vpop.permute.xlu2 %4417 }
 0x57b   : > { %v9705_v25 = vpop.permute.xlu0 %4415  ;;  %v4365_v22 = vmul.f32 %v4336_v60, %v9543_v12 }
 0x57d   : > { %v4455_v14 = vmul.f32 %v4365_v22, %v4365_v22 }
 0x582   : > { %v4376_v2 = vpop.permute.xlu1 %4375 }
 0x583   : > { %v9709_v7 = vpop.permute.xlu0 %4433  ;;  %v4405_v31 = vmul.f32 %v4376_v2, %v9543_v12 }
 0x585   : > { %v4555_v36 = vmul.f32 %v4405_v31, %v4405_v31  ;;  %4992 = vperm.xlu2 %6071, %v4405_v31  }
 0x587   : > { %4575 = vrot.lane.b32.xlu0 %v4555_v36, %s6428_s13 }
 0x589   : > { %v9718_v61 = vpop.permute.xlu2 %4481 }
 0x58a   : > { %v4508_v24 = vsub.f32 %v9716_v16, %v9718_v61  ;;  %v4394_v33 = vpop.permute.xlu1 %4393 }
 0x58b   : > { %v4378_v62 = vpop.permute.xlu0 %4377  ;;  %v4414_v15 = vmul.f32 %v4394_v33, %v9553_v56 }
 0x58c   : > { %v4406_v30 = vmul.f32 %v4378_v62, %v9561_v41 }
 0x58d   : > { %v4564_v6 = vmul.f32 %v4414_v15, %v4414_v15  ;;  %4475 = vrot.lane.b32.xlu2 %v4455_v14, %s6428_s13 }
 0x58e   : > { %4997 = vperm.xlu1 %6073, %v4406_v30   ;;  %v4556_v47 = vmul.f32 %v4406_v30, %v4406_v30 }
 0x58f   : > { %4593 = vrot.lane.b32.xlu0 %v4564_v6, %s6428_s13 }
 0x592   : > { %v9732_v3 = vpop.permute.xlu1 %4515 }
 0x593   : > { %v9749_v60 = vpop.permute.xlu0 %4517 }
 0x595   : > { %4493 = vrot.lane.b32.xlu2 %v4464_v40, %s6428_s13 }
 0x596   : > { %4477 = vrot.lane.b32.xlu1 %v4456_v55, %s6428_s13 }
 0x597   : > { %5002 = vperm.xlu0 %6072, %v9600_v20  }
 0x59a   : > { %v9741_v43 = vpop.permute.xlu1 %4533 }
 0x59d   : > { %4577 = vrot.lane.b32.xlu2 %v4556_v47, %s6428_s13 }
 0x59e   : > { %5012 = vperm.xlu1 %6073, %v9634_v26   ;;  %v6432_v26 = vmov 1  }
 0x59f   : > { %5027 = vperm.xlu0 %6072, %v4412_v9  }
 0x5a2   : > { %v4584_v2 = vpop.permute.xlu2 %4583  ;;  %v4580_v31 = vpop.permute.xlu1 %4579 }
 0x5a3   : > { %v4609_v36 = vsub.f32 %v4549_v17, %v4584_v2  ;;  %v4607_v20 = vsub.f32 %v4547_v50, %v4580_v31 }
 0x5a5   : > { %v4749_v33 = vmax.f32 %v4609_v36, 1e-10  ;;  %v4747_v14 = vmax.f32 %v4607_v20, 1e-10  ;;  %5007 = vperm.xlu2 %6071, %v9624_v8  }
 0x5a6   : > { %5022 = vperm.xlu1 %6073, %v9672_v23  }
 0x5a7   : > { %6123 = vrsqrt.f32 %v4749_v33  ;;  %6074 = vset.pattern.permute.xlu0 %v6432_v26  ;;  %vm4786_vm3 = vcmp.eq.f32.partialorder %v4747_v14, inf  ;;  %v4789_v27 = vand.u32 2147483648, %v4747_v14  ;;  %vm4810_vm4 = vcmp.eq.f32.partialorder %v4749_v33, inf }
 0x5a8   : > { %6125 = vrsqrt.f32 %v4747_v14  ;;  %5052 = vperm.xlu0 %6074, %v4365_v22   ;;  %vm4788_vm5 = vcmp.eq.f32.partialorder %v4747_v14, 0.0  ;;  %vm4812_vm6 = vcmp.eq.f32.partialorder %v4749_v33, 0.0 }
 0x5aa   : > { %v9762_v9 = vpop.permute.xlu0 %4479  ;;  %v9764_v62 = vpop.permute.xlu2 %4487 }
 0x5ab   : > { %v4507_v8 = vsub.f32 %v9756_v18, %v9762_v9  ;;  %v4511_v23 = vsub.f32 %v9760_v4, %v9764_v62 }
 0x5ad   : > { %v6124_v30 = vpop.eup %6123  ;;  %5017 = vperm.xlu2 %6071, %v9654_v63  }
 0x5ae   : > { %v6126_v22 = vpop.eup %6125  ;;  %5037 = vperm.xlu1 %6073, %v4414_v15   ;;  %v4804_v42 = vmul.f32 %v6124_v30, %v4749_v33 }
 0x5af   : > { %v4780_v53 = vmul.f32 %v6126_v22, %v4747_v14 }
 0x5b0   : > { %v4805_v6 = vmul.f32 %v6124_v30, %v4804_v42 }
 0x5b1   : > { %v4781_v40 = vmul.f32 %v6126_v22, %v4780_v53 }
 0x5b2   : > { %v4582_v55 = vpop.permute.xlu0 %4581  ;;  %v4806_v47 = vmul.f32 0.5, %v4805_v6 }
 0x5b3   : > { %v4608_v50 = vsub.f32 %v4548_v13, %v4582_v55  ;;  %v4782_v17 = vmul.f32 0.5, %v4781_v40  ;;  %v4813_v13 = vand.u32 2147483648, %v4749_v33 }
 0x5b4   : > { %v4807_v2 = vsub.f32 1.5, %v4806_v47 }
 0x5b5   : > { %v4748_v31 = vmax.f32 %v4608_v50, 1e-10  ;;  %5032 = vperm.xlu2 %6071, %v9692_v32   ;;  %v4783_v36 = vsub.f32 1.5, %v4782_v17 }
 0x5b6   : > { %6076 = vset.pattern.permute.xlu1 %v6432_v26  ;;  %v4808_v63 = vmul.f32 %v6124_v30, %v4807_v2  ;;  %v9782_v30 = vmul.f32 %v9611_v5, %v9495_v54  ;;  %v4550_v54 = vmul.f32 %v9629_v57, %v9505_v35 }
 0x5b7   : > { %6127 = vrsqrt.f32 %v4748_v31  ;;  %5062 = vperm.xlu1 %6076, %v9616_v37   ;;  %v4784_v15 = vmul.f32 %v6126_v22, %v4783_v36  ;;  %v4552_v22 = vmul.f32 %v9683_v59, %v9522_v11  ;;  %vm4798_vm7 = vcmp.eq.f32.partialorder %v4748_v31, inf }
 0x5b8   : > { %v4809_v20 = vmul.f32 %v4808_v63, %v4749_v33  ;;  %v9794_v63 = vmul.f32 %v9658_v51, %v9505_v35  ;;  %vm4800_vm8 = vcmp.eq.f32.partialorder %v4748_v31, 0.0  ;;  %v4551_v51 = vmul.f32 %v9677_v10, %v9515_v48 }
 0x5b9   : > { %v4785_v42 = vmul.f32 %v4784_v15, %v4747_v14  ;;  %v4801_v15 = vand.u32 2147483648, %v4748_v31 }
 0x5ba   : > { %v4811_v53 = vsel %vm4810_vm4, %v4749_v33, %v4809_v20 }
 0x5bb   : > { %v4787_v45 = vsel %vm4786_vm3, %v4747_v14, %v4785_v42  ;;  %v4814_v37 = vsel %vm4812_vm6, %v4813_v13, %v4811_v53 }
 0x5bc   : > { %v4790_v6 = vsel %vm4788_vm5, %v4789_v27, %v4787_v45 }
 0x5bd   : > { %v6128_v40 = vpop.eup %6127  ;;  %4889 = vrot.lane.b32.xlu0 %v4790_v6, %s6433_s9  ;;  %6075 = vset.pattern.permute.xlu2 %v6432_v26 }
 0x5be   : > { %5057 = vperm.xlu2 %6075, %v9730_v46   ;;  %v4792_v32 = vmul.f32 %v6128_v40, %v4748_v31 }
 0x5bf   : > { %4893 = vrot.lane.b32.xlu1 %v4814_v37, %s6433_s9 }
 0x5c0   : > { %v4793_v14 = vmul.f32 %v6128_v40, %v4792_v32 }
 0x5c1   : > { %v9786_v55 = vpop.permute.xlu1 %4483 }
 0x5c2   : > { %v4590_v47 = vpop.permute.xlu2 %4589  ;;  %v4509_v33 = vsub.f32 %v9782_v30, %v9786_v55  ;;  %v4794_v50 = vmul.f32 0.5, %v4793_v14 }
 0x5c3   : > { %v4612_v46 = vsub.f32 %v4552_v22, %v4590_v47 }
 0x5c4   : > { %v4795_v17 = vsub.f32 1.5, %v4794_v50 }
 0x5c5   : > { %v4752_v2 = vmax.f32 %v4612_v46, 1e-10 }
 0x5c6   : > { %v4796_v36 = vmul.f32 %v6128_v40, %v4795_v17 }
 0x5c7   : > { %6129 = vrsqrt.f32 %v4752_v2  ;;  %vm4846_vm9 = vcmp.eq.f32.partialorder %v4752_v2, inf  ;;  %vm4848_vm10 = vcmp.eq.f32.partialorder %v4752_v2, 0.0 }
 0x5c8   : > { %v4797_v5 = vmul.f32 %v4796_v36, %v4748_v31  ;;  %v4849_v36 = vand.u32 2147483648, %v4752_v2 }
 0x5c9   : > { %v4586_v59 = vpop.permute.xlu1 %4585 }
 0x5ca   : > { %v9796_v20 = vpop.permute.xlu0 %4485  ;;  %v4610_v42 = vsub.f32 %v4550_v54, %v4586_v59  ;;  %v4799_v27 = vsel %vm4798_vm7, %v4748_v31, %v4797_v5 }
 0x5cb   : > { %v4510_v45 = vsub.f32 %v9794_v63, %v9796_v20  ;;  %v4802_v53 = vsel %vm4800_vm8, %v4801_v15, %v4799_v27 }
 0x5cc   : > { %v4750_v6 = vmax.f32 %v4610_v42, 1e-10  ;;  %4891 = vrot.lane.b32.xlu2 %v4802_v53, %s6433_s9 }
 0x5cd   : > { %v6130_v57 = vpop.eup %6129 }
 0x5ce   : > { %6131 = vrsqrt.f32 %v4750_v6  ;;  %v4840_v13 = vmul.f32 %v6130_v57, %v4752_v2  ;;  %vm4822_vm11 = vcmp.eq.f32.partialorder %v4750_v6, inf  ;;  %vm4824_vm12 = vcmp.eq.f32.partialorder %v4750_v6, 0.0 }
 0x5d0   : > { %v4841_v35 = vmul.f32 %v6130_v57, %v4840_v13  ;;  %v4825_v13 = vand.u32 2147483648, %v4750_v6 }
 0x5d2   : > { %v4588_v40 = vpop.permute.xlu0 %4587  ;;  %v4842_v37 = vmul.f32 0.5, %v4841_v35 }
 0x5d3   : > { %v4611_v32 = vsub.f32 %v4551_v51, %v4588_v40 }
 0x5d4   : > { %v6132_v14 = vpop.eup %6131  ;;  %v4843_v22 = vsub.f32 1.5, %v4842_v37 }
 0x5d5   : > { %v4751_v31 = vmax.f32 %v4611_v32, 1e-10  ;;  %v4816_v47 = vmul.f32 %v6132_v14, %v4750_v6 }
 0x5d6   : > { %v4844_v50 = vmul.f32 %v6130_v57, %v4843_v22  ;;  %v9808_v57 = vmul.f32 %v9656_v34, %v9522_v11  ;;  %v9817_v22 = vmul.f32 %v9705_v25, %v9543_v12 }
 0x5d7   : > { %6133 = vrsqrt.f32 %v4751_v31  ;;  %v4817_v46 = vmul.f32 %v6132_v14, %v4816_v47  ;;  %v4553_v47 = vmul.f32 %v9679_v29, %v9533_v0  ;;  %vm4834_vm13 = vcmp.eq.f32.partialorder %v4751_v31, inf }
 0x5d8   : > { %v4845_v17 = vmul.f32 %v4844_v50, %v4752_v2  ;;  %vm4836_vm14 = vcmp.eq.f32.partialorder %v4751_v31, 0.0 }
 0x5d9   : > { %v4818_v54 = vmul.f32 0.5, %v4817_v46  ;;  %v9827_v46 = vmul.f32 %v9694_v19, %v9533_v0 }
 0x5da   : > { %v4847_v5 = vsel %vm4846_vm9, %v4752_v2, %v4845_v17 }
 0x5db   : > { %v4850_v59 = vsel %vm4848_vm10, %v4849_v36, %v4847_v5  ;;  %v4819_v15 = vsub.f32 1.5, %v4818_v54  ;;  %v4837_v36 = vand.u32 2147483648, %v4751_v31 }
 0x5dc   : > { %4899 = vrot.lane.b32.xlu1 %v4850_v59, %s6433_s9 }
 0x5dd   : > { %v6134_v48 = vpop.eup %6133  ;;  %v4820_v10 = vmul.f32 %v6132_v14, %v4819_v15 }
 0x5de   : > { %v4828_v42 = vmul.f32 %v6134_v48, %v4751_v31 }
 0x5df   : > { %v9804_v27 = vpop.permute.xlu2 %4992  ;;  %v4821_v53 = vmul.f32 %v4820_v10, %v4750_v6 }
 0x5e0   : > { %v4829_v35 = vmul.f32 %v6134_v48, %v4828_v42 }
 0x5e1   : > { %v9810_v51 = vpop.permute.xlu1 %4489  ;;  %v4823_v2 = vsel %vm4822_vm11, %v4750_v6, %v4821_v53 }
 0x5e2   : > { %v4512_v40 = vsub.f32 %v9808_v57, %v9810_v51  ;;  %v4826_v37 = vsel %vm4824_vm12, %v4825_v13, %v4823_v2  ;;  %v4830_v32 = vmul.f32 0.5, %v4829_v35  ;;  %v4545_v35 = vmul.f32 %v9732_v3, %v9543_v12 }
 0x5e3   : > { %4895 = vrot.lane.b32.xlu0 %v4826_v37, %s6433_s9  ;;  %v9931_v51 = vmax.f32 %v4510_v45, 1e-10 }
 0x5e4   : > { %v4831_v14 = vsub.f32 1.5, %v4830_v32 }
 0x5e6   : > { %v4832_v11 = vmul.f32 %v6134_v48, %v4831_v14  ;;  %v9836_v48 = vmul.f32 %v9709_v7, %v9553_v56 }
 0x5e7   : > { %v9819_v34 = vpop.permute.xlu2 %4475 }
 0x5e8   : > { %v4505_v6 = vsub.f32 %v9817_v22, %v9819_v34  ;;  %v4833_v50 = vmul.f32 %v4832_v11, %v4751_v31 }
 0x5e9   : > { %v4592_v17 = vpop.permute.xlu1 %4591 }
 0x5ea   : > { %v9829_v54 = vpop.permute.xlu0 %4491  ;;  %v4613_v25 = vsub.f32 %v4553_v47, %v4592_v17  ;;  %v4835_v5 = vsel %vm4834_vm13, %v4751_v31, %v4833_v50  ;;  %v4546_v31 = vmul.f32 %v9749_v60, %v9561_v41  ;;  %v9849_v50 = vmax.f32 %v4508_v24, 1e-10 }
 0x5eb   : > { %v4513_v59 = vsub.f32 %v9827_v46, %v9829_v54  ;;  %v4838_v29 = vsel %vm4836_vm14, %v4837_v36, %v4835_v5  ;;  %v4554_v36 = vmul.f32 %v9741_v43, %v9553_v56  ;;  %v4695_v54 = vand.u32 2147483648, %v9931_v51 }
 0x5ec   : > { %v4753_v15 = vmax.f32 %v4613_v25, 1e-10  ;;  %4897 = vrot.lane.b32.xlu2 %v4838_v29, %s6433_s9  ;;  %vm4668_vm7 = vcmp.eq.f32.partialorder %v9849_v50, inf  ;;  %v4671_v62 = vand.u32 2147483648, %v9849_v50  ;;  %vm4670_vm8 = vcmp.eq.f32.partialorder %v9849_v50, 0.0 }
 0x5ee   : > { %6135 = vrsqrt.f32 %v4753_v15  ;;  %vm4858_vm15 = vcmp.eq.f32.partialorder %v4753_v15, inf  ;;  %v4861_v25 = vand.u32 2147483648, %v4753_v15  ;;  %vm4860_vm0 = vcmp.eq.f32.partialorder %v4753_v15, 0.0 }
 0x5ef   : > { %v9838_v0 = vpop.permute.xlu2 %4493 }
 0x5f0   : > { %v4514_v19 = vsub.f32 %v9836_v48, %v9838_v0 }
 0x5f4   : > { %v6136_v10 = vpop.eup %6135 }
 0x5f5   : > { %v4852_v42 = vmul.f32 %v6136_v10, %v4753_v15 }
 0x5f7   : > { %v4578_v53 = vpop.permute.xlu2 %4577  ;;  %v4853_v13 = vmul.f32 %v6136_v10, %v4852_v42 }
 0x5f8   : > { %v4606_v2 = vsub.f32 %v4546_v31, %v4578_v53 }
 0x5f9   : > { %v4576_v37 = vpop.permute.xlu0 %4575  ;;  %v4854_v7 = vmul.f32 0.5, %v4853_v13  ;;  %v9861_v13 = vmul.f32 %v9707_v21, %v9561_v41 }
 0x5fa   : > { %v4746_v32 = vmax.f32 %v4606_v2, 1e-10  ;;  %v4605_v14 = vsub.f32 %v4545_v35, %v4576_v37 }
 0x5fb   : > { %v4855_v11 = vsub.f32 1.5, %v4854_v7 }
 0x5fc   : > { %6137 = vrsqrt.f32 %v4746_v32  ;;  %v4745_v47 = vmax.f32 %v4605_v14, 1e-10  ;;  %vm4774_vm1 = vcmp.eq.f32.partialorder %v4746_v32, inf  ;;  %vm4776_vm2 = vcmp.eq.f32.partialorder %v4746_v32, 0.0 }
 0x5fd   : > { %v4856_v17 = vmul.f32 %v6136_v10, %v4855_v11 }
 0x5fe   : > { %6139 = vrsqrt.f32 %v4745_v47  ;;  %vm4762_vm3 = vcmp.eq.f32.partialorder %v4745_v47, inf  ;;  %vm4764_vm4 = vcmp.eq.f32.partialorder %v4745_v47, 0.0 }
 0x5ff   : > { %v4857_v60 = vmul.f32 %v4856_v17, %v4753_v15  ;;  %v9853_v12 = vpop.permute.xlu2 %5007  ;;  %6141 = vrsqrt.f32 %v9849_v50 }
 0x600   : > { %v9855_v3 = vpop.permute.xlu1 %4997 }
 0x601   : > { %v4594_v5 = vpop.permute.xlu0 %4593  ;;  %v4859_v29 = vsel %vm4858_vm15, %v4753_v15, %v4857_v60  ;;  %v9868_v15 = vmax.f32 %v4507_v8, 1e-10  ;;  %v4777_v8 = vand.u32 2147483648, %v4746_v32 }
 0x602   : > { %v6138_v16 = vpop.eup %6137  ;;  %v4614_v61 = vsub.f32 %v4554_v36, %v4594_v5  ;;  %v4862_v24 = vsel %vm4860_vm0, %v4861_v25, %v4859_v29 }
 0x603   : > { %4901 = vrot.lane.b32.xlu0 %v4862_v24, %s6433_s9  ;;  %v4768_v10 = vmul.f32 %v6138_v16, %v4746_v32  ;;  %vm4656_vm9 = vcmp.eq.f32.partialorder %v9868_v15, inf  ;;  %vm4658_vm10 = vcmp.eq.f32.partialorder %v9868_v15, 0.0 }
 0x604   : > { %v6140_v42 = vpop.eup %6139  ;;  %v4754_v31 = vmax.f32 %v4614_v61, 1e-10 }
 0x605   : > { %v4769_v56 = vmul.f32 %v6138_v16, %v4768_v10  ;;  %v4756_v43 = vmul.f32 %v6140_v42, %v4745_v47  ;;  %v6142_v53 = vpop.eup %6141 }
 0x606   : > { %6143 = vrsqrt.f32 %v4754_v31  ;;  %v4662_v60 = vmul.f32 %v6142_v53, %v9849_v50  ;;  %vm4870_vm5 = vcmp.eq.f32.partialorder %v4754_v31, inf  ;;  %vm4872_vm6 = vcmp.eq.f32.partialorder %v4754_v31, 0.0 }
 0x607   : > { %v4770_v35 = vmul.f32 0.5, %v4769_v56  ;;  %v4757_v2 = vmul.f32 %v6140_v42, %v4756_v43  ;;  %v9872_v17 = vpop.permute.xlu2 %5017  ;;  %6145 = vrsqrt.f32 %v9868_v15 }
 0x608   : > { %v9863_v37 = vpop.permute.xlu1 %4477  ;;  %v4663_v5 = vmul.f32 %v6142_v53, %v4662_v60  ;;  %v6434_v60 = vmov 3  }
 0x609   : > { %v4506_v7 = vsub.f32 %v9861_v13, %v9863_v37  ;;  %v4771_v14 = vsub.f32 1.5, %v4770_v35  ;;  %v4758_v11 = vmul.f32 0.5, %v4757_v2 }
 0x60b   : > { %5077 = vperm.xlu0 %6074, %v9661_v1   ;;  %v4772_v41 = vmul.f32 %v6138_v16, %v4771_v14  ;;  %v4759_v21 = vsub.f32 1.5, %v4758_v11  ;;  %v4765_v1 = vand.u32 2147483648, %v4745_v47  ;;  %v9882_v16 = vmax.f32 %v4509_v33, 1e-10 }
 0x60c   : > { %v6144_v36 = vpop.eup %6143  ;;  %v4664_v11 = vmul.f32 0.5, %v4663_v5 }
 0x60d   : > { %v4773_v25 = vmul.f32 %v4772_v41, %v4746_v32  ;;  %v4760_v18 = vmul.f32 %v6140_v42, %v4759_v21  ;;  %v4864_v9 = vmul.f32 %v6144_v36, %v4754_v31  ;;  %v6146_v2 = vpop.eup %6145  ;;  %6147 = vrsqrt.f32 %v9882_v16 }
 0x60e   : > { %v4650_v55 = vmul.f32 %v6146_v2, %v9868_v15  ;;  %v4873_v21 = vand.u32 2147483648, %v4754_v31  ;;  %vm4680_vm11 = vcmp.eq.f32.partialorder %v9882_v16, inf  ;;  %vm4682_vm12 = vcmp.eq.f32.partialorder %v9882_v16, 0.0 }
 0x60f   : > { %v4775_v29 = vsel %vm4774_vm1, %v4746_v32, %v4773_v25  ;;  %v4761_v61 = vmul.f32 %v4760_v18, %v4745_v47  ;;  %v4865_v24 = vmul.f32 %v6144_v36, %v4864_v9  ;;  %v9885_v32 = vpop.permute.xlu0 %5002  ;;  %v9889_v41 = vpop.permute.xlu2 %5032  ;;  %vm4692_vm1 = vcmp.eq.f32.partialorder %v9931_v51, inf }
 0x610   : > { %v9877_v10 = vpop.permute.xlu1 %5012  ;;  %v4778_v56 = vsel %vm4776_vm2, %v4777_v8, %v4775_v29  ;;  %v4651_v8 = vmul.f32 %v6146_v2, %v4650_v55  ;;  %vm4694_vm2 = vcmp.eq.f32.partialorder %v9931_v51, 0.0 }
 0x611   : > { %4887 = vrot.lane.b32.xlu1 %v4778_v56, %s6433_s9  ;;  %v4763_v42 = vsel %vm4762_vm3, %v4745_v47, %v4761_v61  ;;  %v4866_v43 = vmul.f32 0.5, %v4865_v24  ;;  %v4665_v47 = vsub.f32 1.5, %v4664_v11 }
 0x612   : > { %v4766_v35 = vsel %vm4764_vm4, %v4765_v1, %v4763_v42  ;;  %v4652_v56 = vmul.f32 0.5, %v4651_v8 }
 0x613   : > { %4885 = vrot.lane.b32.xlu2 %v4766_v35, %s6433_s9  ;;  %v4867_v14 = vsub.f32 1.5, %v4866_v43  ;;  %6079 = vset.pattern.permute.xlu0 %v6434_v60  ;;  %v6148_v5 = vpop.eup %6147  ;;  %v4666_v29 = vmul.f32 %v6142_v53, %v4665_v47 }
 0x614   : > { %v4653_v53 = vsub.f32 1.5, %v4652_v56 }
 0x615   : > { %v4868_v30 = vmul.f32 %v6144_v36, %v4867_v14  ;;  %v9902_v36 = vmax.f32 %v4511_v23, 1e-10  ;;  %v9920_v23 = vmax.f32 %v4512_v40, 1e-10 }
 0x616   : > { %v4654_v14 = vmul.f32 %v6146_v2, %v4653_v53 }
 0x617   : > { %v4869_v33 = vmul.f32 %v4868_v30, %v4754_v31  ;;  %v9897_v61 = vpop.permute.xlu0 %5027  ;;  %6149 = vrsqrt.f32 %v9902_v36  ;;  %vm4704_vm13 = vcmp.eq.f32.partialorder %v9902_v36, inf  ;;  %vm4706_vm14 = vcmp.eq.f32.partialorder %v9902_v36, 0.0 }
 0x618   : > { %v9893_v25 = vpop.permute.xlu1 %5022  ;;  %v9904_v24 = vpop.permute.xlu2 %5057  ;;  %6151 = vrsqrt.f32 %v9920_v23  ;;  %vm4716_vm15 = vcmp.eq.f32.partialorder %v9920_v23, inf  ;;  %vm4718_vm0 = vcmp.eq.f32.partialorder %v9920_v23, 0.0 }
 0x619   : > { %5072 = vperm.xlu1 %6076, %v9645_v28   ;;  %v4871_v18 = vsel %vm4870_vm5, %v4754_v31, %v4869_v33  ;;  %v4674_v28 = vmul.f32 %v6148_v5, %v9882_v16  ;;  %v4667_v31 = vmul.f32 %v4666_v29, %v9849_v50  ;;  %6153 = vrsqrt.f32 %v9931_v51 }
 0x61a   : > { %v4874_v9 = vsel %vm4872_vm6, %v4873_v21, %v4871_v18  ;;  %v4659_v21 = vand.u32 2147483648, %v9868_v15 }
 0x61b   : > { %4903 = vrot.lane.b32.xlu2 %v4874_v9, %s6433_s9  ;;  %v4675_v1 = vmul.f32 %v6148_v5, %v4674_v28  ;;  %v4669_v4 = vsel %vm4668_vm7, %v9849_v50, %v4667_v31  ;;  %v4683_v28 = vand.u32 2147483648, %v9882_v16 }
 0x61c   : > { %v4672_v43 = vsel %vm4670_vm8, %v4671_v62, %v4669_v4 }
 0x61d   : > { %v4676_v11 = vmul.f32 0.5, %v4675_v1  ;;  %v6150_v33 = vpop.eup %6149 }
 0x61e   : > { %v4698_v57 = vmul.f32 %v6150_v33, %v9902_v36  ;;  %v6152_v8 = vpop.eup %6151 }
 0x61f   : > { %v9922_v30 = vpop.permute.xlu0 %5052  ;;  %v4677_v47 = vsub.f32 1.5, %v4676_v11  ;;  %v4710_v29 = vmul.f32 %v6152_v8, %v9920_v23  ;;  %v6154_v56 = vpop.eup %6153 }
 0x620   : > { %v9911_v42 = vpop.permute.xlu1 %5037  ;;  %v4699_v9 = vmul.f32 %v6150_v33, %v4698_v57  ;;  %v4707_v57 = vand.u32 2147483648, %v9902_v36 }
 0x621   : > { %6078 = vset.pattern.permute.xlu1 %v6434_v60  ;;  %v4678_v2 = vmul.f32 %v6148_v5, %v4677_v47  ;;  %v4711_v53 = vmul.f32 %v6152_v8, %v4710_v29 }
 0x622   : > { %v4700_v45 = vmul.f32 0.5, %v4699_v9 }
 0x623   : > { %5067 = vperm.xlu2 %6075, %v9603_v44   ;;  %v4655_v44 = vmul.f32 %v4654_v14, %v9868_v15  ;;  %v4679_v20 = vmul.f32 %v4678_v2, %v9882_v16 }
 0x624   : > { %v4701_v31 = vsub.f32 1.5, %v4700_v45 }
 0x625   : > { %v4657_v50 = vsel %vm4656_vm9, %v9868_v15, %v4655_v44  ;;  %v4681_v5 = vsel %vm4680_vm11, %v9882_v16, %v4679_v20 }
 0x626   : > { %v4892_v35 = vpop.permute.xlu2 %4891  ;;  %v4684_v1 = vsel %vm4682_vm12, %v4683_v28, %v4681_v5  ;;  %v4702_v62 = vmul.f32 %v6150_v33, %v4701_v31 }
 0x627   : > { %v4918_v55 = vadd.f32 %v4892_v35, %v4672_v43  ;;  %v4712_v43 = vmul.f32 0.5, %v4711_v53 }
 0x628   : > { %v4703_v14 = vmul.f32 %v4702_v62, %v9902_v36 }
 0x629   : > { %4947 = vperm.xlu1 %6078, %v4918_v55   ;;  %v9933_v40 = vpop.permute.xlu1 %5062  ;;  %v4713_v11 = vsub.f32 1.5, %v4712_v43 }
 0x62a   : > { %v4705_v44 = vsel %vm4704_vm13, %v9902_v36, %v4703_v14  ;;  %v4624_v36 = vmax.f32 %v4514_v19, 1e-10 }
 0x62b   : > { %5082 = vperm.xlu2 %6075, %v9642_v58   ;;  %v4660_v58 = vsel %vm4658_vm10, %v4659_v21, %v4657_v50  ;;  %v4714_v47 = vmul.f32 %v6152_v8, %v4713_v11  ;;  %v4708_v16 = vsel %vm4706_vm14, %v4707_v57, %v4705_v44  ;;  %v9959_v8 = vmax.f32 %v4513_v59, 1e-10 }
 0x62c   : > { %v4615_v59 = vmax.f32 %v4505_v6, 1e-10  ;;  %vm4740_vm3 = vcmp.eq.f32.partialorder %v4624_v36, inf  ;;  %vm4742_vm5 = vcmp.eq.f32.partialorder %v4624_v36, 0.0 }
 0x62d   : > { %v4715_v21 = vmul.f32 %v4714_v47, %v9920_v23  ;;  %6155 = vrsqrt.f32 %v9959_v8  ;;  %vm4728_vm4 = vcmp.eq.f32.partialorder %v9959_v8, inf  ;;  %vm4730_vm6 = vcmp.eq.f32.partialorder %v9959_v8, 0.0 }
 0x62e   : > { %6157 = vrsqrt.f32 %v4624_v36  ;;  %vm4632_vm7 = vcmp.eq.f32.partialorder %v4615_v59, inf  ;;  %vm4634_vm8 = vcmp.eq.f32.partialorder %v4615_v59, 0.0 }
 0x62f   : > { %v4890_v18 = vpop.permute.xlu0 %4889  ;;  %v4717_v9 = vsel %vm4716_vm15, %v9920_v23, %v4715_v21  ;;  %6159 = vrsqrt.f32 %v4615_v59 }
 0x630   : > { %v4917_v63 = vadd.f32 %v4890_v18, %v4660_v58  ;;  %v4719_v58 = vand.u32 2147483648, %v9920_v23 }
 0x631   : > { %v4894_v15 = vpop.permute.xlu1 %4893 }
 0x632   : > { %v4919_v4 = vadd.f32 %v4894_v15, %v4684_v1 }
 0x633   : > { %6077 = vset.pattern.permute.xlu2 %v6434_v60  ;;  %v4686_v60 = vmul.f32 %v6154_v56, %v9931_v51  ;;  %v6156_v19 = vpop.eup %6155 }
 0x634   : > { %4942 = vperm.xlu2 %6077, %v4917_v63   ;;  %v4720_v63 = vsel %vm4718_vm0, %v4719_v58, %v4717_v9  ;;  %v6158_v5 = vpop.eup %6157  ;;  %v4722_v28 = vmul.f32 %v6156_v19, %v9959_v8 }
 0x635   : > { %v4687_v35 = vmul.f32 %v6154_v56, %v4686_v60  ;;  %v6160_v6 = vpop.eup %6159 }
 0x636   : > { %v4723_v34 = vmul.f32 %v6156_v19, %v4722_v28  ;;  %v4626_v15 = vmul.f32 %v6160_v6, %v4615_v59 }
 0x637   : > { %v4688_v55 = vmul.f32 0.5, %v4687_v35 }
 0x638   : > { %v4724_v53 = vmul.f32 0.5, %v4723_v34  ;;  %v9988_v34 = vand.u32 127, %v3795_v38 }
 0x639   : > { %v4689_v2 = vsub.f32 1.5, %v4688_v55 }
 0x63a   : > { %v4725_v62 = vsub.f32 1.5, %v4724_v53  ;;  %vm4929_vm11 = vcmp.eq.s32.totalorder %v9988_v34, 2  ;;  %vm4928_vm12 = vcmp.eq.s32.totalorder %v9988_v34, 1  ;;  %vm4927_vm13 = vcmp.eq.s32.totalorder %v9988_v34, 0 }
 0x63b   : > { %v4690_v18 = vmul.f32 %v6154_v56, %v4689_v2  ;;  %v4734_v56 = vmul.f32 %v6158_v5, %v4624_v36  ;;  %v4731_v2 = vand.u32 2147483648, %v9959_v8 }
 0x63c   : > { %4952 = vperm.xlu2 %6077, %v4919_v4   ;;  %v4627_v4 = vmul.f32 %v6160_v6, %v4626_v15  ;;  %v4726_v14 = vmul.f32 %v6156_v19, %v4725_v62 }
 0x63d   : > { %v4691_v45 = vmul.f32 %v4690_v18, %v9931_v51  ;;  %v4735_v22 = vmul.f32 %v6158_v5, %v4734_v56 }
 0x63e   : > { %v4727_v37 = vmul.f32 %v4726_v14, %v9959_v8 }
 0x63f   : > { %v4693_v46 = vsel %vm4692_vm1, %v9931_v51, %v4691_v45  ;;  %v4616_v51 = vmax.f32 %v4506_v7, 1e-10  ;;  %v4736_v31 = vmul.f32 0.5, %v4735_v22 }
 0x640   : > { %v4696_v48 = vsel %vm4694_vm2, %v4695_v54, %v4693_v46  ;;  %v4635_v54 = vand.u32 2147483648, %v4615_v59 }
 0x641   : > { %6161 = vrsqrt.f32 %v4616_v51  ;;  %v4737_v60 = vsub.f32 1.5, %v4736_v31  ;;  %vm4644_vm9 = vcmp.eq.f32.partialorder %v4616_v51, inf  ;;  %vm4646_vm10 = vcmp.eq.f32.partialorder %v4616_v51, 0.0 }
 0x643   : > { %v4738_v35 = vmul.f32 %v6158_v5, %v4737_v60 }
 0x645   : > { %v4739_v13 = vmul.f32 %v4738_v35, %v4624_v36 }
 0x646   : > { %v4898_v50 = vpop.permute.xlu2 %4897 }
 0x647   : > { %v4921_v33 = vadd.f32 %v4898_v50, %v4708_v16  ;;  %v6162_v1 = vpop.eup %6161  ;;  %v4741_v57 = vsel %vm4740_vm3, %v4624_v36, %v4739_v13  ;;  %v4729_v16 = vsel %vm4728_vm4, %v9959_v8, %v4727_v37  ;;  %v4743_v50 = vand.u32 2147483648, %v4624_v36 }
 0x648   : > { %v4638_v43 = vmul.f32 %v6162_v1, %v4616_v51  ;;  %v4732_v9 = vsel %vm4730_vm6, %v4731_v2, %v4729_v16 }
 0x649   : > { %4962 = vperm.xlu0 %6079, %v4921_v33   ;;  %v4744_v21 = vsel %vm4742_vm5, %v4743_v50, %v4741_v57 }
 0x64a   : > { %v4639_v11 = vmul.f32 %v6162_v1, %v4638_v43 }
 0x64c   : > { %v4640_v7 = vmul.f32 0.5, %v4639_v11 }
 0x64e   : > { %v4900_v20 = vpop.permute.xlu1 %4899  ;;  %v4641_v33 = vsub.f32 1.5, %v4640_v7 }
 0x64f   : > { %v4922_v29 = vadd.f32 %v4900_v20, %v4720_v63 }
 0x651   : > { %4967 = vperm.xlu2 %6077, %v4922_v29   ;;  %v4642_v29 = vmul.f32 %v6162_v1, %v4641_v33 }
 0x655   : > { %v4896_v0 = vpop.permute.xlu0 %4895 }
 0x656   : > { %v4920_v23 = vadd.f32 %v4896_v0, %v4696_v48  ;;  %v4643_v48 = vmul.f32 %v4642_v29, %v4616_v51 }
 0x658   : > { %4957 = vperm.xlu1 %6078, %v4920_v23   ;;  %v4645_v19 = vsel %vm4644_vm9, %v4616_v51, %v4643_v48  ;;  %v4647_v23 = vand.u32 2147483648, %v4616_v51 }
 0x659   : > { %6082 = vset.pattern.permute.xlu2 %v6432_v26 }
 0x65a   : > { %5097 = vperm.xlu2 %6082, %v9726_v39   ;;  %v4628_v39 = vmul.f32 0.5, %v4627_v4  ;;  %v4648_v5 = vsel %vm4646_vm10, %v4647_v23, %v4645_v19 }
 0x65c   : > { %v4629_v44 = vsub.f32 1.5, %v4628_v39 }
 0x65e   : > { %v4630_v47 = vmul.f32 %v6160_v6, %v4629_v44 }
 0x660   : > { %v4631_v63 = vmul.f32 %v4630_v47, %v4615_v59 }
 0x662   : > { %v4633_v46 = vsel %vm4632_vm7, %v4615_v59, %v4631_v63 }
 0x663   : > { %v4636_v0 = vsel %vm4634_vm8, %v4635_v54, %v4633_v46 }
 0x66d   : > { %v4886_v55 = vpop.permute.xlu2 %4885 }
 0x66e   : > { %v4915_v8 = vadd.f32 %v4886_v55, %v4636_v0 }
 0x675   : > { %v4904_v18 = vpop.permute.xlu2 %4903  ;;  %v4902_v58 = vpop.permute.xlu0 %4901 }
 0x676   : > { %v4924_v20 = vadd.f32 %v4904_v18, %v4744_v21  ;;  %v4923_v45 = vadd.f32 %v4902_v58, %v4732_v9 }
 0x678   : > { %4977 = vperm.xlu0 %6079, %v4924_v20   ;;  %4972 = vperm.xlu1 %6078, %v4923_v45  }
 0x67d   : > { %v5068_v36 = vpop.permute.xlu2 %5067  ;;  %v5078_v4 = vpop.permute.xlu0 %5077 }
 0x680   : > { %4932 = vperm.xlu1 %6078, %v4915_v8  }
 0x683   : > { %v4888_v56 = vpop.permute.xlu1 %4887 }
 0x684   : > { %v4916_v28 = vadd.f32 %v4888_v56, %v4648_v5 }
 0x685   : > { %v5083_v22 = vpop.permute.xlu2 %5082 }
 0x686   : > { %4937 = vperm.xlu0 %6079, %v4916_v28  }
 0x688   : > { %6080 = vset.pattern.permute.xlu1 %v6432_v26 }
 0x689   : > { %5087 = vperm.xlu1 %6080, %v9686_v52  }
 0x68e   : > { %v4943_v59 = vpop.permute.xlu2 %4942  ;;  %6081 = vset.pattern.permute.xlu0 %v6432_v26  ;;  %v5073_v26 = vpop.permute.xlu1 %5072 }
 0x68f   : > { %v4982_v51 = vsel %vm4929_vm11, %v4943_v59, 0.0  ;;  %5092 = vperm.xlu0 %6081, %v9697_v49  }
 0x690   : > { %v5042_v38 = vsel %vm4928_vm12, %v9885_v32, %v4982_v51 }
 0x691   : > { %v5102_v52 = vsel %vm4927_vm13, %v9933_v40, %v5042_v38 }
 0x692   : > { %5112 = vst [vmem:[%s10005_s5 + $0x10] sm:$0xff] %v5102_v52 }
 0x696   : > { %v4953_v6 = vpop.permute.xlu2 %4952 }
 0x697   : > { %v4984_v49 = vsel %vm4929_vm11, %v4953_v6, 0.0 }
 0x698   : > { %v5044_v32 = vsel %vm4928_vm12, %v9877_v10, %v4984_v49 }
 0x699   : > { %v5104_v15 = vsel %vm4927_vm13, %v5073_v26, %v5044_v32 }
 0x69a   : > { %5114 = vst [vmem:[%s10005_s5 + $0x20] sm:$0xff] %v5104_v15 }
 0x69b   : > { %v4948_v40 = vpop.permute.xlu1 %4947 }
 0x69c   : > { %v4983_v31 = vsel %vm4929_vm11, %v4948_v40, 0.0 }
 0x69d   : > { %v5043_v53 = vsel %vm4928_vm12, %v9853_v12, %v4983_v31 }
 0x69e   : > { %v5103_v1 = vsel %vm4927_vm13, %v5068_v36, %v5043_v53 }
 0x69f   : > { %5113 = vst [vmem:[%s10005_s5 + $0x18] sm:$0xff] %v5103_v1 }
 0x6ab   : > { %v4968_v11 = vpop.permute.xlu2 %4967 }
 0x6b4   : > { %v5098_v13 = vpop.permute.xlu2 %5097 }
 0x6bb   : > { %v4963_v60 = vpop.permute.xlu0 %4962 }
 0x6bc   : > { %v4986_v10 = vsel %vm4929_vm11, %v4963_v60, 0.0 }
 0x6bd   : > { %v5046_v62 = vsel %vm4928_vm12, %v9893_v25, %v4986_v10 }
 0x6be   : > { %v5106_v43 = vsel %vm4927_vm13, %v5083_v22, %v5046_v62 }
 0x6bf   : > { %5116 = vst [vmem:[%s10005_s5 + $0x30] sm:$0xff] %v5106_v43 }
 0x6ca   : > { %v4958_v39 = vpop.permute.xlu1 %4957 }
 0x6cb   : > { %v4985_v12 = vsel %vm4929_vm11, %v4958_v39, 0.0 }
 0x6cc   : > { %v5045_v35 = vsel %vm4928_vm12, %v9872_v17, %v4985_v12 }
 0x6cd   : > { %v5105_v14 = vsel %vm4927_vm13, %v5078_v4, %v5045_v35 }
 0x6ce   : > { %5115 = vst [vmem:[%s10005_s5 + $0x28] sm:$0xff] %v5105_v14 }
 0x6ea   : > { %v4978_v55 = vpop.permute.xlu0 %4977  ;;  %v4973_v25 = vpop.permute.xlu1 %4972 }
 0x6eb   : > { %v4989_v44 = vsel %vm4929_vm11, %v4978_v55, 0.0  ;;  %v4988_v9 = vsel %vm4929_vm11, %v4973_v25, 0.0 }
 0x6ec   : > { %v5049_v37 = vsel %vm4928_vm12, %v9911_v42, %v4989_v44  ;;  %v4987_v42 = vsel %vm4929_vm11, %v4968_v11, 0.0 }
 0x6ed   : > { %v5109_v7 = vsel %vm4927_vm13, %v5098_v13, %v5049_v37 }
 0x6ee   : > { %5119 = vst [vmem:[%s10005_s5 + $0x48] sm:$0xff] %v5109_v7 }
 0x6f2   : > { %v4933_v17 = vpop.permute.xlu1 %4932 }
 0x6f3   : > { %v4980_v47 = vsel %vm4929_vm11, %v4933_v17, 0.0 }
 0x6f4   : > { %v5040_v57 = vsel %vm4928_vm12, %v9804_v27, %v4980_v47  ;;  %v5047_v27 = vsel %vm4928_vm12, %v9897_v61, %v4987_v42 }
 0x6f5   : > { %v5100_v16 = vsel %vm4927_vm13, %v9922_v30, %v5040_v57 }
 0x6f6   : > { %5110 = vst [vmem:[%s10005_s5] sm:$0xff] %v5100_v16 }
 0x6f8   : > { %v4938_v50 = vpop.permute.xlu0 %4937 }
 0x6f9   : > { %v4981_v2 = vsel %vm4929_vm11, %v4938_v50, 0.0 }
 0x6fa   : > { %v5041_v33 = vsel %vm4928_vm12, %v9855_v3, %v4981_v2  ;;  %v5048_v3 = vsel %vm4928_vm12, %v9889_v41, %v4988_v9 }
 0x6fb   : > { %v5101_v30 = vsel %vm4927_vm13, %v9904_v24, %v5041_v33  ;;  %v5088_v21 = vpop.permute.xlu1 %5087 }
 0x6fc   : > { %5111 = vst [vmem:[%s10005_s5 + $0x8] sm:$0xff] %v5101_v30  ;;  %v5107_v18 = vsel %vm4927_vm13, %v5088_v21, %v5047_v27 }
 0x6fd   : > { %5117 = vst [vmem:[%s10005_s5 + $0x38] sm:$0xff] %v5107_v18 }
 0x6ff   : > { %5127 = sbr.rel (!%p10408_p6) target bundleno = 1827 (0x723), region = 52 }
 0x701   : > { %v5093_v58 = vpop.permute.xlu0 %5092 }
 0x702   : > { %v5108_v61 = vsel %vm4927_vm13, %v5093_v58, %v5048_v3 }
 0x703   : > { %5118 = vst [vmem:[%s10005_s5 + $0x40] sm:$0xff] %v5108_v61 }
 0x704   : > { %s10421_s6 = smov (!%p5130_p12, %s5129_s6), 10 }
 0x705   : > { %s5827_s23 = sshll.u32 %s10421_s6, 3 }
 0x706   : > { %s5133_s7 = ssub.s32 80, %s5827_s23 }
 0x707   : > { %s5134_s11 = sshll.u32 %s5133_s7, 4 }
 0x708   : > { %5135 = vsyncadd %s5121_s22, %s5134_s11  ;;  %p10091_p7 = scmp.ne.s32.totalorder %s5827_s23, 0  ;;  %s5138_s12 = scalar_lea.hbm %s10149_s4, %s3794_s25 }
 0x709   : > { %s5140_s30 = sshll.u32 %s10005_s5, 4  ;;  %s5142_s8 = sshll.u32 %s5138_s12, 4  ;;  %s10101_s30 = int_to_ptr.vmem [resolvable:$true] %s5140_s30  ;;  %s10103_s8 = int_to_ptr.hbm [resolvable:$true] %s5142_s8 }
 0x70a   : > { %s5831_s13 = sshll.u32 %s10421_s6, 7  ;;  %s6331_s3 = sshra.s32 %s10101_s30, 4  ;;  %s6332_s3 = int_to_ptr.vmem [resolvable:$true] %s6331_s3 }
 0x70b   : > { %s6333_s20 = sshrl.u32 %s5831_s13, 4  ;;  %s6435_s19 = smov [#allocation8]  }
 0x70c   : > { %s6338_s9 = scalar_lea.vmem %s6332_s3, %s6333_s20  ;;  %s6342_s26 = scalar_lea.vmem %s6435_s19, 160 }
 0x70d   : > { %p6339_p10 = scmp.ne.s32.totalorder %s6332_s3, %s6338_s9  ;;  %p6344_p2 = scmp.lt.s32.totalorder %s6342_s26, %s6338_s9 }
 0x70f   : > { %p6340_p1 = pnand %p6339_p10, %p10091_p7 }
 0x711   : > { %p6341_p0 = pneg %p6340_p1 }
 0x713   : > { %p6346_p3 = pnand %p6344_p2, %p6341_p0 }
 0x715   : > { %6349 = shalt.err (!%p6346_p3)
}
 0x716   : > { %s6350_s25 = sshra.s32 %s10103_s8, 4  ;;  %s6361_s7 = scalar_lea.hbm %s10149_s4, 304  ;;  %s6351_s25 = int_to_ptr.hbm [resolvable:$true] %s6350_s25 }
 0x717   : > { %s6357_s5 = scalar_lea.hbm %s6351_s25, %s6333_s20  ;;  %p6362_p11 = scmp.lt.s32.totalorder %s6351_s25, %s10149_s4 }
 0x718   : > { %p6358_p8 = scmp.ne.s32.totalorder %s6351_s25, %s6357_s5  ;;  %p6363_p13 = scmp.lt.s32.totalorder %s6361_s7, %s6357_s5 }
 0x71a   : > { %p6359_p9 = pnand %p6358_p8, %p10091_p7  ;;  %p6364_p5 = por %p6363_p13, %p6362_p11 }
 0x71c   : > { %p6360_p4 = pneg %p6359_p9 }
 0x71e   : > { %p6365_p6 = pnand %p6364_p5, %p6360_p4 }
 0x720   : > { %6368 = shalt.err (!%p6365_p6)
}
 0x721   : > { %s6436_s29 = smov 128   ;;  %s6437_s12 = smov 8  }
 0x722   : > { %5148 = dma.vmem_to_hbm [thread:$0]  (%p10091_p7), %s10101_s30, %s5831_s13, %s10103_s8, %s5121_s22, %s6436_s29, %s6436_s29, %s6437_s12  }
 0x723 PF: > { %p6021_p12 = scmp.ge.s32.totalorder %s6416_s18, 2  ;;  %s5157_s3 = sand.u32 1, %s6404_s15  }
 0x724   : > { %p10410_p10 = scmp.ne.s32.totalorder %s10237_s28, 0  ;;  %s5158_s20 = scalar_lea.sflag [#allocation4], %s5157_s3 }
 0x726   : > { %p6016_p1 = pnand %p6021_p12, %p10410_p10 }
 0x728   : > { %p6017_p0 = pneg %p6016_p1 }
 0x72a   : > { %6399 = dma.done.wait (%p6017_p0), %s5158_s20, 1280  }
 0x72b   : > { %6401 = vsyncadd (%p6017_p0), %s5158_s20, 4294966016  ;;  %s10411_s27 = sld [smem:[#allocation13_spill]]  ;;  %p20_p2 = scmp.ge.s32.totalorder %s6488_s21, 6  }
 0x72c   : > { %s10412_s15 = smov %s6408_s16  ;;  %s10413_s16 = smov %s6412_s17 }
 0x72d   : > { %s10415_s18 = smov %s6488_s21  ;;  %22 = sbr.rel (!%p20_p2) target bundleno = 9 (0x9), region = 99 }
 0x731   : > { %s10414_s17 = smov %s10411_s27 }
 0x732   :  { %5164 = vsyncpa [#allocation3], 1 }
 0x733   :  { %5166 = vsyncpa [#allocation3 + $0x1], 1 }
 0x734   :  { %5167 = vsyncpa [#allocation6], 1 }
 0x735   :  { %5169 = vsyncpa [#allocation6 + $0x1], 1 }
 0x736   :  { %5170 = vsyncpa [#allocation4], 1 }
 0x737   :  { %5172 = vsyncpa [#allocation4 + $0x1], 1 }

</bundles_post_ra>
